<compile_context>
chip_gen: v7x
topology: tpu7x:2x2x1
jax: 0.10.0
libtpu: 0.0.40
codegen_flags: <defaults>
</compile_context>

<pallas_src>
import jax
import jax.numpy as jnp
from jax.experimental import pallas as pl
from jax.experimental.pallas import tpu as pltpu

EPS = 1e-5


# ------------------------------- fused kernel -----------------------------

def _make_down_kernel(mm_dtype):
    def kernel(x_ref, w1_ref, b1_ref, wr_ref, w2_ref, b2r_ref, o_ref):
        # x_ref : (nb, H2, 2, W2, 2*Cin)  -- free reshape of the NHWC input
        # w1_ref: (9, Cin, Cout)   b1_ref : (1, Cout)
        # wr_ref: (Cin, Cout)      (1x1 residual conv)
        # w2_ref: (9, Cout, Cout)  b2r_ref: (1, Cout)   (b2 + b_res folded)
        # o_ref : (nb, Cout, HW)   -- lane-dense (channel-major) output
        nb, H2, _, W2, cin2 = x_ref.shape
        cin = cin2 // 2
        HW = H2 * W2
        M = nb * HW
        cout = o_ref.shape[1]

        # ---- MaxPool2d(2): pair-max over H (leading dim) and W (lane halves) ----
        t = x_ref[...]                                      # (nb, H2, 2, W2, 2*Cin)
        a = jnp.maximum(t[:, :, 0], t[:, :, 1])             # (nb, H2, W2, 2*Cin)
        pooled = jnp.maximum(a[..., :cin], a[..., cin:])    # (nb, H2, W2, Cin)

        def conv3x3_acc(x4, w_taps_ref, acc):
            # x4: (nb, H2, W2, C) f32; w_taps_ref: (9, C, Cout); acc: (M, Cout) f32
            C = x4.shape[-1]
            # 2 zero rows on each side of H so every tap window is an in-range static
            # slice of the flattened (H2+4)*W2 axis (covers both the dy and dx shift).
            zpad = jnp.zeros((nb, 2, W2, C), jnp.float32)
            pflat = jnp.concatenate([zpad, x4, zpad], axis=1)
            pflat = pflat.reshape(nb, (H2 + 4) * W2, C)
            # w-coordinate of every flattened output position, for the W-boundary masks
            w_pos = jax.lax.broadcasted_iota(jnp.int32, (nb, HW, C), 1) % W2
            ok_left = w_pos >= 1           # source column w-1 exists
            ok_right = w_pos < (W2 - 1)    # source column w+1 exists
            for ky in range(3):
                for kx in range(3):
                    dy, dx = ky - 1, kx - 1
                    start = (dy + 2) * W2 + dx
                    win = pflat[:, start:start + HW, :]     # out[p] reads in[p+dy*W2+dx]
                    if dx == -1:
                        win = jnp.where(ok_left, win, 0.0)
                    elif dx == 1:
                        win = jnp.where(ok_right, win, 0.0)
                    acc = acc + jnp.dot(
                        win.reshape(M, C).astype(mm_dtype),
                        w_taps_ref[ky * 3 + kx],
                        preferred_element_type=jnp.float32)
            return acc

        def instance_norm_elu(y):
            # y: (M, Cout) f32 -> per-sample, per-channel norm over HW, then ELU
            y3 = y.reshape(nb, HW, cout)
            mean = jnp.mean(y3, axis=1, keepdims=True)
            c = y3 - mean
            var = jnp.mean(c * c, axis=1, keepdims=True)
            z = c * jax.lax.rsqrt(var + EPS)
            z = jnp.where(z > 0, z, jnp.exp(jnp.minimum(z, 0.0)) - 1.0)   # ELU(alpha=1)
            return z.reshape(M, cout)

        # ---- conv[0] 3x3 -> IN -> ELU ----
        y1 = conv3x3_acc(pooled, w1_ref, jnp.zeros((M, cout), jnp.float32)) + b1_ref[...]
        h1 = instance_norm_elu(y1)                          # (M, Cout)

        # ---- conv[3] 3x3 + folded 1x1 residual -> IN -> ELU ----
        res = jnp.dot(pooled.reshape(M, cin).astype(mm_dtype), wr_ref[...],
                      preferred_element_type=jnp.float32)
        y2 = conv3x3_acc(h1.reshape(nb, H2, W2, cout), w2_ref, res) + b2r_ref[...]
        out = instance_norm_elu(y2)                         # (M, Cout)

        # lane-dense store: (nb, Cout, HW)
        o_ref[...] = jnp.transpose(out.reshape(nb, HW, cout), (0, 2, 1))

    return kernel


# ------------------------------ glue (JAX) --------------------------------

def _conv_w_taps(w):
    # PyTorch conv weight (Cout, Cin, 3, 3) -> (9, Cin, Cout), tap index = ky*3 + kx
    Cout, Cin, kh, kw = w.shape
    return jnp.transpose(w, (2, 3, 1, 0)).reshape(kh * kw, Cin, Cout)


def down_forward(x_nchw, params, *, matmul_dtype=jnp.float32, samples_per_block=None):
    N, Cin, H, W = x_nchw.shape
    H2, W2 = H // 2, W // 2
    HW = H2 * W2
    Cout = params["w1"].shape[0]

    if samples_per_block is None:
        # Fill the MXU's M dimension (>=128 rows) with as few grid steps as possible.
        # (On v7x prefer samples_per_block = N // 2 so both TensorCores get a step.)
        nb = min(N, max(1, -(-128 // HW)))
        while N % nb:
            nb -= 1
    else:
        nb = samples_per_block
    grid = (N // nb,)

    # NCHW -> NHWC (the only host-side layout transform), then a free reshape exposing
    # the 2x2 pooling window on a leading dim / lane halves.
    x5 = (jnp.transpose(x_nchw, (0, 2, 3, 1)).astype(jnp.float32)
          .reshape(N, H2, 2, W2, 2 * Cin))

    w1 = _conv_w_taps(params["w1"]).astype(matmul_dtype)                 # (9, Cin, Cout)
    w2 = _conv_w_taps(params["w2"]).astype(matmul_dtype)                 # (9, Cout, Cout)
    wr = jnp.transpose(params["w_res"][:, :, 0, 0], (1, 0)).astype(matmul_dtype)  # (Cin, Cout)
    b1 = params["b1"].reshape(1, Cout).astype(jnp.float32)
    b2r = (params["b2"] + params["b_res"]).reshape(1, Cout).astype(jnp.float32)

    itemsize = jnp.dtype(matmul_dtype).itemsize
    flops = 2 * N * HW * Cout * (9 * Cin + 9 * Cout + Cin)
    bytes_accessed = (N * (4 * HW) * Cin * 4                              # input
                      + (9 * Cin + 9 * Cout + Cin) * Cout * itemsize      # weights
                      + 2 * Cout * 4                                      # biases
                      + N * HW * Cout * 4)                                # output
    cost = pl.CostEstimate(flops=flops, transcendentals=2 * N * HW * Cout,
                           bytes_accessed=bytes_accessed)

    out = pl.pallas_call(
        _make_down_kernel(matmul_dtype),
        out_shape=jax.ShapeDtypeStruct((N, Cout, HW), jnp.float32),
        grid=grid,
        in_specs=[
            pl.BlockSpec((nb, H2, 2, W2, 2 * Cin), lambda b: (b, 0, 0, 0, 0)),
            pl.BlockSpec((9, Cin, Cout), lambda b: (0, 0, 0)),
            pl.BlockSpec((1, Cout), lambda b: (0, 0)),
            pl.BlockSpec((Cin, Cout), lambda b: (0, 0)),
            pl.BlockSpec((9, Cout, Cout), lambda b: (0, 0, 0)),
            pl.BlockSpec((1, Cout), lambda b: (0, 0)),
        ],
        out_specs=pl.BlockSpec((nb, Cout, HW), lambda b: (b, 0, 0)),
        compiler_params=pltpu.CompilerParams(dimension_semantics=("parallel",)),
        cost_estimate=cost,
    )(x5, w1, b1, wr, w2, b2r)

    # (N, Cout, HW) -> NCHW for free (no transpose needed)
    return out.reshape(N, Cout, H2, W2)


# ------------------------- params & reference -----------------------------

def init_params(key, in_ch, out_ch):
    ks = jax.random.split(key, 6)

    def u(k, shape, fan_in):
        bound = 1.0 / float(fan_in) ** 0.5
        return jax.random.uniform(k, shape, jnp.float32, -bound, bound)

    return {
        "w1": u(ks[0], (out_ch, in_ch, 3, 3), in_ch * 9),
        "b1": u(ks[1], (out_ch,), in_ch * 9),
        "w2": u(ks[2], (out_ch, out_ch, 3, 3), out_ch * 9),
        "b2": u(ks[3], (out_ch,), out_ch * 9),
        "w_res": u(ks[4], (out_ch, in_ch, 1, 1), in_ch),
        "b_res": u(ks[5], (out_ch,), in_ch),
    }


def down_reference(x_nchw, params):
    """Pure-JAX NCHW reference (independent of the Pallas path)."""
    x = x_nchw.astype(jnp.float32)
    xp = jax.lax.reduce_window(x, -jnp.inf, jax.lax.max,
                               (1, 1, 2, 2), (1, 1, 2, 2), "VALID")

    def conv(inp, w, b, pad):
        out = jax.lax.conv_general_dilated(
            inp, w, (1, 1), [(pad, pad), (pad, pad)],
            dimension_numbers=("NCHW", "OIHW", "NCHW"),
            precision=jax.lax.Precision.HIGHEST)
        return out + b.reshape(1, -1, 1, 1)

    def inorm(z):
        mean = jnp.mean(z, axis=(2, 3), keepdims=True)
        var = jnp.mean((z - mean) ** 2, axis=(2, 3), keepdims=True)
        return (z - mean) * jax.lax.rsqrt(var + EPS)

    def elu(z):
        return jnp.where(z > 0, z, jnp.exp(jnp.minimum(z, 0.0)) - 1.0)

    h = elu(inorm(conv(xp, params["w1"], params["b1"], 1)))
    h = conv(h, params["w2"], params["b2"], 1)
    res = conv(xp, params["w_res"], params["b_res"], 0)
    return elu(inorm(h + res))


if __name__ == "__main__":
    key = jax.random.PRNGKey(0)
    k_x, k_p = jax.random.split(key)

    N, Cin, H, W = 2, 4, 16, 16
    Cout = 8
    x = jax.random.normal(k_x, (N, Cin, H, W), jnp.float32)
    params = init_params(k_p, Cin, Cout)

    ref = down_reference(x, params)

    # f32-operand path (reference-accuracy check)
    out_f32 = jax.jit(lambda a, p: down_forward(a, p, matmul_dtype=jnp.float32))(x, params)
    out_f32 = jax.block_until_ready(out_f32)
    err_f32 = float(jnp.max(jnp.abs(out_f32 - ref)))

    # bf16-operand path (recommended MXU setting on v6e/v7x; f32 accumulation)
    out_bf16 = jax.jit(lambda a, p: down_forward(a, p, matmul_dtype=jnp.bfloat16))(x, params)
    out_bf16 = jax.block_until_ready(out_bf16)
    err_bf16 = float(jnp.max(jnp.abs(out_bf16 - ref)))

    ok = (out_f32.shape == (N, Cout, H // 2, W // 2)
          and bool(jnp.all(jnp.isfinite(out_f32)))
          and bool(jnp.all(jnp.isfinite(out_bf16)))
          and err_f32 < 1e-2
          and err_bf16 < 1e-1)
    if ok:
        print("KERNEL_OK")
    else:
        print("MISMATCH f32_err=", err_f32, " bf16_err=", err_bf16)
</pallas_src>

<mosaic_0001>
module attributes {stable_mosaic.version = 11 : i64} {
  func.func @kernel(%arg0: i32, %arg1: memref<2x8x2x8x8xf32, #tpu.memory_space<vmem>>, %arg2: memref<9x4x8xf32, #tpu.memory_space<vmem>>, %arg3: memref<1x8xf32, #tpu.memory_space<vmem>>, %arg4: memref<4x8xf32, #tpu.memory_space<vmem>>, %arg5: memref<9x8x8xf32, #tpu.memory_space<vmem>>, %arg6: memref<1x8xf32, #tpu.memory_space<vmem>>, %arg7: memref<2x8x64xf32, #tpu.memory_space<vmem>>) attributes {dimension_semantics = [#tpu.dimension_semantics<parallel>], iteration_bounds = array<i64: 1>, scalar_prefetch = 0 : i64, scratch_operands = 0 : i64, tpu.core_type = #tpu.core_type<tc>, window_params = [{transform_indices = @transform_0, window_bounds = array<i64: 2, 8, 2, 8, 8>}, {pipeline_mode = #tpu.pipeline_mode<synchronous>, transform_indices = @transform_1, window_bounds = array<i64: 9, 4, 8>}, {pipeline_mode = #tpu.pipeline_mode<synchronous>, transform_indices = @transform_2, window_bounds = array<i64: 1, 8>}, {pipeline_mode = #tpu.pipeline_mode<synchronous>, transform_indices = @transform_3, window_bounds = array<i64: 4, 8>}, {pipeline_mode = #tpu.pipeline_mode<synchronous>, transform_indices = @transform_4, window_bounds = array<i64: 9, 8, 8>}, {pipeline_mode = #tpu.pipeline_mode<synchronous>, transform_indices = @transform_5, window_bounds = array<i64: 1, 8>}, {transform_indices = @transform_6, window_bounds = array<i64: 2, 8, 64>}]} {
    %c0 = arith.constant 0 : index
    %c0_0 = arith.constant 0 : index
    %c0_1 = arith.constant 0 : index
    %c0_2 = arith.constant 0 : index
    %c0_3 = arith.constant 0 : index
    %0 = vector.load %arg1[%c0, %c0_0, %c0_1, %c0_2, %c0_3] : memref<2x8x2x8x8xf32, #tpu.memory_space<vmem>>, vector<2x8x2x8x8xf32>
    %1 = vector.extract_strided_slice %0 {offsets = [0, 0, 0, 0, 0], sizes = [2, 8, 1, 8, 8], strides = [1, 1, 1, 1, 1]} : vector<2x8x2x8x8xf32> to vector<2x8x1x8x8xf32>
    %2 = vector.shape_cast %1 : vector<2x8x1x8x8xf32> to vector<2x8x8x8xf32>
    %3 = vector.extract_strided_slice %0 {offsets = [0, 0, 1, 0, 0], sizes = [2, 8, 1, 8, 8], strides = [1, 1, 1, 1, 1]} : vector<2x8x2x8x8xf32> to vector<2x8x1x8x8xf32>
    %4 = vector.shape_cast %3 : vector<2x8x1x8x8xf32> to vector<2x8x8x8xf32>
    %5 = arith.maximumf %2, %4 : vector<2x8x8x8xf32>
    %6 = vector.extract_strided_slice %5 {offsets = [0, 0, 0, 0], sizes = [2, 8, 8, 4], strides = [1, 1, 1, 1]} : vector<2x8x8x8xf32> to vector<2x8x8x4xf32>
    %7 = vector.extract_strided_slice %5 {offsets = [0, 0, 0, 4], sizes = [2, 8, 8, 4], strides = [1, 1, 1, 1]} : vector<2x8x8x8xf32> to vector<2x8x8x4xf32>
    %8 = arith.maximumf %6, %7 : vector<2x8x8x4xf32>
    %cst = arith.constant 0.000000e+00 : f32
    %9 = vector.broadcast %cst : f32 to vector<128x8xf32>
    %cst_4 = arith.constant 0.000000e+00 : f32
    %10 = vector.broadcast %cst_4 : f32 to vector<2x2x8x4xf32>
    %11 = tpu.concatenate %10, %8, %10 in 1 : vector<2x2x8x4xf32>, vector<2x8x8x4xf32>, vector<2x2x8x4xf32> -> vector<2x12x8x4xf32>
    %12 = vector.shape_cast %11 : vector<2x12x8x4xf32> to vector<2x96x4xf32>
    %13 = tpu.iota {dimensions = array<i32: 1>} : vector<2x64x4xi32>
    %c8_i32 = arith.constant 8 : i32
    %c0_i32 = arith.constant 0 : i32
    %14 = arith.cmpi eq, %c8_i32, %c0_i32 : i32
    %c1_i32 = arith.constant 1 : i32
    %15 = arith.select %14, %c1_i32, %c8_i32 : i32
    %16 = vector.broadcast %15 : i32 to vector<2x64x4xi32>
    %17 = arith.remsi %13, %16 : vector<2x64x4xi32>
    %c0_i32_5 = arith.constant 0 : i32
    %18 = vector.broadcast %c0_i32_5 : i32 to vector<2x64x4xi32>
    %19 = arith.cmpi ne, %17, %18 : vector<2x64x4xi32>
    %c0_i32_6 = arith.constant 0 : i32
    %20 = vector.broadcast %c0_i32_6 : i32 to vector<2x64x4xi32>
    %21 = arith.cmpi slt, %17, %20 : vector<2x64x4xi32>
    %c0_i32_7 = arith.constant 0 : i32
    %22 = arith.cmpi slt, %15, %c0_i32_7 : i32
    %23 = vector.broadcast %22 : i1 to vector<2x64x4xi1>
    %24 = vector.broadcast %23 : vector<2x64x4xi1> to vector<2x64x4xi1>
    %25 = arith.xori %21, %24 : vector<2x64x4xi1>
    %26 = arith.andi %25, %19 : vector<2x64x4xi1>
    %27 = vector.broadcast %15 : i32 to vector<2x64x4xi32>
    %28 = arith.addi %17, %27 : vector<2x64x4xi32>
    %29 = arith.select %26, %28, %17 : vector<2x64x4xi1>, vector<2x64x4xi32>
    %c1_i32_8 = arith.constant 1 : i32
    %30 = vector.broadcast %c1_i32_8 : i32 to vector<2x64x4xi32>
    %31 = arith.cmpi sge, %29, %30 : vector<2x64x4xi32>
    %c7_i32 = arith.constant 7 : i32
    %32 = vector.broadcast %c7_i32 : i32 to vector<2x64x4xi32>
    %33 = arith.cmpi slt, %29, %32 : vector<2x64x4xi32>
    %34 = vector.extract_strided_slice %12 {offsets = [0, 7, 0], sizes = [2, 64, 4], strides = [1, 1, 1]} : vector<2x96x4xf32> to vector<2x64x4xf32>
    %cst_9 = arith.constant 0.000000e+00 : f32
    %35 = vector.broadcast %cst_9 : f32 to vector<2x64x4xf32>
    %36 = arith.select %31, %34, %35 : vector<2x64x4xi1>, vector<2x64x4xf32>
    %37 = vector.shape_cast %36 : vector<2x64x4xf32> to vector<128x4xf32>
    %c0_10 = arith.constant 0 : index
    %c0_11 = arith.constant 0 : index
    %c0_12 = arith.constant 0 : index
    %38 = vector.load %arg2[%c0_10, %c0_11, %c0_12] : memref<9x4x8xf32, #tpu.memory_space<vmem>>, vector<1x4x8xf32>
    %39 = vector.shape_cast %38 : vector<1x4x8xf32> to vector<4x8xf32>
    %cst_13 = arith.constant dense<0.000000e+00> : vector<128x8xf32>
    %40 = tpu.matmul %37, %39, %cst_13 {dimension_numbers = #tpu.dot_dimension_numbers<[1], [0], [0], [1], [0, 0, 1, 1], [], []>} : vector<128x4xf32>, vector<4x8xf32>, vector<128x8xf32> -> vector<128x8xf32>
    %41 = arith.addf %9, %40 : vector<128x8xf32>
    %42 = vector.extract_strided_slice %12 {offsets = [0, 8, 0], sizes = [2, 64, 4], strides = [1, 1, 1]} : vector<2x96x4xf32> to vector<2x64x4xf32>
    %43 = vector.shape_cast %42 : vector<2x64x4xf32> to vector<128x4xf32>
    %c1 = arith.constant 1 : index
    %c0_14 = arith.constant 0 : index
    %c0_15 = arith.constant 0 : index
    %44 = vector.load %arg2[%c1, %c0_14, %c0_15] : memref<9x4x8xf32, #tpu.memory_space<vmem>>, vector<1x4x8xf32>
    %45 = vector.shape_cast %44 : vector<1x4x8xf32> to vector<4x8xf32>
    %cst_16 = arith.constant dense<0.000000e+00> : vector<128x8xf32>
    %46 = tpu.matmul %43, %45, %cst_16 {dimension_numbers = #tpu.dot_dimension_numbers<[1], [0], [0], [1], [0, 0, 1, 1], [], []>} : vector<128x4xf32>, vector<4x8xf32>, vector<128x8xf32> -> vector<128x8xf32>
    %47 = arith.addf %41, %46 : vector<128x8xf32>
    %48 = vector.extract_strided_slice %12 {offsets = [0, 9, 0], sizes = [2, 64, 4], strides = [1, 1, 1]} : vector<2x96x4xf32> to vector<2x64x4xf32>
    %cst_17 = arith.constant 0.000000e+00 : f32
    %49 = vector.broadcast %cst_17 : f32 to vector<2x64x4xf32>
    %50 = arith.select %33, %48, %49 : vector<2x64x4xi1>, vector<2x64x4xf32>
    %51 = vector.shape_cast %50 : vector<2x64x4xf32> to vector<128x4xf32>
    %c2 = arith.constant 2 : index
    %c0_18 = arith.constant 0 : index
    %c0_19 = arith.constant 0 : index
    %52 = vector.load %arg2[%c2, %c0_18, %c0_19] : memref<9x4x8xf32, #tpu.memory_space<vmem>>, vector<1x4x8xf32>
    %53 = vector.shape_cast %52 : vector<1x4x8xf32> to vector<4x8xf32>
    %cst_20 = arith.constant dense<0.000000e+00> : vector<128x8xf32>
    %54 = tpu.matmul %51, %53, %cst_20 {dimension_numbers = #tpu.dot_dimension_numbers<[1], [0], [0], [1], [0, 0, 1, 1], [], []>} : vector<128x4xf32>, vector<4x8xf32>, vector<128x8xf32> -> vector<128x8xf32>
    %55 = arith.addf %47, %54 : vector<128x8xf32>
    %56 = vector.extract_strided_slice %12 {offsets = [0, 15, 0], sizes = [2, 64, 4], strides = [1, 1, 1]} : vector<2x96x4xf32> to vector<2x64x4xf32>
    %cst_21 = arith.constant 0.000000e+00 : f32
    %57 = vector.broadcast %cst_21 : f32 to vector<2x64x4xf32>
    %58 = arith.select %31, %56, %57 : vector<2x64x4xi1>, vector<2x64x4xf32>
    %59 = vector.shape_cast %58 : vector<2x64x4xf32> to vector<128x4xf32>
    %c3 = arith.constant 3 : index
    %c0_22 = arith.constant 0 : index
    %c0_23 = arith.constant 0 : index
    %60 = vector.load %arg2[%c3, %c0_22, %c0_23] : memref<9x4x8xf32, #tpu.memory_space<vmem>>, vector<1x4x8xf32>
    %61 = vector.shape_cast %60 : vector<1x4x8xf32> to vector<4x8xf32>
    %cst_24 = arith.constant dense<0.000000e+00> : vector<128x8xf32>
    %62 = tpu.matmul %59, %61, %cst_24 {dimension_numbers = #tpu.dot_dimension_numbers<[1], [0], [0], [1], [0, 0, 1, 1], [], []>} : vector<128x4xf32>, vector<4x8xf32>, vector<128x8xf32> -> vector<128x8xf32>
    %63 = arith.addf %55, %62 : vector<128x8xf32>
    %64 = vector.extract_strided_slice %12 {offsets = [0, 16, 0], sizes = [2, 64, 4], strides = [1, 1, 1]} : vector<2x96x4xf32> to vector<2x64x4xf32>
    %65 = vector.shape_cast %64 : vector<2x64x4xf32> to vector<128x4xf32>
    %c4 = arith.constant 4 : index
    %c0_25 = arith.constant 0 : index
    %c0_26 = arith.constant 0 : index
    %66 = vector.load %arg2[%c4, %c0_25, %c0_26] : memref<9x4x8xf32, #tpu.memory_space<vmem>>, vector<1x4x8xf32>
    %67 = vector.shape_cast %66 : vector<1x4x8xf32> to vector<4x8xf32>
    %cst_27 = arith.constant dense<0.000000e+00> : vector<128x8xf32>
    %68 = tpu.matmul %65, %67, %cst_27 {dimension_numbers = #tpu.dot_dimension_numbers<[1], [0], [0], [1], [0, 0, 1, 1], [], []>} : vector<128x4xf32>, vector<4x8xf32>, vector<128x8xf32> -> vector<128x8xf32>
    %69 = arith.addf %63, %68 : vector<128x8xf32>
    %70 = vector.extract_strided_slice %12 {offsets = [0, 17, 0], sizes = [2, 64, 4], strides = [1, 1, 1]} : vector<2x96x4xf32> to vector<2x64x4xf32>
    %cst_28 = arith.constant 0.000000e+00 : f32
    %71 = vector.broadcast %cst_28 : f32 to vector<2x64x4xf32>
    %72 = arith.select %33, %70, %71 : vector<2x64x4xi1>, vector<2x64x4xf32>
    %73 = vector.shape_cast %72 : vector<2x64x4xf32> to vector<128x4xf32>
    %c5 = arith.constant 5 : index
    %c0_29 = arith.constant 0 : index
    %c0_30 = arith.constant 0 : index
    %74 = vector.load %arg2[%c5, %c0_29, %c0_30] : memref<9x4x8xf32, #tpu.memory_space<vmem>>, vector<1x4x8xf32>
    %75 = vector.shape_cast %74 : vector<1x4x8xf32> to vector<4x8xf32>
    %cst_31 = arith.constant dense<0.000000e+00> : vector<128x8xf32>
    %76 = tpu.matmul %73, %75, %cst_31 {dimension_numbers = #tpu.dot_dimension_numbers<[1], [0], [0], [1], [0, 0, 1, 1], [], []>} : vector<128x4xf32>, vector<4x8xf32>, vector<128x8xf32> -> vector<128x8xf32>
    %77 = arith.addf %69, %76 : vector<128x8xf32>
    %78 = vector.extract_strided_slice %12 {offsets = [0, 23, 0], sizes = [2, 64, 4], strides = [1, 1, 1]} : vector<2x96x4xf32> to vector<2x64x4xf32>
    %cst_32 = arith.constant 0.000000e+00 : f32
    %79 = vector.broadcast %cst_32 : f32 to vector<2x64x4xf32>
    %80 = arith.select %31, %78, %79 : vector<2x64x4xi1>, vector<2x64x4xf32>
    %81 = vector.shape_cast %80 : vector<2x64x4xf32> to vector<128x4xf32>
    %c6 = arith.constant 6 : index
    %c0_33 = arith.constant 0 : index
    %c0_34 = arith.constant 0 : index
    %82 = vector.load %arg2[%c6, %c0_33, %c0_34] : memref<9x4x8xf32, #tpu.memory_space<vmem>>, vector<1x4x8xf32>
    %83 = vector.shape_cast %82 : vector<1x4x8xf32> to vector<4x8xf32>
    %cst_35 = arith.constant dense<0.000000e+00> : vector<128x8xf32>
    %84 = tpu.matmul %81, %83, %cst_35 {dimension_numbers = #tpu.dot_dimension_numbers<[1], [0], [0], [1], [0, 0, 1, 1], [], []>} : vector<128x4xf32>, vector<4x8xf32>, vector<128x8xf32> -> vector<128x8xf32>
    %85 = arith.addf %77, %84 : vector<128x8xf32>
    %86 = vector.extract_strided_slice %12 {offsets = [0, 24, 0], sizes = [2, 64, 4], strides = [1, 1, 1]} : vector<2x96x4xf32> to vector<2x64x4xf32>
    %87 = vector.shape_cast %86 : vector<2x64x4xf32> to vector<128x4xf32>
    %c7 = arith.constant 7 : index
    %c0_36 = arith.constant 0 : index
    %c0_37 = arith.constant 0 : index
    %88 = vector.load %arg2[%c7, %c0_36, %c0_37] : memref<9x4x8xf32, #tpu.memory_space<vmem>>, vector<1x4x8xf32>
    %89 = vector.shape_cast %88 : vector<1x4x8xf32> to vector<4x8xf32>
    %cst_38 = arith.constant dense<0.000000e+00> : vector<128x8xf32>
    %90 = tpu.matmul %87, %89, %cst_38 {dimension_numbers = #tpu.dot_dimension_numbers<[1], [0], [0], [1], [0, 0, 1, 1], [], []>} : vector<128x4xf32>, vector<4x8xf32>, vector<128x8xf32> -> vector<128x8xf32>
    %91 = arith.addf %85, %90 : vector<128x8xf32>
    %92 = vector.extract_strided_slice %12 {offsets = [0, 25, 0], sizes = [2, 64, 4], strides = [1, 1, 1]} : vector<2x96x4xf32> to vector<2x64x4xf32>
    %cst_39 = arith.constant 0.000000e+00 : f32
    %93 = vector.broadcast %cst_39 : f32 to vector<2x64x4xf32>
    %94 = arith.select %33, %92, %93 : vector<2x64x4xi1>, vector<2x64x4xf32>
    %95 = vector.shape_cast %94 : vector<2x64x4xf32> to vector<128x4xf32>
    %c8 = arith.constant 8 : index
    %c0_40 = arith.constant 0 : index
    %c0_41 = arith.constant 0 : index
    %96 = vector.load %arg2[%c8, %c0_40, %c0_41] : memref<9x4x8xf32, #tpu.memory_space<vmem>>, vector<1x4x8xf32>
    %97 = vector.shape_cast %96 : vector<1x4x8xf32> to vector<4x8xf32>
    %cst_42 = arith.constant dense<0.000000e+00> : vector<128x8xf32>
    %98 = tpu.matmul %95, %97, %cst_42 {dimension_numbers = #tpu.dot_dimension_numbers<[1], [0], [0], [1], [0, 0, 1, 1], [], []>} : vector<128x4xf32>, vector<4x8xf32>, vector<128x8xf32> -> vector<128x8xf32>
    %99 = arith.addf %91, %98 : vector<128x8xf32>
    %c0_43 = arith.constant 0 : index
    %c0_44 = arith.constant 0 : index
    %100 = vector.load %arg3[%c0_43, %c0_44] : memref<1x8xf32, #tpu.memory_space<vmem>>, vector<1x8xf32>
    %101 = vector.broadcast %100 : vector<1x8xf32> to vector<128x8xf32>
    %102 = arith.addf %99, %101 : vector<128x8xf32>
    %103 = vector.shape_cast %102 : vector<128x8xf32> to vector<2x64x8xf32>
    %cst_45 = arith.constant dense<0.000000e+00> : vector<2x8xf32>
    %104 = vector.multi_reduction <add>, %103, %cst_45 [1] : vector<2x64x8xf32> to vector<2x8xf32>
    %105 = vector.shape_cast %104 : vector<2x8xf32> to vector<2x1x8xf32>
    %cst_46 = arith.constant 6.400000e+01 : f32
    %106 = vector.broadcast %cst_46 : f32 to vector<2x1x8xf32>
    %107 = arith.divf %105, %106 : vector<2x1x8xf32>
    %108 = vector.broadcast %107 : vector<2x1x8xf32> to vector<2x64x8xf32>
    %109 = arith.subf %103, %108 : vector<2x64x8xf32>
    %110 = arith.mulf %109, %109 : vector<2x64x8xf32>
    %cst_47 = arith.constant dense<0.000000e+00> : vector<2x8xf32>
    %111 = vector.multi_reduction <add>, %110, %cst_47 [1] : vector<2x64x8xf32> to vector<2x8xf32>
    %112 = vector.shape_cast %111 : vector<2x8xf32> to vector<2x1x8xf32>
    %cst_48 = arith.constant 6.400000e+01 : f32
    %113 = vector.broadcast %cst_48 : f32 to vector<2x1x8xf32>
    %114 = arith.divf %112, %113 : vector<2x1x8xf32>
    %cst_49 = arith.constant 9.99999974E-6 : f32
    %115 = vector.broadcast %cst_49 : f32 to vector<2x1x8xf32>
    %116 = arith.addf %114, %115 : vector<2x1x8xf32>
    %117 = math.rsqrt %116 : vector<2x1x8xf32>
    %118 = vector.broadcast %117 : vector<2x1x8xf32> to vector<2x64x8xf32>
    %119 = arith.mulf %109, %118 : vector<2x64x8xf32>
    %cst_50 = arith.constant 0.000000e+00 : f32
    %120 = vector.broadcast %cst_50 : f32 to vector<2x64x8xf32>
    %121 = arith.cmpf ogt, %119, %120 : vector<2x64x8xf32>
    %cst_51 = arith.constant 0.000000e+00 : f32
    %122 = vector.broadcast %cst_51 : f32 to vector<2x64x8xf32>
    %123 = arith.minimumf %119, %122 : vector<2x64x8xf32>
    %124 = math.exp %123 : vector<2x64x8xf32>
    %cst_52 = arith.constant 1.000000e+00 : f32
    %125 = vector.broadcast %cst_52 : f32 to vector<2x64x8xf32>
    %126 = arith.subf %124, %125 : vector<2x64x8xf32>
    %127 = arith.select %121, %119, %126 : vector<2x64x8xi1>, vector<2x64x8xf32>
    %128 = vector.shape_cast %127 : vector<2x64x8xf32> to vector<128x8xf32>
    %129 = vector.shape_cast %8 : vector<2x8x8x4xf32> to vector<128x4xf32>
    %c0_53 = arith.constant 0 : index
    %c0_54 = arith.constant 0 : index
    %130 = vector.load %arg4[%c0_53, %c0_54] : memref<4x8xf32, #tpu.memory_space<vmem>>, vector<4x8xf32>
    %cst_55 = arith.constant dense<0.000000e+00> : vector<128x8xf32>
    %131 = tpu.matmul %129, %130, %cst_55 {dimension_numbers = #tpu.dot_dimension_numbers<[1], [0], [0], [1], [0, 0, 1, 1], [], []>} : vector<128x4xf32>, vector<4x8xf32>, vector<128x8xf32> -> vector<128x8xf32>
    %132 = vector.shape_cast %128 : vector<128x8xf32> to vector<2x8x8x8xf32>
    %cst_56 = arith.constant 0.000000e+00 : f32
    %133 = vector.broadcast %cst_56 : f32 to vector<2x2x8x8xf32>
    %134 = tpu.concatenate %133, %132, %133 in 1 : vector<2x2x8x8xf32>, vector<2x8x8x8xf32>, vector<2x2x8x8xf32> -> vector<2x12x8x8xf32>
    %135 = vector.shape_cast %134 : vector<2x12x8x8xf32> to vector<2x96x8xf32>
    %136 = tpu.iota {dimensions = array<i32: 1>} : vector<2x64x8xi32>
    %c8_i32_57 = arith.constant 8 : i32
    %c0_i32_58 = arith.constant 0 : i32
    %137 = arith.cmpi eq, %c8_i32_57, %c0_i32_58 : i32
    %c1_i32_59 = arith.constant 1 : i32
    %138 = arith.select %137, %c1_i32_59, %c8_i32_57 : i32
    %139 = vector.broadcast %138 : i32 to vector<2x64x8xi32>
    %140 = arith.remsi %136, %139 : vector<2x64x8xi32>
    %c0_i32_60 = arith.constant 0 : i32
    %141 = vector.broadcast %c0_i32_60 : i32 to vector<2x64x8xi32>
    %142 = arith.cmpi ne, %140, %141 : vector<2x64x8xi32>
    %c0_i32_61 = arith.constant 0 : i32
    %143 = vector.broadcast %c0_i32_61 : i32 to vector<2x64x8xi32>
    %144 = arith.cmpi slt, %140, %143 : vector<2x64x8xi32>
    %c0_i32_62 = arith.constant 0 : i32
    %145 = arith.cmpi slt, %138, %c0_i32_62 : i32
    %146 = vector.broadcast %145 : i1 to vector<2x64x8xi1>
    %147 = vector.broadcast %146 : vector<2x64x8xi1> to vector<2x64x8xi1>
    %148 = arith.xori %144, %147 : vector<2x64x8xi1>
    %149 = arith.andi %148, %142 : vector<2x64x8xi1>
    %150 = vector.broadcast %138 : i32 to vector<2x64x8xi32>
    %151 = arith.addi %140, %150 : vector<2x64x8xi32>
    %152 = arith.select %149, %151, %140 : vector<2x64x8xi1>, vector<2x64x8xi32>
    %c1_i32_63 = arith.constant 1 : i32
    %153 = vector.broadcast %c1_i32_63 : i32 to vector<2x64x8xi32>
    %154 = arith.cmpi sge, %152, %153 : vector<2x64x8xi32>
    %c7_i32_64 = arith.constant 7 : i32
    %155 = vector.broadcast %c7_i32_64 : i32 to vector<2x64x8xi32>
    %156 = arith.cmpi slt, %152, %155 : vector<2x64x8xi32>
    %157 = vector.extract_strided_slice %135 {offsets = [0, 7, 0], sizes = [2, 64, 8], strides = [1, 1, 1]} : vector<2x96x8xf32> to vector<2x64x8xf32>
    %cst_65 = arith.constant 0.000000e+00 : f32
    %158 = vector.broadcast %cst_65 : f32 to vector<2x64x8xf32>
    %159 = arith.select %154, %157, %158 : vector<2x64x8xi1>, vector<2x64x8xf32>
    %160 = vector.shape_cast %159 : vector<2x64x8xf32> to vector<128x8xf32>
    %c0_66 = arith.constant 0 : index
    %c0_67 = arith.constant 0 : index
    %c0_68 = arith.constant 0 : index
    %161 = vector.load %arg5[%c0_66, %c0_67, %c0_68] : memref<9x8x8xf32, #tpu.memory_space<vmem>>, vector<1x8x8xf32>
    %162 = vector.shape_cast %161 : vector<1x8x8xf32> to vector<8x8xf32>
    %cst_69 = arith.constant dense<0.000000e+00> : vector<128x8xf32>
    %163 = tpu.matmul %160, %162, %cst_69 {dimension_numbers = #tpu.dot_dimension_numbers<[1], [0], [0], [1], [0, 0, 1, 1], [], []>} : vector<128x8xf32>, vector<8x8xf32>, vector<128x8xf32> -> vector<128x8xf32>
    %164 = arith.addf %131, %163 : vector<128x8xf32>
    %165 = vector.extract_strided_slice %135 {offsets = [0, 8, 0], sizes = [2, 64, 8], strides = [1, 1, 1]} : vector<2x96x8xf32> to vector<2x64x8xf32>
    %166 = vector.shape_cast %165 : vector<2x64x8xf32> to vector<128x8xf32>
    %c1_70 = arith.constant 1 : index
    %c0_71 = arith.constant 0 : index
    %c0_72 = arith.constant 0 : index
    %167 = vector.load %arg5[%c1_70, %c0_71, %c0_72] : memref<9x8x8xf32, #tpu.memory_space<vmem>>, vector<1x8x8xf32>
    %168 = vector.shape_cast %167 : vector<1x8x8xf32> to vector<8x8xf32>
    %cst_73 = arith.constant dense<0.000000e+00> : vector<128x8xf32>
    %169 = tpu.matmul %166, %168, %cst_73 {dimension_numbers = #tpu.dot_dimension_numbers<[1], [0], [0], [1], [0, 0, 1, 1], [], []>} : vector<128x8xf32>, vector<8x8xf32>, vector<128x8xf32> -> vector<128x8xf32>
    %170 = arith.addf %164, %169 : vector<128x8xf32>
    %171 = vector.extract_strided_slice %135 {offsets = [0, 9, 0], sizes = [2, 64, 8], strides = [1, 1, 1]} : vector<2x96x8xf32> to vector<2x64x8xf32>
    %cst_74 = arith.constant 0.000000e+00 : f32
    %172 = vector.broadcast %cst_74 : f32 to vector<2x64x8xf32>
    %173 = arith.select %156, %171, %172 : vector<2x64x8xi1>, vector<2x64x8xf32>
    %174 = vector.shape_cast %173 : vector<2x64x8xf32> to vector<128x8xf32>
    %c2_75 = arith.constant 2 : index
    %c0_76 = arith.constant 0 : index
    %c0_77 = arith.constant 0 : index
    %175 = vector.load %arg5[%c2_75, %c0_76, %c0_77] : memref<9x8x8xf32, #tpu.memory_space<vmem>>, vector<1x8x8xf32>
    %176 = vector.shape_cast %175 : vector<1x8x8xf32> to vector<8x8xf32>
    %cst_78 = arith.constant dense<0.000000e+00> : vector<128x8xf32>
    %177 = tpu.matmul %174, %176, %cst_78 {dimension_numbers = #tpu.dot_dimension_numbers<[1], [0], [0], [1], [0, 0, 1, 1], [], []>} : vector<128x8xf32>, vector<8x8xf32>, vector<128x8xf32> -> vector<128x8xf32>
    %178 = arith.addf %170, %177 : vector<128x8xf32>
    %179 = vector.extract_strided_slice %135 {offsets = [0, 15, 0], sizes = [2, 64, 8], strides = [1, 1, 1]} : vector<2x96x8xf32> to vector<2x64x8xf32>
    %cst_79 = arith.constant 0.000000e+00 : f32
    %180 = vector.broadcast %cst_79 : f32 to vector<2x64x8xf32>
    %181 = arith.select %154, %179, %180 : vector<2x64x8xi1>, vector<2x64x8xf32>
    %182 = vector.shape_cast %181 : vector<2x64x8xf32> to vector<128x8xf32>
    %c3_80 = arith.constant 3 : index
    %c0_81 = arith.constant 0 : index
    %c0_82 = arith.constant 0 : index
    %183 = vector.load %arg5[%c3_80, %c0_81, %c0_82] : memref<9x8x8xf32, #tpu.memory_space<vmem>>, vector<1x8x8xf32>
    %184 = vector.shape_cast %183 : vector<1x8x8xf32> to vector<8x8xf32>
    %cst_83 = arith.constant dense<0.000000e+00> : vector<128x8xf32>
    %185 = tpu.matmul %182, %184, %cst_83 {dimension_numbers = #tpu.dot_dimension_numbers<[1], [0], [0], [1], [0, 0, 1, 1], [], []>} : vector<128x8xf32>, vector<8x8xf32>, vector<128x8xf32> -> vector<128x8xf32>
    %186 = arith.addf %178, %185 : vector<128x8xf32>
    %187 = vector.extract_strided_slice %135 {offsets = [0, 16, 0], sizes = [2, 64, 8], strides = [1, 1, 1]} : vector<2x96x8xf32> to vector<2x64x8xf32>
    %188 = vector.shape_cast %187 : vector<2x64x8xf32> to vector<128x8xf32>
    %c4_84 = arith.constant 4 : index
    %c0_85 = arith.constant 0 : index
    %c0_86 = arith.constant 0 : index
    %189 = vector.load %arg5[%c4_84, %c0_85, %c0_86] : memref<9x8x8xf32, #tpu.memory_space<vmem>>, vector<1x8x8xf32>
    %190 = vector.shape_cast %189 : vector<1x8x8xf32> to vector<8x8xf32>
    %cst_87 = arith.constant dense<0.000000e+00> : vector<128x8xf32>
    %191 = tpu.matmul %188, %190, %cst_87 {dimension_numbers = #tpu.dot_dimension_numbers<[1], [0], [0], [1], [0, 0, 1, 1], [], []>} : vector<128x8xf32>, vector<8x8xf32>, vector<128x8xf32> -> vector<128x8xf32>
    %192 = arith.addf %186, %191 : vector<128x8xf32>
    %193 = vector.extract_strided_slice %135 {offsets = [0, 17, 0], sizes = [2, 64, 8], strides = [1, 1, 1]} : vector<2x96x8xf32> to vector<2x64x8xf32>
    %cst_88 = arith.constant 0.000000e+00 : f32
    %194 = vector.broadcast %cst_88 : f32 to vector<2x64x8xf32>
    %195 = arith.select %156, %193, %194 : vector<2x64x8xi1>, vector<2x64x8xf32>
    %196 = vector.shape_cast %195 : vector<2x64x8xf32> to vector<128x8xf32>
    %c5_89 = arith.constant 5 : index
    %c0_90 = arith.constant 0 : index
    %c0_91 = arith.constant 0 : index
    %197 = vector.load %arg5[%c5_89, %c0_90, %c0_91] : memref<9x8x8xf32, #tpu.memory_space<vmem>>, vector<1x8x8xf32>
    %198 = vector.shape_cast %197 : vector<1x8x8xf32> to vector<8x8xf32>
    %cst_92 = arith.constant dense<0.000000e+00> : vector<128x8xf32>
    %199 = tpu.matmul %196, %198, %cst_92 {dimension_numbers = #tpu.dot_dimension_numbers<[1], [0], [0], [1], [0, 0, 1, 1], [], []>} : vector<128x8xf32>, vector<8x8xf32>, vector<128x8xf32> -> vector<128x8xf32>
    %200 = arith.addf %192, %199 : vector<128x8xf32>
    %201 = vector.extract_strided_slice %135 {offsets = [0, 23, 0], sizes = [2, 64, 8], strides = [1, 1, 1]} : vector<2x96x8xf32> to vector<2x64x8xf32>
    %cst_93 = arith.constant 0.000000e+00 : f32
    %202 = vector.broadcast %cst_93 : f32 to vector<2x64x8xf32>
    %203 = arith.select %154, %201, %202 : vector<2x64x8xi1>, vector<2x64x8xf32>
    %204 = vector.shape_cast %203 : vector<2x64x8xf32> to vector<128x8xf32>
    %c6_94 = arith.constant 6 : index
    %c0_95 = arith.constant 0 : index
    %c0_96 = arith.constant 0 : index
    %205 = vector.load %arg5[%c6_94, %c0_95, %c0_96] : memref<9x8x8xf32, #tpu.memory_space<vmem>>, vector<1x8x8xf32>
    %206 = vector.shape_cast %205 : vector<1x8x8xf32> to vector<8x8xf32>
    %cst_97 = arith.constant dense<0.000000e+00> : vector<128x8xf32>
    %207 = tpu.matmul %204, %206, %cst_97 {dimension_numbers = #tpu.dot_dimension_numbers<[1], [0], [0], [1], [0, 0, 1, 1], [], []>} : vector<128x8xf32>, vector<8x8xf32>, vector<128x8xf32> -> vector<128x8xf32>
    %208 = arith.addf %200, %207 : vector<128x8xf32>
    %209 = vector.extract_strided_slice %135 {offsets = [0, 24, 0], sizes = [2, 64, 8], strides = [1, 1, 1]} : vector<2x96x8xf32> to vector<2x64x8xf32>
    %210 = vector.shape_cast %209 : vector<2x64x8xf32> to vector<128x8xf32>
    %c7_98 = arith.constant 7 : index
    %c0_99 = arith.constant 0 : index
    %c0_100 = arith.constant 0 : index
    %211 = vector.load %arg5[%c7_98, %c0_99, %c0_100] : memref<9x8x8xf32, #tpu.memory_space<vmem>>, vector<1x8x8xf32>
    %212 = vector.shape_cast %211 : vector<1x8x8xf32> to vector<8x8xf32>
    %cst_101 = arith.constant dense<0.000000e+00> : vector<128x8xf32>
    %213 = tpu.matmul %210, %212, %cst_101 {dimension_numbers = #tpu.dot_dimension_numbers<[1], [0], [0], [1], [0, 0, 1, 1], [], []>} : vector<128x8xf32>, vector<8x8xf32>, vector<128x8xf32> -> vector<128x8xf32>
    %214 = arith.addf %208, %213 : vector<128x8xf32>
    %215 = vector.extract_strided_slice %135 {offsets = [0, 25, 0], sizes = [2, 64, 8], strides = [1, 1, 1]} : vector<2x96x8xf32> to vector<2x64x8xf32>
    %cst_102 = arith.constant 0.000000e+00 : f32
    %216 = vector.broadcast %cst_102 : f32 to vector<2x64x8xf32>
    %217 = arith.select %156, %215, %216 : vector<2x64x8xi1>, vector<2x64x8xf32>
    %218 = vector.shape_cast %217 : vector<2x64x8xf32> to vector<128x8xf32>
    %c8_103 = arith.constant 8 : index
    %c0_104 = arith.constant 0 : index
    %c0_105 = arith.constant 0 : index
    %219 = vector.load %arg5[%c8_103, %c0_104, %c0_105] : memref<9x8x8xf32, #tpu.memory_space<vmem>>, vector<1x8x8xf32>
    %220 = vector.shape_cast %219 : vector<1x8x8xf32> to vector<8x8xf32>
    %cst_106 = arith.constant dense<0.000000e+00> : vector<128x8xf32>
    %221 = tpu.matmul %218, %220, %cst_106 {dimension_numbers = #tpu.dot_dimension_numbers<[1], [0], [0], [1], [0, 0, 1, 1], [], []>} : vector<128x8xf32>, vector<8x8xf32>, vector<128x8xf32> -> vector<128x8xf32>
    %222 = arith.addf %214, %221 : vector<128x8xf32>
    %c0_107 = arith.constant 0 : index
    %c0_108 = arith.constant 0 : index
    %223 = vector.load %arg6[%c0_107, %c0_108] : memref<1x8xf32, #tpu.memory_space<vmem>>, vector<1x8xf32>
    %224 = vector.broadcast %223 : vector<1x8xf32> to vector<128x8xf32>
    %225 = arith.addf %222, %224 : vector<128x8xf32>
    %226 = vector.shape_cast %225 : vector<128x8xf32> to vector<2x64x8xf32>
    %cst_109 = arith.constant dense<0.000000e+00> : vector<2x8xf32>
    %227 = vector.multi_reduction <add>, %226, %cst_109 [1] : vector<2x64x8xf32> to vector<2x8xf32>
    %228 = vector.shape_cast %227 : vector<2x8xf32> to vector<2x1x8xf32>
    %cst_110 = arith.constant 6.400000e+01 : f32
    %229 = vector.broadcast %cst_110 : f32 to vector<2x1x8xf32>
    %230 = arith.divf %228, %229 : vector<2x1x8xf32>
    %231 = vector.broadcast %230 : vector<2x1x8xf32> to vector<2x64x8xf32>
    %232 = arith.subf %226, %231 : vector<2x64x8xf32>
    %233 = arith.mulf %232, %232 : vector<2x64x8xf32>
    %cst_111 = arith.constant dense<0.000000e+00> : vector<2x8xf32>
    %234 = vector.multi_reduction <add>, %233, %cst_111 [1] : vector<2x64x8xf32> to vector<2x8xf32>
    %235 = vector.shape_cast %234 : vector<2x8xf32> to vector<2x1x8xf32>
    %cst_112 = arith.constant 6.400000e+01 : f32
    %236 = vector.broadcast %cst_112 : f32 to vector<2x1x8xf32>
    %237 = arith.divf %235, %236 : vector<2x1x8xf32>
    %cst_113 = arith.constant 9.99999974E-6 : f32
    %238 = vector.broadcast %cst_113 : f32 to vector<2x1x8xf32>
    %239 = arith.addf %237, %238 : vector<2x1x8xf32>
    %240 = math.rsqrt %239 : vector<2x1x8xf32>
    %241 = vector.broadcast %240 : vector<2x1x8xf32> to vector<2x64x8xf32>
    %242 = arith.mulf %232, %241 : vector<2x64x8xf32>
    %cst_114 = arith.constant 0.000000e+00 : f32
    %243 = vector.broadcast %cst_114 : f32 to vector<2x64x8xf32>
    %244 = arith.cmpf ogt, %242, %243 : vector<2x64x8xf32>
    %cst_115 = arith.constant 0.000000e+00 : f32
    %245 = vector.broadcast %cst_115 : f32 to vector<2x64x8xf32>
    %246 = arith.minimumf %242, %245 : vector<2x64x8xf32>
    %247 = math.exp %246 : vector<2x64x8xf32>
    %cst_116 = arith.constant 1.000000e+00 : f32
    %248 = vector.broadcast %cst_116 : f32 to vector<2x64x8xf32>
    %249 = arith.subf %247, %248 : vector<2x64x8xf32>
    %250 = arith.select %244, %242, %249 : vector<2x64x8xi1>, vector<2x64x8xf32>
    %251 = vector.shape_cast %250 : vector<2x64x8xf32> to vector<128x8xf32>
    %252 = vector.shape_cast %251 : vector<128x8xf32> to vector<2x64x8xf32>
    %253 = tpu.transpose %252, [0, 2, 1] : vector<2x64x8xf32> -> vector<2x8x64xf32>
    %c0_117 = arith.constant 0 : index
    %c0_118 = arith.constant 0 : index
    %c0_119 = arith.constant 0 : index
    %254 = vector.load %arg7[%c0_117, %c0_118, %c0_119] : memref<2x8x64xf32, #tpu.memory_space<vmem>>, vector<2x8x64xf32>
    tpu.vector_store %arg7[%c0_117, %c0_118, %c0_119], %253 {strides = array<i32>} : memref<2x8x64xf32, #tpu.memory_space<vmem>>, vector<2x8x64xf32>,
    return
  }
  func.func @transform_0(%arg0: i32) -> (i32, i32, i32, i32, i32) {
    %c0_i32 = arith.constant 0 : i32
    %c0_i32_0 = arith.constant 0 : i32
    %c0_i32_1 = arith.constant 0 : i32
    %c0_i32_2 = arith.constant 0 : i32
    %c0_i32_3 = arith.constant 0 : i32
    return %arg0, %c0_i32, %c0_i32_0, %c0_i32_1, %c0_i32_2 : i32, i32, i32, i32, i32
  }
  func.func @transform_1(%arg0: i32) -> (i32, i32, i32) {
    %c0_i32 = arith.constant 0 : i32
    %c0_i32_0 = arith.constant 0 : i32
    %c0_i32_1 = arith.constant 0 : i32
    %c0_i32_2 = arith.constant 0 : i32
    return %c0_i32, %c0_i32_0, %c0_i32_1 : i32, i32, i32
  }
  func.func @transform_2(%arg0: i32) -> (i32, i32) {
    %c0_i32 = arith.constant 0 : i32
    %c0_i32_0 = arith.constant 0 : i32
    %c0_i32_1 = arith.constant 0 : i32
    return %c0_i32, %c0_i32_0 : i32, i32
  }
  func.func @transform_3(%arg0: i32) -> (i32, i32) {
    %c0_i32 = arith.constant 0 : i32
    %c0_i32_0 = arith.constant 0 : i32
    %c0_i32_1 = arith.constant 0 : i32
    return %c0_i32, %c0_i32_0 : i32, i32
  }
  func.func @transform_4(%arg0: i32) -> (i32, i32, i32) {
    %c0_i32 = arith.constant 0 : i32
    %c0_i32_0 = arith.constant 0 : i32
    %c0_i32_1 = arith.constant 0 : i32
    %c0_i32_2 = arith.constant 0 : i32
    return %c0_i32, %c0_i32_0, %c0_i32_1 : i32, i32, i32
  }
  func.func @transform_5(%arg0: i32) -> (i32, i32) {
    %c0_i32 = arith.constant 0 : i32
    %c0_i32_0 = arith.constant 0 : i32
    %c0_i32_1 = arith.constant 0 : i32
    return %c0_i32, %c0_i32_0 : i32, i32
  }
  func.func @transform_6(%arg0: i32) -> (i32, i32, i32) {
    %c0_i32 = arith.constant 0 : i32
    %c0_i32_0 = arith.constant 0 : i32
    %c0_i32_1 = arith.constant 0 : i32
    return %arg0, %c0_i32, %c0_i32_0 : i32, i32, i32
  }
}

</mosaic_0001>

<bundles_post_ra>
// kernel: _lambda_.1
= control target key start
LH: loop header
LB: loop body
LE: loop exit
PB: predicated region body
PF: predicated region fallthrough
CT: control target
= control target key end

     0   :  { %v8775_v3 = vmov 0.0   ;;  %s6512_s13 = smov 124   ;;  %vm8783_vm0 = vcmask 1043456   ;;  %vm8814_vm1 = vcmask 31744   ;;  %vm8780_vm3 = vcmask 1040384   ;;  %s8766_s0 = inlined_call_operand.vmem [shape: f32[2,8,2,8,8], index: 0, kind: input, shape index: {}]   ;;  %s8767_s1 = inlined_call_operand.vmem [shape: f32[9,4,8], index: 1, kind: input, shape index: {}]   ;;  %s8768_s2 = inlined_call_operand.vmem [shape: f32[1,8], index: 2, kind: input, shape index: {}]   ;;  %s8769_s4 = inlined_call_operand.vmem [shape: f32[9,8,8], index: 4, kind: input, shape index: {}]   ;;  %s8770_s3 = inlined_call_operand.vmem [shape: f32[4,8], index: 3, kind: input, shape index: {}]   ;;  %s8771_s5 = inlined_call_operand.vmem [shape: f32[1,8], index: 5, kind: input, shape index: {}]   ;;  %s8772_s6 = inlined_call_operand.vmem [shape: f32[2,8,64], index: 6, kind: output, shape index: {}]  }
   0x1   :  { %v27_v0 = vld [vmem:[%s8766_s0 + $0x20] sm:$0xff]  ;;  %v28_v1 = vld [vmem:[%s8766_s0 + $0x28] sm:$0xff]  ;;  %5671 = vmatprep.mubr.f32.mxu0 %v8775_v3  ;;  %v29_v6 = vld [vmem:[%s8766_s0 + $0x30] sm:$0xff]  ;;  %vm8798_vm11 = vcmask 1046528  }
   0x2   :  { %v23_v2 = vld [vmem:[%s8766_s0] sm:$0xff]  ;;  %v6558_v4 = vmax.f32 %v27_v0, %v28_v1  ;;  %v24_v5 = vld [vmem:[%s8766_s0 + $0x8] sm:$0xff]  ;;  %v30_v7 = vld [vmem:[%s8766_s0 + $0x38] sm:$0xff] }
   0x3   :  { %v6569_v8 = vmax.f32 %v23_v2, %v24_v5  ;;  %v25_v9 = vld [vmem:[%s8766_s0 + $0x10] sm:$0xff]  ;;  %v26_v10 = vld [vmem:[%s8766_s0 + $0x18] sm:$0xff]  ;;  %v6579_v11 = vmax.f32 %v29_v6, %v30_v7  ;;  %v31_v15 = vld [vmem:[%s8766_s0 + $0x40] sm:$0xff]  ;;  %v151_v7 = vlaneseq }
   0x4   :  { %91 = vrot.lane.b32.xlu1 %v6558_v4, %s6512_s13  ;;  %v6583_v12 = vmax.f32 %v25_v9, %v26_v10  ;;  %v33_v13 = vld [vmem:[%s8766_s0 + $0x50] sm:$0xff]  ;;  %v34_v14 = vld [vmem:[%s8766_s0 + $0x58] sm:$0xff]  ;;  %v32_v16 = vld [vmem:[%s8766_s0 + $0x48] sm:$0xff] }
   0x5   :  { %87 = vrot.lane.b32.xlu0 %v6569_v8, %s6512_s13  ;;  %v6599_v17 = vmax.f32 %v33_v13, %v34_v14  ;;  %v6603_v18 = vmax.f32 %v31_v15, %v32_v16  ;;  %v39_v19 = vld [vmem:[%s8766_s0 + $0x80] sm:$0xff]  ;;  %v40_v20 = vld [vmem:[%s8766_s0 + $0x88] sm:$0xff]  ;;  %v41_v29 = vld [vmem:[%s8766_s0 + $0x90] sm:$0xff] }
   0x6   :  { %v35_v21 = vld [vmem:[%s8766_s0 + $0x60] sm:$0xff]  ;;  %v36_v22 = vld [vmem:[%s8766_s0 + $0x68] sm:$0xff]  ;;  %v6622_v24 = vmax.f32 %v39_v19, %v40_v20  ;;  %v42_v30 = vld [vmem:[%s8766_s0 + $0x98] sm:$0xff] }
   0x7   :  { %v4990_v23 = vld [vmem:[%s8767_s1 + $0x4] sm:$0xf]  ;;  %v348_v25 = vld [vmem:[%s8767_s1] sm:$0xf]  ;;  %v61_v26 = vmax.f32 %v35_v21, %v36_v22  ;;  %v44_v28 = vld [vmem:[%s8766_s0 + $0xa8] sm:$0xff]  ;;  %v64_v32 = vmax.f32 %v41_v29, %v42_v30  ;;  %v6774_v21 = vrot.slane %v8775_v3, 7 }
   0x8   :  { %93 = vrot.lane.b32.xlu1 %v6579_v11, %s6512_s13  ;;  %5669 = vmatprep.subr.msk.mxu0 %vm8783_vm0, %v4990_v23  ;;  %v43_v27 = vld [vmem:[%s8766_s0 + $0xa0] sm:$0xff]  ;;  %v48_v34 = vld [vmem:[%s8766_s0 + $0xc8] sm:$0xff]  ;;  %v45_v35 = vld [vmem:[%s8766_s0 + $0xb0] sm:$0xff] }
   0x9   :  { %89 = vrot.lane.b32.xlu0 %v6583_v12, %s6512_s13  ;;  %5670 = vmatpush3.msk.msra.mxu0 %vm8783_vm0, %v4990_v23  ;;  %v65_v31 = vmax.f32 %v43_v27, %v44_v28  ;;  %v47_v33 = vld [vmem:[%s8766_s0 + $0xc0] sm:$0xff]  ;;  %v46_v36 = vld [vmem:[%s8766_s0 + $0xb8] sm:$0xff]  ;;  %v52_v40 = vld [vmem:[%s8766_s0 + $0xe8] sm:$0xff]  ;;  %8874 = vst [vmem:[#allocation4_spill] sm:$0xff] %v6774_v21  ;;  %v8875_v27 = vmov 0 }
   0xa   :  { %5695 = vmatprep.subr.msk.mxu0 %vm8783_vm0, %v348_v25  ;;  %v67_v37 = vmax.f32 %v47_v33, %v48_v34  ;;  %v66_v38 = vmax.f32 %v45_v35, %v46_v36  ;;  %v51_v39 = vld [vmem:[%s8766_s0 + $0xe0] sm:$0xff]  ;;  %v49_v41 = vld [vmem:[%s8766_s0 + $0xd0] sm:$0xff]  ;;  %v50_v42 = vld [vmem:[%s8766_s0 + $0xd8] sm:$0xff]  ;;  %v8879_v33 = vmov 0 }
   0xb   :  { %v6674_v43 = vmax.f32 %v51_v39, %v52_v40  ;;  %v68_v44 = vmax.f32 %v49_v41, %v50_v42  ;;  %v53_v45 = vld [vmem:[%s8766_s0 + $0xf0] sm:$0xff]  ;;  %v54_v46 = vld [vmem:[%s8766_s0 + $0xf8] sm:$0xff]  ;;  %v6706_v54 = vld [vmem:[%s8767_s1 + $0x8] sm:$0xf] }
   0xc   :  { %97 = vrot.lane.b32.xlu1 %v6599_v17, %s6512_s13  ;;  %v37_v47 = vld [vmem:[%s8766_s0 + $0x70] sm:$0xff]  ;;  %v38_v48 = vld [vmem:[%s8766_s0 + $0x78] sm:$0xff]  ;;  %v6691_v49 = vmax.f32 %v53_v45, %v54_v46 }
   0xd   :  { %95 = vrot.lane.b32.xlu0 %v6603_v18, %s6512_s13  ;;  %v6694_v50 = vmax.f32 %v37_v47, %v38_v48 }
  0x10   :  { %103 = vrot.lane.b32.xlu1 %v6622_v24, %s6512_s13 }
  0x11   :  { %99 = vrot.lane.b32.xlu0 %v61_v26, %s6512_s13 }
  0x14   :  { %107 = vrot.lane.b32.xlu1 %v65_v31, %s6512_s13 }
  0x15   :  { %105 = vrot.lane.b32.xlu0 %v64_v32, %s6512_s13 }
  0x18   :  { %111 = vrot.lane.b32.xlu1 %v67_v37, %s6512_s13 }
  0x19   :  { %109 = vrot.lane.b32.xlu0 %v66_v38, %s6512_s13 }
  0x1c   :  { %115 = vrot.lane.b32.xlu1 %v6674_v43, %s6512_s13 }
  0x1d   :  { %113 = vrot.lane.b32.xlu0 %v68_v44, %s6512_s13 }
  0x20   :  { %117 = vrot.lane.b32.xlu1 %v6691_v49, %s6512_s13 }
  0x21   :  { %101 = vrot.lane.b32.xlu0 %v6694_v50, %s6512_s13 }
  0x76   :  { %v92_v51 = vpop.permute.xlu1 %91 }
  0x77   :  { %v88_v52 = vpop.permute.xlu0 %87  ;;  %v6711_v56 = vmax.f32 %v6558_v4, %v92_v51 }
  0x78   :  { %v6701_v53 = vmax.f32 %v6569_v8, %v88_v52 }
  0x79   :  { %v294_v35 = vrot.slane %v6711_v56, 7 }
  0x7a   :  { %8872 = vst [vmem:[#allocation2_spill] sm:$0xff] %v6701_v53  ;;  %5672 = vmatmul.mubr.msk.f32.vlgmr.msra.gmra.mrb[0].mxu0 %vm8814_vm1, %v6701_v53  ;;  %v94_v55 = vpop.permute.xlu1 %93  ;;  %v290_v23 = vrot.slane %v6701_v53, 7 }
  0x7b   :  { %5696 = vmatpush3.msk.msra.mxu0 %vm8783_vm0, %v348_v25  ;;  %v90_v57 = vpop.permute.xlu0 %89  ;;  %v6720_v59 = vmax.f32 %v6579_v11, %v94_v55  ;;  %v6752_v11 = vshrl.u32 %v151_v7, 7 }
  0x7c   :  { %v6715_v58 = vmax.f32 %v6583_v12, %v90_v57  ;;  %5721 = vmatprep.subr.msk.mxu0 %vm8783_vm0, %v6706_v54  ;;  %v6818_v34 = vsel %vm8780_vm3, %v6774_v21, %v290_v23 }
  0x7d   :  { %v6763_v16 = vadd.s32 8, %v6752_v11  ;;  %v6777_v22 = vadd.s32 24, %v6752_v11  ;;  %v296_v39 = vrot.slane %v6720_v59, 7  ;;  %v6835_v40 = vadd.s32 48, %v6752_v11 }
  0x7e   :  { %5674 = vmatprep.mubr.msk.f32.mxu0 %vm8814_vm1, %v6715_v58  ;;  %v98_v60 = vpop.permute.xlu1 %97  ;;  %v292_v29 = vrot.slane %v6715_v58, 7  ;;  %v6861_v48 = vadd.s32 56, %v6752_v11 }
  0x7f   :  { %5675 = vmatmul.mubr.msk.f32.gmra.mrb[2].mxu0 %vm8814_vm1, %v6711_v56  ;;  %v96_v61 = vpop.permute.xlu0 %95  ;;  %v6732_v63 = vmax.f32 %v6599_v17, %v98_v60  ;;  %v164_v17 = vand.u32 7, %v6752_v11  ;;  %v171_v25 = vand.u32 7, %v6763_v16  ;;  %v6873_v52 = vsel %vm8780_vm3, %v294_v35, %v296_v39 }
  0x80   :  { %v6727_v62 = vmax.f32 %v6603_v18, %v96_v61  ;;  %5677 = vmatprep.mubr.msk.f32.mxu0 %vm8814_vm1, %v6720_v59  ;;  %v6769_v18 = vadd.s32 16, %v6752_v11  ;;  %v6857_v46 = vsel %vm8780_vm3, %v292_v29, %v294_v35  ;;  %v8777_v55 = vand.u32 7, %v6835_v40 }
  0x81   :  { %vm6793_vm2 = vcmp.ge.s32.totalorder %v164_v17, 1  ;;  %vm6812_vm4 = vcmp.ge.s32.totalorder %v171_v25, 1  ;;  %v300_v57 = vrot.slane %v6732_v63, 7  ;;  %v8887_v60 = vmov 0 }
  0x82   :  { %v104_v0 = vpop.permute.xlu1 %103  ;;  %v8876_v27 = vsel %vm6793_vm2, 4294967295, %v8875_v27  ;;  %v178_v28 = vand.u32 7, %v6769_v18  ;;  %v6802_v30 = vsel %vm6793_vm2, %v6774_v21, 0.0  ;;  %v8880_v33 = vsel %vm6812_vm4, 4294967295, %v8879_v33  ;;  %v7040_v18 = vld [vmem:[%s8767_s1 + $0x10] sm:$0xf] }
  0x83   :  { %5678 = vmatmul.mubr.msk.f32.gmra.mrb[4].mxu0 %vm8814_vm1, %v6727_v62  ;;  %v100_v1 = vpop.permute.xlu0 %99  ;;  %v6741_v5 = vmax.f32 %v6622_v24, %v104_v0  ;;  %8877 = vst [vmem:[#allocation5_spill] sm:$0xff] %v8876_v27  ;;  %8878 = vst [vmem:[#allocation6_spill] sm:$0xff] %v6802_v30  ;;  %v334_v41 = vsel %vm6812_vm4, %v6818_v34, 0.0  ;;  %v298_v47 = vrot.slane %v6727_v62, 7  ;;  %vm6900_vm9 = vcmp.ge.s32.totalorder %v8777_v55, 1 }
  0x84   :  { %v6736_v2 = vmax.f32 %v61_v26, %v100_v1  ;;  %5680 = vmatprep.mubr.msk.f32.mxu0 %vm8814_vm1, %v6732_v63  ;;  %v6787_v26 = vadd.s32 32, %v6752_v11  ;;  %vm6826_vm5 = vcmp.ge.s32.totalorder %v178_v28, 1  ;;  %v8774_v1 = vand.u32 7, %v6861_v48 }
  0x85   :  { %8873 = vst [vmem:[#allocation3_spill] sm:$0xff] %v6741_v5  ;;  %v6893_v0 = vsel %vm8780_vm3, %v296_v39, %v298_v47  ;;  %v6905_v7 = vsel %vm8780_vm3, %v298_v47, %v300_v57  ;;  %vm6993_vm12 = vcmp.lt.s32.totalorder %v164_v17, 7  ;;  %v732_v55 = vrot.slane %v6711_v56, 1 }
  0x86   :  { %v108_v4 = vpop.permute.xlu1 %107  ;;  %v192_v36 = vand.u32 7, %v6787_v26  ;;  %vm6916_vm10 = vcmp.ge.s32.totalorder %v8774_v1, 1  ;;  %v728_v1 = vrot.slane %v6701_v53, 1  ;;  %vm7009_vm13 = vcmp.lt.s32.totalorder %v171_v25, 7 }
  0x87   :  { %5681 = vmatmul.mubr.msk.f32.gmra.mrb[6].mxu0 %vm8814_vm1, %v6736_v2  ;;  %v106_v6 = vpop.permute.xlu0 %105  ;;  %v6748_v9 = vmax.f32 %v65_v31, %v108_v4  ;;  %v185_v31 = vand.u32 7, %v6777_v22  ;;  %v8773_v4 = vrot.slane %v6736_v2, 7  ;;  %vm7020_vm14 = vcmp.lt.s32.totalorder %v178_v28, 7 }
  0x88   :  { %5683 = vmatprep.mubr.f32.mxu0 %v8775_v3  ;;  %v6746_v8 = vmax.f32 %v64_v32, %v106_v6  ;;  %v6806_v32 = vadd.s32 40, %v6752_v11  ;;  %vm6868_vm7 = vcmp.ge.s32.totalorder %v192_v36, 1  ;;  %v8889_v6 = vmov 0 }
  0x89   :  { %vm6842_vm6 = vcmp.ge.s32.totalorder %v185_v31, 1  ;;  %v337_v61 = vsel %vm6868_vm7, %v6873_v52, 0.0  ;;  %v8890_v6 = vsel %vm6900_vm9, 4294967295, %v8889_v6  ;;  %v736_v25 = vrot.slane %v6727_v62, 1 }
  0x8a   :  { %v112_v12 = vpop.permute.xlu1 %111  ;;  %vm7033_vm15 = vcmp.lt.s32.totalorder %v185_v31, 7  ;;  %v738_v31 = vrot.slane %v6732_v63, 1 }
  0x8b   :  { %5684 = vmatmul.mubr.msk.f32.gmra.mrb[8].mxu0 %vm8814_vm1, %v6741_v5  ;;  %v110_v10 = vpop.permute.xlu0 %109  ;;  %v6758_v14 = vmax.f32 %v67_v37, %v112_v12  ;;  %v339_v12 = vsel %vm6900_vm9, %v6905_v7, 0.0 }
  0x8c   :  { %5686 = vmatprep.mubr.msk.f32.mxu0 %vm8814_vm1, %v6746_v8  ;;  %v6756_v13 = vmax.f32 %v66_v38, %v110_v10  ;;  %v6831_v38 = vsel %vm8780_vm3, %v290_v23, %v292_v29  ;;  %v304_v23 = vrot.slane %v6741_v5, 7  ;;  %v306_v29 = vrot.slane %v6746_v8, 7 }
  0x8d   :  { %v335_v45 = vsel %vm6826_vm5, %v6831_v38, 0.0 }
  0x8e   :  { %v116_v20 = vpop.permute.xlu1 %115  ;;  %v6934_v39 = vsel %vm8780_vm3, %v6774_v21, %v304_v23  ;;  %v310_v47 = vrot.slane %v6756_v13, 7  ;;  %v748_v21 = vrot.slane %v6748_v9, 1 }
  0x8f   :  { %5687 = vmatmul.mubr.msk.f32.gmra.mrb[10].mxu0 %vm8814_vm1, %v6748_v9  ;;  %v114_v15 = vpop.permute.xlu0 %113  ;;  %v6781_v24 = vmax.f32 %v6674_v43, %v116_v20  ;;  %v8779_v43 = vand.u32 7, %v6806_v32  ;;  %v6923_v20 = vsel %vm8780_vm3, %v300_v57, %v8773_v4  ;;  %v341_v57 = vsel %vm6812_vm4, %v6934_v39, 0.0 }
  0x90   :  { %5689 = vmatprep.mubr.msk.f32.mxu0 %vm8814_vm1, %v6756_v13  ;;  %v6771_v19 = vmax.f32 %v68_v44, %v114_v15  ;;  %v6850_v44 = vld [vmem:[%s8767_s1 + $0xc] sm:$0xf]  ;;  %v8891_v15 = vmov 0  ;;  %v340_v35 = vsel %vm6916_vm10, %v6923_v20, 0.0  ;;  %v6975_v4 = vrot.slane %v8775_v3, 1 }
  0x91   :  { %vm6884_vm8 = vcmp.ge.s32.totalorder %v8779_v43, 1  ;;  %v8892_v15 = vsel %vm6916_vm10, 4294967295, %v8891_v15  ;;  %v8894_v3 = vmov 0 }
  0x92   :  { %v8888_v60 = vsel %vm6884_vm8, 4294967295, %v8887_v60  ;;  %v338_v10 = vsel %vm6884_vm8, %v6893_v0, 0.0  ;;  %8893 = vst [vmem:[#allocation7_spill] sm:$0xff] %v6975_v4  ;;  %v8895_v3 = vsel %vm6993_vm12, 4294967295, %v8894_v3 }
  0x93   :  { %5690 = vmatmul.mubr.msk.f32.gmra.mrb[12].mxu0 %vm8814_vm1, %v6758_v14  ;;  %v102_v43 = vpop.permute.xlu0 %101 }
  0x94   :  { %5692 = vmatprep.mubr.msk.f32.mxu0 %vm8814_vm1, %v6771_v19  ;;  %v7043_v28 = vmax.f32 %v6694_v50, %v102_v43  ;;  %v8904_v50 = vmov 0 }
  0x97   :  { %5693 = vmatmul.mubr.msk.f32.gmra.mrb[14].mxu0 %vm8814_vm1, %v6781_v24 }
  0x98   :  { %5697 = vmatprep.mubr.msk.f32.mxu0 %vm8814_vm1, %v6802_v30 }
  0x9b   :  { %5698 = vmatmul.mubr.msk.f32.vlgmr.msra.gmra.mrb[0].mxu0 %vm8814_vm1, %v334_v41  ;;  %v308_v41 = vrot.slane %v6748_v9, 7 }
  0x9c   :  { %5722 = vmatpush3.msk.msra.mxu0 %vm8783_vm0, %v6706_v54  ;;  %5700 = vmatprep.mubr.msk.f32.mxu0 %vm8814_vm1, %v335_v45  ;;  %v336_v54 = vsel %vm6842_vm6, %v6857_v46, 0.0  ;;  %v6940_v45 = vsel %vm8780_vm3, %v304_v23, %v306_v29  ;;  %v314_v23 = vrot.slane %v6771_v19, 7 }
  0x9d   :  { %5747 = vmatprep.subr.msk.mxu0 %vm8783_vm0, %v6850_v44 }
  0x9f   :  { %5701 = vmatmul.mubr.msk.f32.gmra.mrb[2].mxu0 %vm8814_vm1, %v336_v54  ;;  %v342_v54 = vsel %vm6826_vm5, %v6940_v45, 0.0 }
  0xa0   :  { %5703 = vmatprep.mubr.msk.f32.mxu0 %vm8814_vm1, %v337_v61  ;;  %v6951_v61 = vsel %vm8780_vm3, %v306_v29, %v308_v41 }
  0xa3   :  { %5704 = vmatmul.mubr.msk.f32.gmra.mrb[4].mxu0 %vm8814_vm1, %v338_v10  ;;  %v312_v10 = vrot.slane %v6758_v14, 7 }
  0xa4   :  { %5706 = vmatprep.mubr.msk.f32.mxu0 %vm8814_vm1, %v339_v12  ;;  %v6956_v12 = vsel %vm8780_vm3, %v308_v41, %v310_v47 }
  0xa5   :  { %v344_v29 = vsel %vm6868_vm7, %v6956_v12, 0.0  ;;  %v6972_v41 = vsel %vm8780_vm3, %v312_v10, %v314_v23 }
  0xa7   :  { %5707 = vmatmul.mubr.msk.f32.gmra.mrb[6].mxu0 %vm8814_vm1, %v340_v35  ;;  %v343_v35 = vsel %vm6842_vm6, %v6951_v61, 0.0 }
  0xa8   :  { %5709 = vmatprep.mubr.msk.f32.mxu0 %vm8814_vm1, %v6802_v30 }
  0xab   :  { %5710 = vmatmul.mubr.msk.f32.gmra.mrb[8].mxu0 %vm8814_vm1, %v341_v57  ;;  %v6967_v57 = vsel %vm8780_vm3, %v310_v47, %v312_v10  ;;  %v346_v47 = vsel %vm6900_vm9, %v6972_v41, 0.0 }
  0xac   :  { %5712 = vmatprep.mubr.msk.f32.mxu0 %vm8814_vm1, %v342_v54  ;;  %v8778_v54 = vrot.slane %v6781_v24, 7 }
  0xae   :  { %v6988_v10 = vsel %vm8780_vm3, %v314_v23, %v8778_v54  ;;  %v734_v54 = vrot.slane %v6720_v59, 1  ;;  %vm7058_vm3 = vcmp.lt.s32.totalorder %v192_v36, 7  ;;  %v8907_v36 = vand.u32 7, %v6806_v32 }
  0xaf   :  { %5713 = vmatmul.mubr.msk.f32.gmra.mrb[10].mxu0 %vm8814_vm1, %v343_v35  ;;  %v345_v35 = vsel %vm6884_vm8, %v6967_v57, 0.0  ;;  %v347_v23 = vsel %vm6916_vm10, %v6988_v10, 0.0  ;;  %v8905_v50 = vsel %vm7058_vm3, 4294967295, %v8904_v50  ;;  %v744_v32 = vrot.slane %v6741_v5, 1 }
  0xb0   :  { %5715 = vmatprep.mubr.msk.f32.mxu0 %vm8814_vm1, %v344_v29  ;;  %v730_v29 = vrot.slane %v6715_v58, 1  ;;  %v7050_v22 = vsel %vm8798_vm11, %v732_v55, %v734_v54  ;;  %8906 = vst [vmem:[#allocation10_spill] sm:$0xff] %v8905_v50  ;;  %v7063_v43 = vsel %vm8798_vm11, %v734_v54, %v736_v25  ;;  %vm7077_vm10 = vcmp.lt.s32.totalorder %v8907_v36, 7 }
  0xb1   :  { %v780_v26 = vsel %vm7058_vm3, %v7063_v43, 0.0  ;;  %v7082_v54 = vsel %vm8798_vm11, %v736_v25, %v738_v31  ;;  %v8917_v36 = vmov 0 }
  0xb2   :  { %v7025_v16 = vsel %vm8798_vm11, %v730_v29, %v732_v55  ;;  %v8908_v55 = vmov 0  ;;  %v781_v25 = vsel %vm7077_vm10, %v7082_v54, 0.0 }
  0xb3   :  { %5716 = vmatmul.mubr.msk.f32.gmra.mrb[12].mxu0 %vm8814_vm1, %v345_v35  ;;  %v729_v35 = vsel %vm8798_vm11, %v6975_v4, %v728_v1  ;;  %v8909_v55 = vsel %vm7077_vm10, 4294967295, %v8908_v55 }
  0xb4   :  { %5718 = vmatprep.mubr.msk.f32.mxu0 %vm8814_vm1, %v346_v47  ;;  %v776_v11 = vsel %vm6993_vm12, %v729_v35, 0.0  ;;  %v7014_v47 = vsel %vm8798_vm11, %v728_v1, %v730_v29  ;;  %v8901_v35 = vmov 0  ;;  %v778_v29 = vsel %vm7020_vm14, %v7025_v16, 0.0  ;;  %8910 = vst [vmem:[#allocation11_spill] sm:$0xff] %v8909_v55 }
  0xb5   :  { %v777_v1 = vsel %vm7009_vm13, %v7014_v47, 0.0  ;;  %v8902_v35 = vsel %vm7033_vm15, 4294967295, %v8901_v35 }
  0xb6   :  { %8903 = vst [vmem:[#allocation9_spill] sm:$0xff] %v8902_v35 }
  0xb7   :  { %5719 = vmatmul.mubr.msk.f32.gmra.mrb[14].mxu0 %vm8814_vm1, %v347_v23  ;;  %v8898_v23 = vmov 0 }
  0xb8   :  { %5723 = vmatprep.mubr.msk.f32.mxu0 %vm8814_vm1, %v776_v11  ;;  %v8899_v23 = vsel %vm7020_vm14, 4294967295, %v8898_v23  ;;  %v740_v11 = vrot.slane %v6736_v2, 1 }
  0xb9   :  { %8900 = vst [vmem:[#allocation8_spill] sm:$0xff] %v8899_v23 }
  0xba   :  { %v7093_v30 = vsel %vm8798_vm11, %v738_v31, %v740_v11 }
  0xbb   :  { %5724 = vmatmul.mubr.msk.f32.vlgmr.msra.gmra.mrb[0].mxu0 %vm8814_vm1, %v777_v1  ;;  %v8790_v1 = vrot.slane %v7043_v28, 1  ;;  %8915 = vst [vmem:[#allocation13_spill] sm:$0xff] %v7093_v30 }
  0xbc   :  { %5748 = vmatpush3.msk.msra.mxu0 %vm8783_vm0, %v6850_v44  ;;  %5726 = vmatprep.mubr.msk.f32.mxu0 %vm8814_vm1, %v778_v29  ;;  %v779_v44 = vsel %vm7033_vm15, %v7050_v22, 0.0  ;;  %v8911_v29 = vand.u32 7, %v6835_v40  ;;  %v8916_v40 = vand.u32 7, %v6861_v48 }
  0xbd   :  { %5773 = vmatprep.subr.msk.mxu0 %vm8783_vm0, %v7040_v18  ;;  %v7112_v31 = vsel %vm8798_vm11, %v740_v11, %v8790_v1  ;;  %v750_v1 = vrot.slane %v6756_v13, 1 }
  0xbe   :  { %vm7088_vm0 = vcmp.lt.s32.totalorder %v8911_v29, 7  ;;  %vm7105_vm9 = vcmp.lt.s32.totalorder %v8916_v40, 7  ;;  %8920 = vst [vmem:[#allocation15_spill] sm:$0xff] %v7112_v31  ;;  %v746_v29 = vrot.slane %v6746_v8, 1 }
  0xbf   :  { %5727 = vmatmul.mubr.msk.f32.gmra.mrb[2].mxu0 %vm8814_vm1, %v779_v44  ;;  %v8912_v44 = vmov 0  ;;  %v8918_v36 = vsel %vm7105_vm9, 4294967295, %v8917_v36  ;;  %v783_v48 = vsel %vm7105_vm9, %v7112_v31, 0.0 }
  0xc0   :  { %5729 = vmatprep.mubr.msk.f32.mxu0 %vm8814_vm1, %v780_v26  ;;  %v8913_v44 = vsel %vm7088_vm0, 4294967295, %v8912_v44  ;;  %v782_v26 = vsel %vm7088_vm0, %v7093_v30, 0.0  ;;  %8919 = vst [vmem:[#allocation14_spill] sm:$0xff] %v8918_v36  ;;  %v7126_v11 = vsel %vm8798_vm11, %v744_v32, %v746_v29  ;;  %v752_v30 = vrot.slane %v6758_v14, 1 }
  0xc1   :  { %8914 = vst [vmem:[#allocation12_spill] sm:$0xff] %v8913_v44  ;;  %8921 = vst [vmem:[#allocation16_spill] sm:$0xff] %v7126_v11 }
  0xc3   :  { %5730 = vmatmul.mubr.msk.f32.gmra.mrb[4].mxu0 %vm8814_vm1, %v781_v25  ;;  %v745_v25 = vsel %vm8798_vm11, %v6975_v4, %v744_v32  ;;  %v7131_v4 = vsel %vm8798_vm11, %v746_v29, %v748_v21  ;;  %v754_v29 = vrot.slane %v6771_v19, 1 }
  0xc4   :  { %5732 = vmatprep.mubr.msk.f32.mxu0 %vm8814_vm1, %v782_v26  ;;  %v784_v40 = vsel %vm6993_vm12, %v745_v25, 0.0  ;;  %v118_v26 = vpop.permute.xlu1 %117  ;;  %v786_v32 = vsel %vm7020_vm14, %v7131_v4, 0.0  ;;  %v7145_v25 = vsel %vm8798_vm11, %v748_v21, %v750_v1 }
  0xc5   :  { %v7138_v31 = vmax.f32 %v6691_v49, %v118_v26  ;;  %v787_v49 = vsel %vm7033_vm15, %v7145_v25, 0.0  ;;  %v7161_v26 = vsel %vm8798_vm11, %v752_v30, %v754_v29 }
  0xc7   :  { %5733 = vmatmul.mubr.msk.f32.gmra.mrb[6].mxu0 %vm8814_vm1, %v783_v48  ;;  %v785_v48 = vsel %vm7009_vm13, %v7126_v11, 0.0  ;;  %v756_v11 = vrot.slane %v6781_v24, 1 }
  0xc8   :  { %5735 = vmatprep.mubr.msk.f32.mxu0 %vm8814_vm1, %v784_v40  ;;  %v7150_v40 = vsel %vm8798_vm11, %v750_v1, %v752_v30 }
  0xc9   :  { %v788_v21 = vsel %vm7058_vm3, %v7150_v40, 0.0  ;;  %v7166_v1 = vsel %vm8798_vm11, %v754_v29, %v756_v11 }
  0xcb   :  { %5736 = vmatmul.mubr.msk.f32.gmra.mrb[8].mxu0 %vm8814_vm1, %v785_v48  ;;  %v8803_v48 = vrot.slane %v7138_v31, 1 }
  0xcc   :  { %5738 = vmatprep.mubr.msk.f32.mxu0 %vm8814_vm1, %v786_v32  ;;  %v789_v32 = vsel %vm7077_vm10, %v7161_v26, 0.0 }
  0xcd   :  { %v7178_v30 = vsel %vm8798_vm11, %v756_v11, %v8803_v48  ;;  %v5077_v11 = vld [vmem:[%s8767_s1 + $0x14] sm:$0xf]  ;;  %vm8922_vm11 = vcmask 1043456   ;;  %v1021_v48 = vsel %vm6812_vm4, %v6940_v45, 0.0 }
  0xce   :  { %v791_v29 = vsel %vm7105_vm9, %v7178_v30, 0.0  ;;  %vm8923_vm9 = vmmov %vm8922_vm11 }
  0xcf   :  { %5739 = vmatmul.mubr.msk.f32.gmra.mrb[10].mxu0 %vm8814_vm1, %v787_v49  ;;  %v790_v49 = vsel %vm7088_vm0, %v7166_v1, 0.0  ;;  %vm8927_vm0 = vnez %v8892_v15 }
  0xd0   :  { %5741 = vmatprep.mubr.msk.f32.mxu0 %vm8814_vm1, %v788_v21  ;;  %v1012_v21 = vsel %vm6793_vm2, %v6818_v34, 0.0  ;;  %v1015_v34 = vsel %vm6842_vm6, %v6873_v52, 0.0 }
  0xd3   :  { %5742 = vmatmul.mubr.msk.f32.gmra.mrb[12].mxu0 %vm8814_vm1, %v789_v32  ;;  %v1013_v32 = vsel %vm6812_vm4, %v6831_v38, 0.0 }
  0xd4   :  { %5744 = vmatprep.mubr.msk.f32.mxu0 %vm8814_vm1, %v790_v49  ;;  %v1014_v49 = vsel %vm6826_vm5, %v6857_v46, 0.0 }
  0xd7   :  { %5745 = vmatmul.mubr.msk.f32.gmra.mrb[14].mxu0 %vm8814_vm1, %v791_v29  ;;  %v1016_v29 = vsel %vm6868_vm7, %v6893_v0, 0.0 }
  0xd8   :  { %5749 = vmatprep.mubr.msk.f32.mxu0 %vm8814_vm1, %v1012_v21  ;;  %v8806_v21 = vrot.slane %v7043_v28, 7 }
  0xdb   :  { %5750 = vmatmul.mubr.msk.f32.vlgmr.msra.gmra.mrb[0].mxu0 %vm8814_vm1, %v1013_v32 }
  0xdc   :  { %5774 = vmatpush3.msk.msra.mxu0 %vm8922_vm11, %v7040_v18  ;;  %5752 = vmatprep.mubr.msk.f32.mxu0 %vm8814_vm1, %v1014_v49  ;;  %v1017_v18 = vsel %vm6884_vm8, %v6905_v7, 0.0  ;;  %v8925_v49 = vrot.slane %v6736_v2, 7  ;;  %vm8926_vm11 = vcmask 1040384  }
  0xdd   :  { %5799 = vmatprep.subr.msk.mxu0 %vm8923_vm9, %v5077_v11  ;;  %vm8924_vm9 = vnez %v8890_v6 }
  0xde   :  { %v1018_v32 = vsel %vm8924_vm9, %v6923_v20, 0.0 }
  0xdf   :  { %5753 = vmatmul.mubr.msk.f32.gmra.mrb[2].mxu0 %vm8814_vm1, %v1015_v34  ;;  %v7224_v34 = vsel %vm8926_vm11, %v8925_v49, %v8806_v21  ;;  %v1023_v49 = vsel %vm6842_vm6, %v6956_v12, 0.0  ;;  %v8935_v21 = vld [vmem:[#allocation7_spill] sm:$0xff] }
  0xe0   :  { %5755 = vmatprep.mubr.msk.f32.mxu0 %vm8814_vm1, %v1016_v29  ;;  %v1019_v29 = vsel %vm8927_vm0, %v7224_v34, 0.0 }
  0xe3   :  { %5756 = vmatmul.mubr.msk.f32.gmra.mrb[4].mxu0 %vm8814_vm1, %v1017_v18  ;;  %v1020_v18 = vsel %vm6793_vm2, %v6934_v39, 0.0  ;;  %v1024_v39 = vsel %vm6868_vm7, %v6967_v57, 0.0 }
  0xe4   :  { %5758 = vmatprep.mubr.msk.f32.mxu0 %vm8814_vm1, %v1018_v32  ;;  %v1022_v32 = vsel %vm6826_vm5, %v6951_v61, 0.0 }
  0xe7   :  { %5759 = vmatmul.mubr.msk.f32.gmra.mrb[6].mxu0 %vm8814_vm1, %v1019_v29  ;;  %v8805_v29 = vrot.slane %v7138_v31, 7 }
  0xe8   :  { %5761 = vmatprep.mubr.msk.f32.mxu0 %vm8814_vm1, %v1020_v18  ;;  %v1026_v18 = vsel %vm8924_vm9, %v6988_v10, 0.0 }
  0xeb   :  { %5762 = vmatmul.mubr.msk.f32.gmra.mrb[8].mxu0 %vm8814_vm1, %v1021_v48  ;;  %v1025_v48 = vsel %vm6884_vm8, %v6972_v41, 0.0 }
  0xec   :  { %5764 = vmatprep.mubr.msk.f32.mxu0 %vm8814_vm1, %v1022_v32  ;;  %v8928_v32 = vrot.slane %v6781_v24, 7 }
  0xef   :  { %5765 = vmatmul.mubr.msk.f32.gmra.mrb[10].mxu0 %vm8814_vm1, %v1023_v49  ;;  %v7264_v49 = vsel %vm8926_vm11, %v8928_v32, %v8805_v29  ;;  %vm8929_vm11 = vcmask 1043456   ;;  %v5113_v32 = vld [vmem:[%s8767_s1 + $0x1c] sm:$0xf] }
  0xf0   :  { %5767 = vmatprep.mubr.msk.f32.mxu0 %vm8814_vm1, %v1024_v39  ;;  %v1027_v39 = vsel %vm8927_vm0, %v7264_v49, 0.0  ;;  %vm8930_vm9 = vmmov %vm8929_vm11  ;;  %vm8938_vm0 = vnez %v8918_v36 }
  0xf3   :  { %5768 = vmatmul.mubr.msk.f32.gmra.mrb[12].mxu0 %vm8814_vm1, %v1025_v48  ;;  %v5095_v48 = vld [vmem:[%s8767_s1 + $0x18] sm:$0xf] }
  0xf4   :  { %5770 = vmatprep.mubr.msk.f32.mxu0 %vm8814_vm1, %v1026_v18  ;;  %v1417_v18 = vsel %vm7009_vm13, %v7025_v16, 0.0 }
  0xf7   :  { %5771 = vmatmul.mubr.msk.f32.gmra.mrb[14].mxu0 %vm8814_vm1, %v1027_v39  ;;  %v1418_v39 = vsel %vm7020_vm14, %v7050_v22, 0.0 }
  0xf8   :  { %5775 = vmatprep.mubr.msk.f32.mxu0 %vm8814_vm1, %v6701_v53  ;;  %v8939_v53 = vld [vmem:[#allocation16_spill] sm:$0xff] }
  0xfb   :  { %5776 = vmatmul.mubr.msk.f32.vlgmr.msra.gmra.mrb[0].mxu0 %vm8814_vm1, %v6715_v58 }
  0xfc   :  { %5800 = vmatpush3.msk.msra.mxu0 %vm8929_vm11, %v5077_v11  ;;  %5778 = vmatprep.mubr.msk.f32.mxu0 %vm8814_vm1, %v6711_v56  ;;  %v1416_v11 = vsel %vm6993_vm12, %v7014_v47, 0.0  ;;  %vm8931_vm11 = vmmov %vm8930_vm9  ;;  %v1419_v47 = vsel %vm7033_vm15, %v7063_v43, 0.0 }
  0xfd   :  { %5825 = vmatprep.subr.msk.mxu0 %vm8930_vm9, %v5095_v48 }
  0xff   :  { %5779 = vmatmul.mubr.msk.f32.gmra.mrb[2].mxu0 %vm8814_vm1, %v6720_v59 }
 0x100   :  { %5781 = vmatprep.mubr.msk.f32.mxu0 %vm8814_vm1, %v6727_v62 }
 0x103   :  { %5782 = vmatmul.mubr.msk.f32.gmra.mrb[4].mxu0 %vm8814_vm1, %v6732_v63 }
 0x104   :  { %5784 = vmatprep.mubr.msk.f32.mxu0 %vm8814_vm1, %v6736_v2 }
 0x107   :  { %5785 = vmatmul.mubr.msk.f32.gmra.mrb[6].mxu0 %vm8814_vm1, %v7043_v28 }
 0x108   :  { %5787 = vmatprep.mubr.msk.f32.mxu0 %vm8814_vm1, %v6741_v5  ;;  %v8936_v5 = vrot.slane %v7043_v28, 1 }
 0x10b   :  { %5788 = vmatmul.mubr.msk.f32.gmra.mrb[8].mxu0 %vm8814_vm1, %v6746_v8 }
 0x10c   :  { %5790 = vmatprep.mubr.msk.f32.mxu0 %vm8814_vm1, %v6748_v9 }
 0x10f   :  { %5791 = vmatmul.mubr.msk.f32.gmra.mrb[10].mxu0 %vm8814_vm1, %v6756_v13 }
 0x110   :  { %5793 = vmatprep.mubr.msk.f32.mxu0 %vm8814_vm1, %v6758_v14 }
 0x113   :  { %5794 = vmatmul.mubr.msk.f32.gmra.mrb[12].mxu0 %vm8814_vm1, %v6771_v19 }
 0x114   :  { %5796 = vmatprep.mubr.msk.f32.mxu0 %vm8814_vm1, %v6781_v24 }
 0x117   :  { %5797 = vmatmul.mubr.msk.f32.gmra.mrb[14].mxu0 %vm8814_vm1, %v7138_v31 }
 0x118   :  { %5801 = vmatprep.mubr.msk.f32.mxu0 %vm8814_vm1, %v1416_v11  ;;  %v1420_v11 = vsel %vm7058_vm3, %v7082_v54, 0.0 }
 0x11b   :  { %5802 = vmatmul.mubr.msk.f32.vlgmr.msra.gmra.mrb[0].mxu0 %vm8814_vm1, %v1417_v18  ;;  %v8932_v18 = vld [vmem:[#allocation13_spill] sm:$0xff] }
 0x11c   :  { %5826 = vmatpush3.msk.msra.mxu0 %vm8930_vm9, %v5095_v48  ;;  %5804 = vmatprep.mubr.msk.f32.mxu0 %vm8814_vm1, %v1418_v39  ;;  %v1421_v48 = vsel %vm7077_vm10, %v8932_v18, 0.0  ;;  %v8933_v39 = vld [vmem:[#allocation15_spill] sm:$0xff]  ;;  %vm8934_vm9 = vnez %v8913_v44 }
 0x11d   :  { %5851 = vmatprep.subr.msk.mxu0 %vm8931_vm11, %v5113_v32  ;;  %v1422_v29 = vsel %vm8934_vm9, %v8933_v39, 0.0  ;;  %vm8937_vm11 = vcmask 1046528   ;;  %v1425_v39 = vsel %vm7009_vm13, %v7131_v4, 0.0 }
 0x11f   :  { %5805 = vmatmul.mubr.msk.f32.gmra.mrb[2].mxu0 %vm8814_vm1, %v1419_v47  ;;  %v7344_v47 = vsel %vm8937_vm11, %v8936_v5, %v8935_v21  ;;  %v1426_v5 = vsel %vm7020_vm14, %v7145_v25, 0.0 }
 0x120   :  { %5807 = vmatprep.mubr.msk.f32.mxu0 %vm8814_vm1, %v1420_v11  ;;  %v1423_v11 = vsel %vm8938_vm0, %v7344_v47, 0.0 }
 0x123   :  { %5808 = vmatmul.mubr.msk.f32.gmra.mrb[4].mxu0 %vm8814_vm1, %v1421_v48  ;;  %v1424_v48 = vsel %vm6993_vm12, %v8939_v53, 0.0  ;;  %v1428_v53 = vsel %vm7058_vm3, %v7161_v26, 0.0 }
 0x124   :  { %5810 = vmatprep.mubr.msk.f32.mxu0 %vm8814_vm1, %v1422_v29  ;;  %v1427_v29 = vsel %vm7033_vm15, %v7150_v40, 0.0 }
 0x127   :  { %5811 = vmatmul.mubr.msk.f32.gmra.mrb[6].mxu0 %vm8814_vm1, %v1423_v11  ;;  %v1430_v11 = vsel %vm8934_vm9, %v7178_v30, 0.0  ;;  %vm8947_vm9 = vnez %v8892_v15 }
 0x128   :  { %5813 = vmatprep.mubr.msk.f32.mxu0 %vm8814_vm1, %v1424_v48  ;;  %v8940_v48 = vrot.slane %v7138_v31, 1 }
 0x12b   :  { %5814 = vmatmul.mubr.msk.f32.gmra.mrb[8].mxu0 %vm8814_vm1, %v1425_v39  ;;  %v1429_v39 = vsel %vm7077_vm10, %v7166_v1, 0.0 }
 0x12c   :  { %5816 = vmatprep.mubr.msk.f32.mxu0 %vm8814_vm1, %v1426_v5  ;;  %v7382_v5 = vsel %vm8937_vm11, %v8940_v48, %v8935_v21  ;;  %v1652_v48 = vsel %vm6826_vm5, %v6873_v52, 0.0  ;;  %vm8941_vm11 = vcmask 1043456   ;;  %v1655_v52 = vsel %vm6884_vm8, %v6923_v20, 0.0 }
 0x12d   :  { %v1658_v20 = vsel %vm6793_vm2, %v6940_v45, 0.0  ;;  %v1662_v45 = vsel %vm6868_vm7, %v6972_v41, 0.0 }
 0x12f   :  { %5817 = vmatmul.mubr.msk.f32.gmra.mrb[10].mxu0 %vm8814_vm1, %v1427_v29  ;;  %v1431_v29 = vsel %vm8938_vm0, %v7382_v5, 0.0  ;;  %vm8942_vm0 = vmmov %vm8941_vm11 }
 0x130   :  { %5819 = vmatprep.mubr.msk.f32.mxu0 %vm8814_vm1, %v1428_v53  ;;  %v1650_v53 = vsel %vm6793_vm2, %v6831_v38, 0.0  ;;  %v1653_v38 = vsel %vm6842_vm6, %v6893_v0, 0.0  ;;  %v8945_v0 = vrot.slane %v7043_v28, 7  ;;  %vm8949_vm2 = vcmask 1043456  }
 0x133   :  { %5820 = vmatmul.mubr.msk.f32.gmra.mrb[12].mxu0 %vm8814_vm1, %v1429_v39  ;;  %v1651_v39 = vsel %vm6812_vm4, %v6857_v46, 0.0  ;;  %v1654_v46 = vsel %vm6868_vm7, %v6905_v7, 0.0 }
 0x134   :  { %5822 = vmatprep.mubr.msk.f32.mxu0 %vm8814_vm1, %v1430_v11  ;;  %v5129_v11 = vld [vmem:[%s8767_s1 + $0x20] sm:$0xf] }
 0x137   :  { %5823 = vmatmul.mubr.msk.f32.gmra.mrb[14].mxu0 %vm8814_vm1, %v1431_v29  ;;  %v8944_v29 = vld [vmem:[#allocation4_spill] sm:$0xff] }
 0x138   :  { %5827 = vmatprep.mubr.msk.f32.mxu0 %vm8814_vm1, %v1650_v53 }
 0x13b   :  { %5828 = vmatmul.mubr.msk.f32.vlgmr.msra.gmra.mrb[0].mxu0 %vm8814_vm1, %v1651_v39  ;;  %v1660_v39 = vsel %vm6826_vm5, %v6956_v12, 0.0 }
 0x13c   :  { %5852 = vmatpush3.msk.msra.mxu0 %vm8941_vm11, %v5113_v32  ;;  %5830 = vmatprep.mubr.msk.f32.mxu0 %vm8814_vm1, %v1652_v48  ;;  %vm8946_vm11 = vcmask 1040384   ;;  %v1661_v48 = vsel %vm6842_vm6, %v6967_v57, 0.0  ;;  %v8948_v57 = vrot.slane %v7138_v31, 7 }
 0x13d   :  { %5877 = vmatprep.subr.msk.mxu0 %vm8942_vm0, %v5129_v11  ;;  %vm8943_vm0 = vnez %v8890_v6  ;;  %v1646_v53 = vsel %vm8946_vm11, %v8945_v0, %v8944_v29  ;;  %v2058_v0 = vsel %vm7020_vm14, %v7150_v40, 0.0 }
 0x13e   :  { %v1656_v32 = vsel %vm8943_vm0, %v7224_v34, 0.0  ;;  %v1657_v7 = vsel %vm8947_vm9, %v1646_v53, 0.0  ;;  %v1659_v34 = vsel %vm6812_vm4, %v6951_v61, 0.0  ;;  %v1663_v61 = vsel %vm6884_vm8, %v6988_v10, 0.0 }
 0x13f   :  { %5831 = vmatmul.mubr.msk.f32.gmra.mrb[2].mxu0 %vm8814_vm1, %v1653_v38  ;;  %v1664_v12 = vsel %vm8943_vm0, %v7264_v49, 0.0  ;;  %v1647_v38 = vsel %vm8946_vm11, %v8948_v57, %v8944_v29  ;;  %v8950_v10 = vmov 0.0   ;;  %v2048_v49 = vsel %vm6993_vm12, %v7025_v16, 0.0 }
 0x140   :  { %5833 = vmatprep.mubr.msk.f32.mxu0 %vm8814_vm1, %v1654_v46  ;;  %v1665_v41 = vsel %vm8947_vm9, %v1647_v38, 0.0  ;;  %v2050_v46 = vsel %vm7020_vm14, %v7063_v43, 0.0  ;;  %v2052_v16 = vsel %vm7058_vm3, %v8932_v18, 0.0  ;;  %vm8953_vm11 = vnez %v8918_v36 }
 0x141   :  { %v2056_v18 = vsel %vm6993_vm12, %v7131_v4, 0.0  ;;  %v2059_v53 = vsel %vm7033_vm15, %v7161_v26, 0.0  ;;  %v2060_v4 = vsel %vm7058_vm3, %v7166_v1, 0.0  ;;  %v8955_v26 = vld [vmem:[#allocation6_spill] sm:$0xff] }
 0x142   :  { %v2606_v1 = vld [vmem:[%s8769_s4] sm:$0xff] }
 0x143   :  { %5834 = vmatmul.mubr.msk.f32.gmra.mrb[4].mxu0 %vm8814_vm1, %v1655_v52  ;;  %v2051_v52 = vsel %vm7033_vm15, %v7082_v54, 0.0  ;;  %v7526_v54 = vsel %vm8953_vm11, %v8935_v21, 0.0  ;;  %vm8831_vm11 = vcmask 64512   ;;  %6163 = vmatprep.subr.mxu1 %v2606_v1 }
 0x144   :  { %5836 = vmatprep.mubr.msk.f32.mxu0 %vm8814_vm1, %v1656_v32  ;;  %8954 = vst [vmem:[#allocation13_spill] sm:$0xff] %v7526_v54  ;;  %5917 = vmatprep.mubr.msk.f32.mxu1 %vm8831_vm11, %v8955_v26 }
 0x145   :  { %6164 = vmatpush3.msra.mxu1 %v2606_v1 }
 0x147   :  { %5837 = vmatmul.mubr.msk.f32.gmra.mrb[6].mxu0 %vm8814_vm1, %v1657_v7 }
 0x148   :  { %5839 = vmatprep.mubr.msk.f32.mxu0 %vm8814_vm1, %v1658_v20 }
 0x14b   :  { %5840 = vmatmul.mubr.msk.f32.gmra.mrb[8].mxu0 %vm8814_vm1, %v1659_v34 }
 0x14c   :  { %5842 = vmatprep.mubr.msk.f32.mxu0 %vm8814_vm1, %v1660_v39 }
 0x14f   :  { %5843 = vmatmul.mubr.msk.f32.gmra.mrb[10].mxu0 %vm8814_vm1, %v1661_v48 }
 0x150   :  { %5845 = vmatprep.mubr.msk.f32.mxu0 %vm8814_vm1, %v1662_v45 }
 0x153   :  { %5846 = vmatmul.mubr.msk.f32.gmra.mrb[12].mxu0 %vm8814_vm1, %v1663_v61 }
 0x154   :  { %5848 = vmatprep.mubr.msk.f32.mxu0 %vm8814_vm1, %v1664_v12 }
 0x157   :  { %5849 = vmatmul.mubr.msk.f32.gmra.mrb[14].mxu0 %vm8814_vm1, %v1665_v41 }
 0x158   :  { %5853 = vmatprep.mubr.msk.f32.mxu0 %vm8814_vm1, %v6715_v58 }
 0x15b   :  { %5854 = vmatmul.mubr.msk.f32.vlgmr.msra.gmra.mrb[0].mxu0 %vm8814_vm1, %v6711_v56 }
 0x15c   :  { %5878 = vmatpush3.msk.msra.mxu0 %vm8949_vm2, %v5129_v11  ;;  %5856 = vmatprep.mubr.msk.f32.mxu0 %vm8814_vm1, %v6720_v59  ;;  %v2049_v11 = vsel %vm7009_vm13, %v7050_v22, 0.0  ;;  %v8951_v22 = vld [vmem:[#allocation15_spill] sm:$0xff]  ;;  %vm8952_vm2 = vnez %v8913_v44 }
 0x15d   :  { %v2053_v32 = vsel %vm7077_vm10, %v8951_v22, 0.0  ;;  %v2054_v43 = vsel %vm8952_vm2, %v7344_v47, 0.0  ;;  %v2057_v47 = vsel %vm7009_vm13, %v7145_v25, 0.0  ;;  %v2061_v25 = vsel %vm7077_vm10, %v7178_v30, 0.0  ;;  %v7570_v30 = vld [vmem:[%s8770_s3] sm:$0xf]  ;;  %5903 = vmatprep.subr.mxu0 %v2606_v1 }
 0x15e   :  { %v2062_v40 = vsel %vm8952_vm2, %v7382_v5, 0.0  ;;  %v7575_v5 = vld [vmem:[%s8768_s2] ss:$0 sm:$0xff]  ;;  %vm8957_vm10 = vcmask 1040384  }
 0x15f   :  { %5857 = vmatmul.mubr.msk.f32.gmra.mrb[2].mxu0 %vm8814_vm1, %v6727_v62 }
 0x160   :  { %5859 = vmatprep.mubr.msk.f32.mxu0 %vm8814_vm1, %v6732_v63 }
 0x163   :  { %5860 = vmatmul.mubr.msk.f32.gmra.mrb[4].mxu0 %vm8814_vm1, %v6736_v2 }
 0x164   :  { %5862 = vmatprep.mubr.msk.f32.mxu0 %vm8814_vm1, %v7043_v28 }
 0x167   :  { %5863 = vmatmul.mubr.f32.gmra.mrb[6].mxu0 %v8950_v10 }
 0x168   :  { %5865 = vmatprep.mubr.msk.f32.mxu0 %vm8814_vm1, %v6746_v8 }
 0x16b   :  { %5866 = vmatmul.mubr.msk.f32.gmra.mrb[8].mxu0 %vm8814_vm1, %v6748_v9 }
 0x16c   :  { %5868 = vmatprep.mubr.msk.f32.mxu0 %vm8814_vm1, %v6756_v13 }
 0x16f   :  { %5869 = vmatmul.mubr.msk.f32.gmra.mrb[10].mxu0 %vm8814_vm1, %v6758_v14 }
 0x170   :  { %5871 = vmatprep.mubr.msk.f32.mxu0 %vm8814_vm1, %v6771_v19 }
 0x173   :  { %5872 = vmatmul.mubr.msk.f32.gmra.mrb[12].mxu0 %vm8814_vm1, %v6781_v24 }
 0x174   :  { %5874 = vmatprep.mubr.msk.f32.mxu0 %vm8814_vm1, %v7138_v31 }
 0x177   :  { %5875 = vmatmul.mubr.f32.gmra.mrb[14].mxu0 %v8950_v10 }
 0x178   :  { %5879 = vmatprep.mubr.msk.f32.mxu0 %vm8814_vm1, %v2048_v49 }
 0x17b   :  { %5880 = vmatmul.mubr.msk.f32.vlgmr.msra.gmra.mrb[0].mxu0 %vm8814_vm1, %v2049_v11 }
 0x17c   :  { %5882 = vmatprep.mubr.msk.f32.mxu0 %vm8814_vm1, %v2050_v46  ;;  %5904 = vmatpush3.msra.mxu0 %v2606_v1 }
 0x17f   :  { %5883 = vmatmul.mubr.msk.f32.gmra.mrb[2].mxu0 %vm8814_vm1, %v2051_v52 }
 0x180   :  { %5885 = vmatprep.mubr.msk.f32.mxu0 %vm8814_vm1, %v2052_v16 }
 0x183   :  { %5886 = vmatmul.mubr.msk.f32.gmra.mrb[4].mxu0 %vm8814_vm1, %v2053_v32 }
 0x184   :  { %5888 = vmatprep.mubr.msk.f32.mxu0 %vm8814_vm1, %v2054_v43 }
 0x187   :  { %5889 = vmatmul.mubr.msk.f32.gmra.mrb[6].mxu0 %vm8814_vm1, %v7526_v54 }
 0x188   :  { %5891 = vmatprep.mubr.msk.f32.mxu0 %vm8814_vm1, %v2056_v18 }
 0x18b   :  { %5892 = vmatmul.mubr.msk.f32.gmra.mrb[8].mxu0 %vm8814_vm1, %v2057_v47 }
 0x18c   :  { %5894 = vmatprep.mubr.msk.f32.mxu0 %vm8814_vm1, %v2058_v0 }
 0x18f   :  { %5895 = vmatmul.mubr.msk.f32.gmra.mrb[10].mxu0 %vm8814_vm1, %v2059_v53 }
 0x190   :  { %5897 = vmatprep.mubr.msk.f32.mxu0 %vm8814_vm1, %v2060_v4 }
 0x193   :  { %5898 = vmatmul.mubr.msk.f32.gmra.mrb[12].mxu0 %vm8814_vm1, %v2061_v25 }
 0x194   :  { %5900 = vmatprep.mubr.msk.f32.mxu0 %vm8814_vm1, %v2062_v40 }
 0x197   :  { %5901 = vmatmul.mubr.msk.f32.gmra.mrb[14].mxu0 %vm8814_vm1, %v7526_v54  ;;  %vm8956_vm1 = vcmask 1043456  }
 0x198   :  { %5905 = vmatprep.mubr.msk.f32.mxu0 %vm8831_vm11, %v8955_v26  ;;  %5929 = vmatprep.subr.msk.mxu1 %vm8956_vm1, %v7570_v30 }
 0x24e   :  { %v5881_v7 = vpop.f32.mrb[0].mxu0 }
 0x24f   :  { %v7580_v20 = vadd.f32 %v5881_v7, %v7575_v5  ;;  %v2179_v34 = vpop.f32.mrb[1].mxu0 }
 0x250   :  { %v7583_v39 = vadd.f32 %v7575_v5, %v2179_v34 }
 0x251   :  { %v2299_v48 = vsel %vm8831_vm11, %v7580_v20, 0.0 }
 0x252   :  { %v2298_v45 = vsel %vm8831_vm11, %v7583_v39, 0.0  ;;  %v5884_v61 = vpop.f32.mrb[2].mxu0 }
 0x253   :  { %v2300_v12 = vadd.f32 %v2299_v48, %v2298_v45  ;;  %v2189_v57 = vpop.f32.mrb[3].mxu0  ;;  %v2284_v38 = vadd.f32 %v5884_v61, %v7575_v5 }
 0x254   :  { %v2283_v41 = vadd.f32 %v7575_v5, %v2189_v57 }
 0x255   :  { %v2303_v16 = vsel %vm8831_vm11, %v2284_v38, 0.0 }
 0x256   :  { %v2301_v49 = vsel %vm8831_vm11, %v2283_v41, 0.0  ;;  %v5887_v11 = vpop.f32.mrb[4].mxu0 }
 0x257   :  { %v2302_v46 = vadd.f32 %v2301_v49, %v2300_v12  ;;  %v2199_v52 = vpop.f32.mrb[5].mxu0  ;;  %v2286_v22 = vadd.f32 %v5887_v11, %v7575_v5 }
 0x258   :  { %v2285_v32 = vadd.f32 %v7575_v5, %v2199_v52 }
 0x259   :  { %v2304_v43 = vadd.f32 %v2303_v16, %v2302_v46  ;;  %v2307_v4 = vsel %vm8831_vm11, %v2286_v22, 0.0 }
 0x25a   :  { %v2305_v18 = vsel %vm8831_vm11, %v2285_v32, 0.0  ;;  %v5890_v47 = vpop.f32.mrb[6].mxu0 }
 0x25b   :  { %v2306_v0 = vadd.f32 %v2305_v18, %v2304_v43  ;;  %v2209_v53 = vpop.f32.mrb[7].mxu0  ;;  %v2288_v25 = vadd.f32 %v5890_v47, %v7575_v5 }
 0x25c   :  { %v2287_v40 = vadd.f32 %v7575_v5, %v2209_v53 }
 0x25d   :  { %v2308_v26 = vadd.f32 %v2307_v4, %v2306_v0  ;;  %v2311_v61 = vsel %vm8831_vm11, %v2288_v25, 0.0 }
 0x25e   :  { %v2309_v1 = vsel %vm8831_vm11, %v2287_v40, 0.0  ;;  %v5893_v7 = vpop.f32.mrb[8].mxu0 }
 0x25f   :  { %v2310_v34 = vadd.f32 %v2309_v1, %v2308_v26  ;;  %v7601_v48 = vadd.f32 %v5893_v7, %v7575_v5  ;;  %v2219_v45 = vpop.f32.mrb[9].mxu0 }
 0x260   :  { %v7605_v12 = vadd.f32 %v7575_v5, %v2219_v45 }
 0x261   :  { %v2312_v57 = vadd.f32 %v2311_v61, %v2310_v34  ;;  %v2320_v49 = vsel %vm8831_vm11, %v7601_v48, 0.0 }
 0x262   :  { %v2319_v11 = vsel %vm8831_vm11, %v7605_v12, 0.0  ;;  %v5896_v46 = vpop.f32.mrb[10].mxu0 }
 0x263   :  { %v2313_v52 = vrot.slane %v2312_v57, 4  ;;  %v2321_v16 = vadd.f32 %v2320_v49, %v2319_v11  ;;  %v2229_v43 = vpop.f32.mrb[11].mxu0  ;;  %v7612_v18 = vadd.f32 %v5896_v46, %v7575_v5 }
 0x264   :  { %v7615_v47 = vadd.f32 %v7575_v5, %v2229_v43 }
 0x265   :  { %v2314_v0 = vadd.f32 %v2313_v52, %v2312_v57  ;;  %v2324_v34 = vsel %vm8831_vm11, %v7612_v18, 0.0 }
 0x266   :  { %v2322_v53 = vsel %vm8831_vm11, %v7615_v47, 0.0  ;;  %v5899_v4 = vpop.f32.mrb[12].mxu0 }
 0x267   :  { %v2315_v26 = vrot.slane %v2314_v0, 2  ;;  %v2323_v1 = vadd.f32 %v2322_v53, %v2321_v16  ;;  %v2239_v7 = vpop.f32.mrb[13].mxu0  ;;  %v7622_v45 = vadd.f32 %v5899_v4, %v7575_v5 }
 0x268   :  { %v7625_v61 = vadd.f32 %v7575_v5, %v2239_v7 }
 0x269   :  { %v2316_v49 = vadd.f32 %v2315_v26, %v2314_v0  ;;  %v2325_v11 = vadd.f32 %v2324_v34, %v2323_v1  ;;  %v2328_v16 = vsel %vm8831_vm11, %v7622_v45, 0.0 }
 0x26a   :  { %v2326_v57 = vsel %vm8831_vm11, %v7625_v61, 0.0  ;;  %v5902_v46 = vpop.f32.mrb[14].mxu0 }
 0x26b   :  { %v2317_v52 = vrot.slane %v2316_v49, 1  ;;  %v2327_v43 = vadd.f32 %v2326_v57, %v2325_v11  ;;  %v2249_v54 = vpop.f32.mrb[15].mxu0  ;;  %v2296_v0 = vadd.f32 %v5902_v46, %v7575_v5 }
 0x26c   :  { %v2295_v53 = vadd.f32 %v7575_v5, %v2249_v54 }
 0x26d   :  { %v2318_v27 = vadd.f32 %v2317_v52, %v2316_v49  ;;  %v2329_v4 = vadd.f32 %v2328_v16, %v2327_v43 }
 0x26e   :  { %v2330_v36 = vsel %vm8831_vm11, %v2295_v53, 0.0 }
 0x26f   :  { %v2341_v7 = vmul.f32 0.015625, %v2318_v27  ;;  %v2331_v44 = vadd.f32 %v2330_v36, %v2329_v4 }
 0x271   :  { %v7635_v26 = vsub.f32 %v7583_v39, %v2341_v7  ;;  %v7638_v1 = vsub.f32 %v7580_v20, %v2341_v7  ;;  %v7640_v34 = vsub.f32 %v2283_v41, %v2341_v7  ;;  %v7642_v11 = vsub.f32 %v2284_v38, %v2341_v7 }
 0x272   :  { %v7644_v57 = vsub.f32 %v2285_v32, %v2341_v7  ;;  %v7646_v54 = vsub.f32 %v2286_v22, %v2341_v7  ;;  %v7648_v49 = vsub.f32 %v2287_v40, %v2341_v7  ;;  %v7650_v27 = vsub.f32 %v2288_v25, %v2341_v7 }
 0x273   :  { %v2359_v36 = vmul.f32 %v7635_v26, %v7635_v26  ;;  %v2360_v5 = vmul.f32 %v7638_v1, %v7638_v1  ;;  %v2361_v20 = vmul.f32 %v7640_v34, %v7640_v34  ;;  %v2362_v39 = vmul.f32 %v7642_v11, %v7642_v11 }
 0x274   :  { %v2332_v32 = vsel %vm8831_vm11, %v2296_v0, 0.0  ;;  %v2363_v25 = vmul.f32 %v7644_v57, %v7644_v57  ;;  %v2364_v43 = vmul.f32 %v7646_v54, %v7646_v54  ;;  %v2366_v55 = vmul.f32 %v7650_v27, %v7650_v27 }
 0x275   :  { %v2375_v38 = vsel %vm8831_vm11, %v2359_v36, 0.0  ;;  %v2376_v41 = vsel %vm8831_vm11, %v2360_v5, 0.0  ;;  %v2378_v40 = vsel %vm8831_vm11, %v2361_v20, 0.0  ;;  %v2333_v46 = vadd.f32 %v2332_v32, %v2331_v44 }
 0x276   :  { %v2377_v22 = vadd.f32 %v2376_v41, %v2375_v38  ;;  %v2380_v16 = vsel %vm8831_vm11, %v2362_v39, 0.0  ;;  %v2365_v36 = vmul.f32 %v7648_v49, %v7648_v49  ;;  %v2382_v5 = vsel %vm8831_vm11, %v2363_v25, 0.0 }
 0x277   :  { %v2334_v4 = vrot.slane %v2333_v46, 4  ;;  %v2384_v44 = vsel %vm8831_vm11, %v2364_v43, 0.0 }
 0x278   :  { %v2379_v52 = vadd.f32 %v2378_v40, %v2377_v22  ;;  %v2386_v32 = vsel %vm8831_vm11, %v2365_v36, 0.0 }
 0x279   :  { %v2335_v38 = vadd.f32 %v2334_v4, %v2333_v46 }
 0x27a   :  { %v2381_v7 = vadd.f32 %v2380_v16, %v2379_v52  ;;  %v2388_v52 = vsel %vm8831_vm11, %v2366_v55, 0.0 }
 0x27b   :  { %v2336_v20 = vrot.slane %v2335_v38, 2 }
 0x27c   :  { %v2383_v41 = vadd.f32 %v2382_v5, %v2381_v7 }
 0x27d   :  { %v2337_v40 = vadd.f32 %v2336_v20, %v2335_v38 }
 0x27e   :  { %v2385_v22 = vadd.f32 %v2384_v44, %v2383_v41 }
 0x27f   :  { %v2338_v16 = vrot.slane %v2337_v40, 1 }
 0x280   :  { %v2387_v39 = vadd.f32 %v2386_v32, %v2385_v22 }
 0x281   :  { %v2339_v35 = vadd.f32 %v2338_v16, %v2337_v40 }
 0x282   :  { %v2389_v50 = vadd.f32 %v2388_v52, %v2387_v39 }
 0x283   :  { %v2342_v25 = vmul.f32 0.015625, %v2339_v35 }
 0x284   :  { %v2390_v23 = vrot.slane %v2389_v50, 4 }
 0x285   :  { %v7678_v4 = vsub.f32 %v7605_v12, %v2342_v25  ;;  %v7681_v7 = vsub.f32 %v7601_v48, %v2342_v25  ;;  %v7684_v43 = vsub.f32 %v7615_v47, %v2342_v25  ;;  %v7687_v36 = vsub.f32 %v7612_v18, %v2342_v25 }
 0x286   :  { %v2391_v46 = vadd.f32 %v2390_v23, %v2389_v50  ;;  %v7690_v55 = vsub.f32 %v7625_v61, %v2342_v25  ;;  %v7693_v38 = vsub.f32 %v7622_v45, %v2342_v25  ;;  %v7695_v23 = vsub.f32 %v2295_v53, %v2342_v25 }
 0x287   :  { %v7697_v35 = vsub.f32 %v2296_v0, %v2342_v25  ;;  %v2367_v50 = vmul.f32 %v7678_v4, %v7678_v4  ;;  %v2368_v48 = vmul.f32 %v7681_v7, %v7681_v7  ;;  %v2369_v12 = vmul.f32 %v7684_v43, %v7684_v43 }
 0x288   :  { %v2392_v5 = vrot.slane %v2391_v46, 2  ;;  %v2370_v47 = vmul.f32 %v7687_v36, %v7687_v36  ;;  %v2371_v41 = vmul.f32 %v7690_v55, %v7690_v55  ;;  %v2372_v32 = vmul.f32 %v7693_v38, %v7693_v38 }
 0x289   :  { %v2396_v45 = vsel %vm8831_vm11, %v2367_v50, 0.0  ;;  %v2397_v61 = vsel %vm8831_vm11, %v2368_v48, 0.0  ;;  %v2399_v44 = vsel %vm8831_vm11, %v2369_v12, 0.0  ;;  %v2373_v16 = vmul.f32 %v7695_v23, %v7695_v23 }
 0x28a   :  { %v2393_v18 = vadd.f32 %v2392_v5, %v2391_v46  ;;  %v2398_v0 = vadd.f32 %v2397_v61, %v2396_v45  ;;  %v2401_v40 = vsel %vm8831_vm11, %v2370_v47, 0.0  ;;  %v2403_v25 = vsel %vm8831_vm11, %v2371_v41, 0.0 }
 0x28b   :  { %v2374_v50 = vmul.f32 %v7697_v35, %v7697_v35  ;;  %v2405_v48 = vsel %vm8831_vm11, %v2372_v32, 0.0 }
 0x28c   :  { %v2394_v53 = vrot.slane %v2393_v18, 1  ;;  %v2400_v22 = vadd.f32 %v2399_v44, %v2398_v0 }
 0x28d   :  { %v2409_v47 = vsel %vm8831_vm11, %v2374_v50, 0.0 }
 0x28e   :  { %v2395_v20 = vadd.f32 %v2394_v53, %v2393_v18  ;;  %v2402_v52 = vadd.f32 %v2401_v40, %v2400_v22  ;;  %v2407_v18 = vsel %vm8831_vm11, %v2373_v16, 0.0 }
 0x290   :  { %v2417_v39 = vmul.f32 0.015625, %v2395_v20  ;;  %v2404_v5 = vadd.f32 %v2403_v25, %v2402_v52 }
 0x292   :  { %v2419_v46 = vadd.f32 1e-05, %v2417_v39  ;;  %v2406_v12 = vadd.f32 %v2405_v48, %v2404_v5 }
 0x294   :  { %6439 = vrsqrt.f32 %v2419_v46  ;;  %v2408_v45 = vadd.f32 %v2407_v18, %v2406_v12 }
 0x296   :  { %v2410_v61 = vadd.f32 %v2409_v47, %v2408_v45 }
 0x298   :  { %v2411_v53 = vrot.slane %v2410_v61, 4 }
 0x29a   :  { %v2412_v0 = vadd.f32 %v2411_v53, %v2410_v61 }
 0x29c   :  { %v2413_v20 = vrot.slane %v2412_v0, 2 }
 0x29e   :  { %v6440_v44 = vpop.eup %6439  ;;  %v2414_v52 = vadd.f32 %v2413_v20, %v2412_v0 }
 0x29f   :  { %v7724_v41 = vmul.f32 %v6440_v44, %v7642_v11  ;;  %v7727_v22 = vmul.f32 %v6440_v44, %v7644_v57  ;;  %v7730_v32 = vmul.f32 %v6440_v44, %v7646_v54  ;;  %v7733_v40 = vmul.f32 %v6440_v44, %v7648_v49 }
 0x2a0   :  { %v7736_v39 = vmul.f32 %v6440_v44, %v7650_v27  ;;  %v2423_v16 = vmul.f32 %v6440_v44, %v7635_v26  ;;  %v2424_v25 = vmul.f32 %v6440_v44, %v7638_v1  ;;  %v2415_v5 = vrot.slane %v2414_v52, 1 }
 0x2a1   :  { %v2459_v11 = vmin.f32 %v7727_v22, 0.0  ;;  %v2460_v46 = vmin.f32 %v7730_v32, 0.0  ;;  %v2461_v57 = vmin.f32 %v7733_v40, 0.0  ;;  %v2425_v49 = vmul.f32 %v6440_v44, %v7640_v34 }
 0x2a2   :  { %v2455_v54 = vmin.f32 %v2423_v16, 0.0  ;;  %v2416_v27 = vadd.f32 %v2415_v5, %v2414_v52  ;;  %v2456_v45 = vmin.f32 %v2424_v25, 0.0  ;;  %v2458_v47 = vmin.f32 %v7724_v41, 0.0 }
 0x2a3   :  { %v2481_v50 = vmul.f32 1.442695, %v2460_v46  ;;  %v2483_v48 = vmul.f32 1.442695, %v2461_v57  ;;  %v2479_v12 = vmul.f32 1.442695, %v2459_v11 }
 0x2a4   :  { %v2471_v18 = vmul.f32 1.442695, %v2455_v54  ;;  %v2457_v26 = vmin.f32 %v2425_v49, 0.0  ;;  %v2418_v1 = vmul.f32 0.015625, %v2416_v27  ;;  %v2473_v61 = vmul.f32 1.442695, %v2456_v45 }
 0x2a5   :  { %6441 = vpow2.f32 %v2481_v50  ;;  %v2477_v20 = vmul.f32 1.442695, %v2458_v47  ;;  %vm2439_vm1 = vcmp.gt.f32.partialorder %v2423_v16, 0.0  ;;  %vm2440_vm11 = vcmp.gt.f32.partialorder %v2424_v25, 0.0 }
 0x2a6   :  { %6443 = vpow2.f32 %v2483_v48  ;;  %v2475_v53 = vmul.f32 1.442695, %v2457_v26  ;;  %v2420_v0 = vadd.f32 1e-05, %v2418_v1  ;;  %vm2443_vm2 = vcmp.gt.f32.partialorder %v7727_v22, 0.0 }
 0x2a7   :  { %6445 = vpow2.f32 %v2471_v18  ;;  %vm2444_vm3 = vcmp.gt.f32.partialorder %v7730_v32, 0.0 }
 0x2a8   :  { %6447 = vpow2.f32 %v2479_v12 }
 0x2a9   :  { %6449 = vpow2.f32 %v2473_v61 }
 0x2aa   :  { %6451 = vrsqrt.f32 %v2420_v0 }
 0x2ab   :  { %6453 = vpow2.f32 %v2475_v53 }
 0x2ac   :  { %6455 = vpow2.f32 %v2477_v20 }
 0x2af   :  { %v6442_v34 = vpop.eup %6441 }
 0x2b0   :  { %v6444_v44 = vpop.eup %6443  ;;  %v5153_v5 = vadd.f32 -1.0, %v6442_v34 }
 0x2b1   :  { %v6446_v52 = vpop.eup %6445  ;;  %v5154_v50 = vadd.f32 -1.0, %v6444_v44 }
 0x2b2   :  { %v6448_v11 = vpop.eup %6447  ;;  %v5148_v46 = vadd.f32 -1.0, %v6446_v52  ;;  %v7781_v34 = vsel %vm2444_vm3, %v7730_v32, %v5153_v5 }
 0x2b3   :  { %v6450_v57 = vpop.eup %6449  ;;  %v5152_v12 = vadd.f32 -1.0, %v6448_v11 }
 0x2b4   :  { %v6452_v54 = vpop.eup %6451  ;;  %v7745_v48 = vsel %vm2439_vm1, %v2423_v16, %v5148_v46  ;;  %v5149_v27 = vadd.f32 -1.0, %v6450_v57  ;;  %vm2441_vm1 = vcmp.gt.f32.partialorder %v2425_v49, 0.0 }
 0x2b5   :  { %v6454_v18 = vpop.eup %6453  ;;  %v7748_v45 = vmul.f32 %v6452_v54, %v7687_v36  ;;  %v7751_v26 = vmul.f32 %v6452_v54, %v7690_v55  ;;  %v7754_v1 = vmul.f32 %v6452_v54, %v7693_v38  ;;  %v7757_v47 = vmul.f32 %v6452_v54, %v7695_v23 }
 0x2b6   :  { %v7760_v61 = vmul.f32 %v6452_v54, %v7697_v35  ;;  %v2550_v16 = vrot.slane %v7745_v48, 7  ;;  %v7763_v53 = vsel %vm2440_vm11, %v2424_v25, %v5149_v27  ;;  %v5150_v0 = vadd.f32 -1.0, %v6454_v18  ;;  %v6456_v55 = vpop.eup %6455 }
 0x2b7   :  { %v2468_v36 = vmin.f32 %v7754_v1, 0.0  ;;  %v2552_v23 = vrot.slane %v7763_v53, 7  ;;  %vm2445_vm11 = vcmp.gt.f32.partialorder %v7733_v40, 0.0  ;;  %v2469_v35 = vmin.f32 %v7757_v47, 0.0 }
 0x2b8   :  { %v7769_v38 = vsel %vm8957_vm10, %v8944_v29, %v2550_v16  ;;  %v7772_v20 = vsel %vm2441_vm1, %v2425_v49, %v5150_v0  ;;  %v7778_v25 = vsel %vm2443_vm2, %v7727_v22, %v5152_v12  ;;  %v7784_v44 = vsel %vm2445_vm11, %v7733_v40, %v5154_v50  ;;  %vm8960_vm1 = vmmov %vm8957_vm10 }
 0x2b9   :  { %v2592_v49 = vsel %vm6812_vm4, %v7769_v38, 0.0  ;;  %v7790_v52 = vsel %vm8957_vm10, %v2550_v16, %v2552_v23  ;;  %v2554_v11 = vrot.slane %v7772_v20, 7  ;;  %v2467_v46 = vmin.f32 %v7751_v26, 0.0 }
 0x2ba   :  { %v2497_v57 = vmul.f32 1.442695, %v2468_v36  ;;  %vm8958_vm2 = vcmask 64512   ;;  %v2593_v22 = vsel %vm6826_vm5, %v7790_v52, 0.0  ;;  %v5151_v32 = vadd.f32 -1.0, %v6456_v55 }
 0x2bb   :  { %5906 = vmatmul.mubr.msk.f32.vlgmr.msra.gmra.mrb[16].mxu0 %vm8958_vm2, %v2592_v49  ;;  %vm8959_vm3 = vmmov %vm8958_vm2  ;;  %v7800_v40 = vsel %vm8960_vm1, %v2552_v23, %v2554_v11  ;;  %vm2442_vm11 = vcmp.gt.f32.partialorder %v7724_v41, 0.0  ;;  %v2558_v5 = vrot.slane %v7778_v25, 7  ;;  %v2560_v50 = vrot.slane %v7781_v34, 7 }
 0x2bc   :  { %5908 = vmatprep.mubr.msk.f32.mxu0 %vm8959_vm3, %v2593_v22  ;;  %v2499_v27 = vmul.f32 1.442695, %v2469_v35  ;;  %v7806_v12 = vsel %vm2442_vm11, %v7724_v41, %v5151_v32  ;;  %v8837_v18 = vrot.slane %v7784_v44, 7  ;;  %v2594_v16 = vsel %vm6842_vm6, %v7800_v40, 0.0  ;;  %vm8961_vm10 = vmmov %vm8958_vm2 }
 0x2bd   :  { %v2556_v0 = vrot.slane %v7806_v12, 7  ;;  %v2431_v36 = vmul.f32 %v6452_v54, %v7678_v4  ;;  %v2432_v55 = vmul.f32 %v6452_v54, %v7681_v7  ;;  %v2495_v23 = vmul.f32 1.442695, %v2467_v46  ;;  %vm8962_vm2 = vmmov %vm8960_vm1 }
 0x2be   :  { %6457 = vpow2.f32 %v2497_v57  ;;  %v2433_v35 = vmul.f32 %v6452_v54, %v7684_v43  ;;  %v2466_v41 = vmin.f32 %v7748_v45, 0.0  ;;  %vm8964_vm3 = vmmov %vm8960_vm1  ;;  %v7825_v32 = vsel %vm8960_vm1, %v2558_v5, %v2560_v50 }
 0x2bf   :  { %5909 = vmatmul.mubr.msk.f32.gmra.mrb[18].mxu0 %vm8961_vm10, %v2594_v16  ;;  %v7819_v49 = vsel %vm8962_vm2, %v2554_v11, %v2556_v0  ;;  %v7822_v22 = vsel %vm8964_vm3, %v2556_v0, %v2558_v5  ;;  %8966 = vst [vmem:[#allocation15_spill] sm:$0xff] %v7825_v32  ;;  %v2463_v4 = vmin.f32 %v2431_v36, 0.0  ;;  %6459 = vpow2.f32 %v2499_v27  ;;  %vm8967_vm11 = vmmov %vm8961_vm10 }
 0x2c0   :  { %8963 = vst [vmem:[#allocation7_spill] sm:$0xff] %v7819_v49  ;;  %8965 = vst [vmem:[#allocation16_spill] sm:$0xff] %v7822_v22  ;;  %v2595_v7 = vsel %vm6868_vm7, %v7819_v49, 0.0  ;;  %v2464_v46 = vmin.f32 %v2432_v55, 0.0  ;;  %v2596_v43 = vsel %vm6884_vm8, %v7822_v22, 0.0  ;;  %v2465_v57 = vmin.f32 %v2433_v35, 0.0 }
 0x2c1   :  { %5911 = vmatprep.mubr.msk.f32.mxu0 %vm8967_vm11, %v2595_v7  ;;  %vm8968_vm10 = vmmov %vm8960_vm1  ;;  %v2487_v11 = vmul.f32 1.442695, %v2463_v4  ;;  %v2597_v5 = vsel %vm8943_vm0, %v7825_v32, 0.0  ;;  %v2493_v16 = vmul.f32 1.442695, %v2466_v41  ;;  %6461 = vpow2.f32 %v2495_v23 }
 0x2c2   :  { %v7837_v54 = vsel %vm8968_vm10, %v2560_v50, %v8837_v18  ;;  %vm8970_vm2 = vmmov %vm8967_vm11  ;;  %v2489_v27 = vmul.f32 1.442695, %v2464_v46  ;;  %v2491_v0 = vmul.f32 1.442695, %v2465_v57  ;;  %vm2447_vm10 = vcmp.gt.f32.partialorder %v2431_v36, 0.0 }
 0x2c3   :  { %8969 = vst [vmem:[#allocation6_spill] sm:$0xff] %v7837_v54  ;;  %5912 = vmatmul.mubr.msk.f32.gmra.mrb[20].mxu0 %vm8970_vm2, %v2596_v43  ;;  %vm8971_vm3 = vmmov %vm8970_vm2  ;;  %6463 = vpow2.f32 %v2487_v11  ;;  %v2598_v50 = vsel %vm8947_vm9, %v7837_v54, 0.0  ;;  %vm2452_vm11 = vcmp.gt.f32.partialorder %v7754_v1, 0.0 }
 0x2c4   :  { %5914 = vmatprep.mubr.msk.f32.mxu0 %vm8971_vm3, %v2597_v5  ;;  %6465 = vpow2.f32 %v2489_v27  ;;  %vm8972_vm1 = vmmov %vm8970_vm2  ;;  %vm2448_vm2 = vcmp.gt.f32.partialorder %v2432_v55, 0.0  ;;  %vm2449_vm3 = vcmp.gt.f32.partialorder %v2433_v35, 0.0 }
 0x2c5   :  { %6467 = vpow2.f32 %v2491_v0 }
 0x2c6   :  { %6469 = vpow2.f32 %v2493_v16 }
 0x2c7   :  { %5915 = vmatmul.mubr.msk.f32.gmra.mrb[22].mxu0 %vm8972_vm1, %v2598_v50  ;;  %vm2451_vm1 = vcmp.gt.f32.partialorder %v7751_v26, 0.0 }
 0x2c8   :  { %v6458_v4 = vpop.eup %6457 }
 0x2c9   :  { %v6460_v7 = vpop.eup %6459  ;;  %v5161_v5 = vadd.f32 -1.0, %v6458_v4 }
 0x2cb   :  { %v6462_v43 = vpop.eup %6461 }
 0x2cc   :  { %v5160_v23 = vadd.f32 -1.0, %v6462_v43  ;;  %v5162_v43 = vadd.f32 -1.0, %v6460_v7  ;;  %v7873_v7 = vsel %vm2452_vm11, %v7754_v1, %v5161_v5 }
 0x2cd   :  { %v6464_v18 = vpop.eup %6463 }
 0x2ce   :  { %v6466_v46 = vpop.eup %6465  ;;  %v5156_v41 = vadd.f32 -1.0, %v6464_v18  ;;  %v7860_v4 = vsel %vm2451_vm1, %v7751_v26, %v5160_v23  ;;  %v5197_v23 = vld [vmem:[%s8769_s4 + $0x8] sm:$0xff]  ;;  %vm2453_vm1 = vcmp.gt.f32.partialorder %v7757_v47, 0.0 }
 0x2cf   :  { %v6468_v11 = vpop.eup %6467  ;;  %v5157_v57 = vadd.f32 -1.0, %v6466_v46 }
 0x2d0   :  { %v6470_v27 = vpop.eup %6469  ;;  %v7849_v54 = vsel %vm2447_vm10, %v2431_v36, %v5156_v41  ;;  %v5158_v0 = vadd.f32 -1.0, %v6468_v11  ;;  %vm8973_vm10 = vcmask 1040384   ;;  %v2572_v11 = vrot.slane %v7860_v4, 7 }
 0x2d1   :  { %v2564_v16 = vrot.slane %v7849_v54, 7  ;;  %v7853_v50 = vsel %vm2448_vm2, %v2432_v55, %v5157_v57  ;;  %v5159_v18 = vadd.f32 -1.0, %v6470_v27  ;;  %vm8974_vm2 = vcmp.gt.f32.partialorder %v7748_v45, 0.0 }
 0x2d2   :  { %v2566_v32 = vrot.slane %v7853_v50, 7  ;;  %v7857_v22 = vsel %vm2449_vm3, %v2433_v35, %v5158_v0  ;;  %vm8975_vm3 = vmmov %vm8973_vm10  ;;  %v7895_v57 = vsel %vm2453_vm1, %v7757_v47, %v5162_v43  ;;  %v2574_v27 = vrot.slane %v7873_v7, 7 }
 0x2d3   :  { %v7864_v36 = vsel %vm8973_vm10, %v8944_v29, %v2564_v16  ;;  %v2568_v46 = vrot.slane %v7857_v22, 7  ;;  %v7870_v55 = vsel %vm8974_vm2, %v7748_v45, %v5159_v18  ;;  %vm8976_vm10 = vcmask 64512   ;;  %vm8977_vm11 = vmmov %vm8975_vm3 }
 0x2d4   :  { %v2599_v35 = vsel %vm6812_vm4, %v7864_v36, 0.0  ;;  %v7879_v26 = vsel %vm8975_vm3, %v2564_v16, %v2566_v32  ;;  %v2570_v41 = vrot.slane %v7870_v55, 7  ;;  %vm8978_vm2 = vcmask 1043456   ;;  %vm8979_vm3 = vmmov %vm8976_vm10 }
 0x2d5   :  { %5918 = vmatmul.mubr.msk.f32.vlgmr.msra.gmra.mrb[0].mxu1 %vm8976_vm10, %v2599_v35  ;;  %v2600_v45 = vsel %vm6826_vm5, %v7879_v26, 0.0  ;;  %v7891_v1 = vsel %vm8977_vm11, %v2566_v32, %v2568_v46  ;;  %vm8980_vm4 = vmmov %vm8977_vm11  ;;  %v8849_v0 = vrot.slane %v7895_v57, 7 }
 0x2d6   :  { %5930 = vmatpush3.msk.msra.mxu1 %vm8978_vm2, %v7570_v30  ;;  %5920 = vmatprep.mubr.msk.f32.mxu1 %vm8979_vm3, %v2600_v45  ;;  %v7901_v5 = vsel %vm8980_vm4, %v2568_v46, %v2570_v41  ;;  %v2601_v32 = vsel %vm6842_vm6, %v7891_v1, 0.0  ;;  %vm8981_vm10 = vmmov %vm8979_vm3  ;;  %v5212_v45 = vld [vmem:[%s8769_s4 + $0x10] sm:$0xff] }
 0x2d7   :  { %5955 = vmatprep.subr.mxu1 %v5197_v23  ;;  %v2602_v47 = vsel %vm6868_vm7, %v7901_v5, 0.0  ;;  %vm8982_vm1 = vmmov %vm8980_vm4 }
 0x2d8   :  { %v7912_v30 = vsel %vm8982_vm1, %v2570_v41, %v2572_v11  ;;  %vm8983_vm4 = vmmov %vm8979_vm3  ;;  %v8989_v41 = vld [vmem:[#allocation2_spill] sm:$0xff] }
 0x2d9   :  { %5921 = vmatmul.mubr.msk.f32.gmra.mrb[2].mxu1 %vm8981_vm10, %v2601_v32  ;;  %vm8984_vm11 = vmmov %vm8982_vm1  ;;  %v2603_v18 = vsel %vm6884_vm8, %v7912_v30, 0.0 }
 0x2da   :  { %5923 = vmatprep.mubr.msk.f32.mxu1 %vm8983_vm4, %v2602_v47  ;;  %v7917_v16 = vsel %vm8984_vm11, %v2572_v11, %v2574_v27  ;;  %vm8985_vm2 = vmmov %vm8979_vm3  ;;  %vm8990_vm4 = vcmask 31744   ;;  %v3147_v11 = vrot.slane %v7778_v25, 1  ;;  %v8029_v47 = vld [vmem:[%s8769_s4 + $0x20] sm:$0xff] }
 0x2db   :  { %v2604_v43 = vsel %vm8943_vm0, %v7917_v16, 0.0  ;;  %vm8986_vm3 = vmmov %vm8982_vm1 }
 0x2dc   :  { %v7929_v46 = vsel %vm8986_vm3, %v2574_v27, %v8849_v0  ;;  %vm8987_vm10 = vmmov %vm8985_vm2  ;;  %v3163_v0 = vrot.slane %v7860_v4, 1 }
 0x2dd   :  { %5924 = vmatmul.mubr.msk.f32.gmra.mrb[4].mxu1 %vm8985_vm2, %v2603_v18  ;;  %v2605_v35 = vsel %vm8947_vm9, %v7929_v46, 0.0  ;;  %vm8988_vm1 = vmmov %vm8985_vm2 }
 0x2de   :  { %5926 = vmatprep.mubr.msk.f32.mxu1 %vm8987_vm10, %v2604_v43  ;;  %vm8991_vm11 = vmmov %vm8990_vm4 }
 0x2df   :  { %vm8992_vm2 = vmmov %vm8990_vm4 }
 0x2e0   :  { %vm8993_vm3 = vmmov %vm8992_vm2 }
 0x2e1   :  { %5927 = vmatmul.mubr.msk.f32.gmra.mrb[6].mxu1 %vm8988_vm1, %v2605_v35  ;;  %vm8994_vm10 = vmmov %vm8992_vm2 }
 0x2e2   :  { %5931 = vmatprep.mubr.msk.f32.mxu1 %vm8990_vm4, %v8989_v41  ;;  %vm8995_vm1 = vmmov %vm8992_vm2  ;;  %v3149_v41 = vrot.slane %v7781_v34, 1 }
 0x2e3   :  { %vm8996_vm4 = vmmov %vm8995_vm1 }
 0x2e4   :  { %vm8997_vm9 = vmmov %vm8995_vm1 }
 0x2e5   :  { %5932 = vmatmul.mubr.msk.f32.vlgmr.msra.gmra.mrb[8].mxu1 %vm8991_vm11, %v6715_v58  ;;  %v8998_v58 = vld [vmem:[#allocation3_spill] sm:$0xff]  ;;  %vm8999_vm11 = vmmov %vm8995_vm1 }
 0x2e6   :  { %5956 = vmatpush3.msra.mxu1 %v5197_v23  ;;  %5934 = vmatprep.mubr.msk.f32.mxu1 %vm8992_vm2, %v6711_v56  ;;  %vm9000_vm2 = vmmov %vm8995_vm1  ;;  %v5229_v56 = vld [vmem:[%s8769_s4 + $0x18] sm:$0xff] }
 0x2e7   :  { %5981 = vmatprep.subr.mxu1 %v5212_v45 }
 0x2e9   :  { %5935 = vmatmul.mubr.msk.f32.gmra.mrb[10].mxu1 %vm8993_vm3, %v6720_v59  ;;  %vm9001_vm3 = vmmov %vm8995_vm1  ;;  %v2462_v59 = vmin.f32 %v7736_v39, 0.0 }
 0x2ea   :  { %5937 = vmatprep.mubr.msk.f32.mxu1 %vm8994_vm10, %v6727_v62  ;;  %vm9002_vm10 = vmmov %vm8995_vm1 }
 0x2eb   :  { %v2485_v62 = vmul.f32 1.442695, %v2462_v59 }
 0x2ed   :  { %5938 = vmatmul.mubr.msk.f32.gmra.mrb[12].mxu1 %vm8995_vm1, %v6732_v63  ;;  %6471 = vpow2.f32 %v2485_v62  ;;  %v3139_v63 = vrot.slane %v7745_v48, 1  ;;  %v9027_v62 = vld [vmem:[#allocation9_spill] sm:$0xff] }
 0x2ee   :  { %5940 = vmatprep.mubr.msk.f32.mxu1 %vm8996_vm4, %v6736_v2  ;;  %vm9003_vm4 = vmmov %vm8995_vm1  ;;  %v2470_v2 = vmin.f32 %v7760_v61, 0.0 }
 0x2f1   :  { %5941 = vmatmul.mubr.msk.f32.gmra.mrb[14].mxu1 %vm8997_vm9, %v7043_v28  ;;  %vm9004_vm9 = vmmov %vm8995_vm1 }
 0x2f2   :  { %5943 = vmatprep.mubr.msk.f32.mxu1 %vm8999_vm11, %v8998_v58  ;;  %vm9005_vm11 = vmmov %vm8995_vm1  ;;  %v3151_v58 = vrot.slane %v7784_v44, 1 }
 0x2f5   :  { %5944 = vmatmul.mubr.msk.f32.gmra.mrb[0].mxu1 %vm9000_vm2, %v6746_v8  ;;  %vm9006_vm2 = vcmask 64512   ;;  %v3141_v8 = vrot.slane %v7763_v53, 1 }
 0x2f6   :  { %5946 = vmatprep.mubr.msk.f32.mxu1 %vm9001_vm3, %v6748_v9  ;;  %vm9007_vm3 = vmmov %vm9006_vm2 }
 0x2f9   :  { %5947 = vmatmul.mubr.msk.f32.gmra.mrb[2].mxu1 %vm9002_vm10, %v6756_v13  ;;  %vm9008_vm10 = vmmov %vm9006_vm2  ;;  %v3143_v13 = vrot.slane %v7772_v20, 1 }
 0x2fa   :  { %5949 = vmatprep.mubr.msk.f32.mxu1 %vm8995_vm1, %v6758_v14  ;;  %vm9009_vm1 = vmmov %vm9006_vm2  ;;  %v6472_v14 = vpop.eup %6471 }
 0x2fb   :  { %v5155_v27 = vadd.f32 -1.0, %v6472_v14  ;;  %v9034_v14 = vld [vmem:[#allocation11_spill] sm:$0xff] }
 0x2fd   :  { %5950 = vmatmul.mubr.msk.f32.gmra.mrb[4].mxu1 %vm9003_vm4, %v6771_v19  ;;  %vm9010_vm4 = vmmov %vm9009_vm1  ;;  %v2501_v19 = vmul.f32 1.442695, %v2470_v2 }
 0x2fe   :  { %5952 = vmatprep.mubr.msk.f32.mxu1 %vm9004_vm9, %v6781_v24  ;;  %vm9011_vm9 = vmmov %vm9009_vm1 }
 0x2ff   :  { %6473 = vpow2.f32 %v2501_v19 }
 0x301   :  { %5953 = vmatmul.mubr.msk.f32.gmra.mrb[6].mxu1 %vm9005_vm11, %v7138_v31  ;;  %vm9012_vm11 = vmmov %vm9009_vm1  ;;  %v3145_v31 = vrot.slane %v7806_v12, 1 }
 0x302   :  { %5957 = vmatprep.mubr.f32.mxu1 %v8950_v10 }
 0x305   :  { %5958 = vmatmul.mubr.msk.f32.vlgmr.msra.gmra.mrb[8].mxu1 %vm9006_vm2, %v7745_v48  ;;  %vm9013_vm2 = vmmov %vm9009_vm1 }
 0x306   :  { %5982 = vmatpush3.msra.mxu1 %v5212_v45  ;;  %5960 = vmatprep.mubr.msk.f32.mxu1 %vm9007_vm3, %v7763_v53  ;;  %vm9014_vm3 = vmmov %vm9009_vm1 }
 0x307   :  { %6007 = vmatprep.subr.mxu1 %v5229_v56 }
 0x309   :  { %5961 = vmatmul.mubr.msk.f32.gmra.mrb[10].mxu1 %vm9008_vm10, %v7772_v20  ;;  %vm9015_vm10 = vmmov %vm9009_vm1 }
 0x30a   :  { %5963 = vmatprep.mubr.msk.f32.mxu1 %vm9009_vm1, %v7806_v12 }
 0x30d   :  { %5964 = vmatmul.mubr.msk.f32.gmra.mrb[12].mxu1 %vm9010_vm4, %v7778_v25  ;;  %vm9016_vm4 = vmmov %vm9009_vm1 }
 0x30e   :  { %5966 = vmatprep.mubr.msk.f32.mxu1 %vm9011_vm9, %v7781_v34  ;;  %vm9017_vm9 = vmmov %vm9009_vm1 }
 0x311   :  { %5967 = vmatmul.mubr.msk.f32.gmra.mrb[14].mxu1 %vm9012_vm11, %v7784_v44  ;;  %vm9018_vm11 = vcmask 1046528  }
 0x312   :  { %5969 = vmatprep.mubr.f32.mxu1 %v8950_v10  ;;  %v3140_v9 = vsel %vm9018_vm11, %v8935_v21, %v3139_v63 }
 0x313   :  { %v3187_v24 = vsel %vm6993_vm12, %v3140_v9, 0.0 }
 0x315   :  { %5970 = vmatmul.mubr.msk.f32.gmra.mrb[0].mxu1 %vm9013_vm2, %v7849_v54  ;;  %vm9019_vm2 = vmmov %vm9009_vm1 }
 0x316   :  { %5972 = vmatprep.mubr.msk.f32.mxu1 %vm9014_vm3, %v7853_v50  ;;  %vm9020_vm3 = vmmov %vm9018_vm11 }
 0x317   :  { %v8014_v28 = vsel %vm9020_vm3, %v3139_v63, %v3141_v8 }
 0x318   :  { %v3188_v32 = vsel %vm7009_vm13, %v8014_v28, 0.0 }
 0x319   :  { %5973 = vmatmul.mubr.msk.f32.gmra.mrb[2].mxu1 %vm9015_vm10, %v7857_v22  ;;  %vm9021_vm10 = vmmov %vm9009_vm1 }
 0x31a   :  { %5975 = vmatprep.mubr.msk.f32.mxu1 %vm9009_vm1, %v7870_v55  ;;  %vm9022_vm1 = vmmov %vm9020_vm3 }
 0x31b   :  { %v8019_v23 = vsel %vm9022_vm1, %v3141_v8, %v3143_v13  ;;  %vm9025_vm11 = vmmov %vm9022_vm1 }
 0x31c   :  { %v3189_v43 = vsel %vm7020_vm14, %v8019_v23, 0.0  ;;  %v8036_v35 = vsel %vm9025_vm11, %v3143_v13, %v3145_v31  ;;  %vm9026_vm3 = vmmov %vm9022_vm1  ;;  %v3155_v13 = vrot.slane %v7849_v54, 1 }
 0x31d   :  { %5976 = vmatmul.mubr.msk.f32.gmra.mrb[4].mxu1 %vm9016_vm4, %v7860_v4  ;;  %vm2446_vm4 = vcmp.gt.f32.partialorder %v7736_v39, 0.0  ;;  %v8041_v45 = vsel %vm9026_vm3, %v3145_v31, %v3147_v11  ;;  %v3190_v63 = vsel %vm7033_vm15, %v8036_v35, 0.0  ;;  %vm9032_vm11 = vmmov %vm9019_vm2 }
 0x31e   :  { %5978 = vmatprep.mubr.msk.f32.mxu1 %vm9017_vm9, %v7873_v7  ;;  %vm9023_vm9 = vmmov %vm9019_vm2  ;;  %v8045_v59 = vsel %vm2446_vm4, %v7736_v39, %v5155_v27  ;;  %v3157_v27 = vrot.slane %v7853_v50, 1 }
 0x31f   :  { %v8848_v9 = vrot.slane %v8045_v59, 1  ;;  %vm9033_vm4 = vmmov %vm9026_vm3 }
 0x320   :  { %v8061_v39 = vsel %vm9033_vm4, %v3149_v41, %v3151_v58 }
 0x321   :  { %5979 = vmatmul.mubr.msk.f32.gmra.mrb[6].mxu1 %vm9019_vm2, %v7895_v57 }
 0x322   :  { %5983 = vmatprep.mubr.msk.f32.mxu1 %vm9021_vm10, %v3187_v24  ;;  %vm9028_vm10 = vmmov %vm9019_vm2  ;;  %v9037_v24 = vld [vmem:[#allocation12_spill] sm:$0xff] }
 0x325   :  { %5984 = vmatmul.mubr.msk.f32.vlgmr.msra.gmra.mrb[8].mxu1 %vm9023_vm9, %v3188_v32  ;;  %vm9031_vm9 = vmmov %vm9026_vm3  ;;  %v3156_v32 = vsel %vm9033_vm4, %v8935_v21, %v3155_v13 }
 0x326   :  { %6008 = vmatpush3.msra.mxu1 %v5229_v56  ;;  %5986 = vmatprep.mubr.msk.f32.mxu1 %vm9019_vm2, %v3189_v43  ;;  %v9029_v56 = vld [vmem:[#allocation10_spill] sm:$0xff]  ;;  %v8056_v8 = vsel %vm9031_vm9, %v3147_v11, %v3149_v41  ;;  %vm9035_vm2 = vnez %v9034_v14  ;;  %vm9036_vm3 = vmmov %vm9028_vm10  ;;  %v3159_v43 = vrot.slane %v7857_v22, 1  ;;  %v6474_v41 = vpop.eup %6473 }
 0x327   :  { %6033 = vmatprep.subr.mxu1 %v8029_v47  ;;  %vm9030_vm1 = vnez %v9029_v56  ;;  %v3192_v19 = vsel %vm9035_vm2, %v8056_v8, 0.0  ;;  %vm9039_vm9 = vmmov %vm9033_vm4  ;;  %v5163_v10 = vadd.f32 -1.0, %v6474_v41  ;;  %v3167_v41 = vrot.slane %v7895_v57, 1 }
 0x328   :  { %v3191_v2 = vsel %vm9030_vm1, %v8041_v45, 0.0  ;;  %v8074_v11 = vsel %vm9039_vm9, %v3151_v58, %v8848_v9  ;;  %v3195_v58 = vsel %vm6993_vm12, %v3156_v32, 0.0  ;;  %vm9044_vm9 = vmmov %vm9033_vm4  ;;  %v8093_v9 = vsel %vm9033_vm4, %v3157_v27, %v3159_v43 }
 0x329   :  { %5987 = vmatmul.mubr.msk.f32.gmra.mrb[10].mxu1 %vm9028_vm10, %v3190_v63  ;;  %vm9038_vm10 = vnez %v9037_v24  ;;  %v9041_v63 = vld [vmem:[#allocation14_spill] sm:$0xff] }
 0x32a   :  { %5989 = vmatprep.mubr.msk.f32.mxu1 %vm9032_vm11, %v3191_v2  ;;  %v3193_v31 = vsel %vm9038_vm10, %v8061_v39, 0.0  ;;  %vm9040_vm11 = vmmov %vm9036_vm3 }
 0x32b   :  { %vm9043_vm0 = vmmov %vm9040_vm11 }
 0x32d   :  { %5990 = vmatmul.mubr.msk.f32.gmra.mrb[12].mxu1 %vm9036_vm3, %v3192_v19  ;;  %vm9042_vm3 = vnez %v9041_v63  ;;  %v8088_v19 = vsel %vm9044_vm9, %v3155_v13, %v3157_v27  ;;  %v3197_v13 = vsel %vm7020_vm14, %v8093_v9, 0.0  ;;  %vm9046_vm9 = vmmov %vm9033_vm4 }
 0x32e   :  { %5992 = vmatprep.mubr.msk.f32.mxu1 %vm9040_vm11, %v3193_v31  ;;  %v3194_v2 = vsel %vm9042_vm3, %v8074_v11, 0.0  ;;  %v3161_v31 = vrot.slane %v7870_v55, 1  ;;  %vm9045_vm11 = vmmov %vm9043_vm0 }
 0x32f   :  { %vm9047_vm4 = vmmov %vm9043_vm0 }
 0x330   :  { %v8104_v32 = vsel %vm9046_vm9, %v3159_v43, %v3161_v31  ;;  %vm9048_vm12 = vmmov %vm9046_vm9 }
 0x331   :  { %5993 = vmatmul.mubr.msk.f32.gmra.mrb[14].mxu1 %vm9043_vm0, %v3194_v2  ;;  %v3196_v2 = vsel %vm7009_vm13, %v8088_v19, 0.0  ;;  %v8110_v27 = vsel %vm9048_vm12, %v3161_v31, %v3163_v0  ;;  %v3198_v29 = vsel %vm7033_vm15, %v8104_v32, 0.0  ;;  %vm9049_vm12 = vmmov %vm9043_vm0 }
 0x332   :  { %5995 = vmatprep.mubr.msk.f32.mxu1 %vm9045_vm11, %v3195_v58  ;;  %v3165_v58 = vrot.slane %v7873_v7, 1  ;;  %vm2454_vm11 = vcmp.gt.f32.partialorder %v7760_v61, 0.0  ;;  %v3199_v43 = vsel %vm9030_vm1, %v8110_v27, 0.0 }
 0x335   :  { %5996 = vmatmul.mubr.msk.f32.gmra.mrb[0].mxu1 %vm9043_vm0, %v3196_v2  ;;  %v8114_v2 = vsel %vm2454_vm11, %v7760_v61, %v5163_v10  ;;  %vm9052_vm11 = vmmov %vm9043_vm0 }
 0x336   :  { %5998 = vmatprep.mubr.msk.f32.mxu1 %vm9047_vm4, %v3197_v13  ;;  %v8124_v13 = vsel %vm9046_vm9, %v3163_v0, %v3165_v58  ;;  %v8857_v31 = vrot.slane %v8114_v2, 1  ;;  %vm9050_vm4 = vmmov %vm9046_vm9  ;;  %v9141_v42 = vrot.slane %v8114_v2, 7 }
 0x337   :  { %v8129_v10 = vsel %vm9050_vm4, %v3165_v58, %v3167_v41  ;;  %v3200_v61 = vsel %vm9035_vm2, %v8124_v13, 0.0  ;;  %vm9054_vm9 = vmmov %vm9052_vm11 }
 0x338   :  { %9051 = vst [vmem:[#allocation2_spill] sm:$0xff] %v8129_v10 }
 0x339   :  { %5999 = vmatmul.mubr.msk.f32.gmra.mrb[2].mxu1 %vm9043_vm0, %v3198_v29  ;;  %v3201_v29 = vsel %vm9038_vm10, %v8129_v10, 0.0  ;;  %vm9053_vm0 = vmmov %vm9050_vm4  ;;  %vm9059_vm10 = vnez %v8880_v33 }
 0x33a   :  { %6001 = vmatprep.mubr.msk.f32.mxu1 %vm9049_vm12, %v3199_v43  ;;  %v8141_v0 = vsel %vm9053_vm0, %v3167_v41, %v8857_v31  ;;  %vm9055_vm12 = vmmov %vm9054_vm9  ;;  %v9056_v43 = vld [vmem:[#allocation5_spill] sm:$0xff]  ;;  %v3421_v10 = vsel %vm9059_vm10, %v7790_v52, 0.0  ;;  %v5263_v41 = vld [vmem:[%s8769_s4 + $0x28] sm:$0xff] }
 0x33b   :  { %v3202_v58 = vsel %vm9042_vm3, %v8141_v0, 0.0  ;;  %vm9057_vm4 = vnez %v9056_v43  ;;  %vm9060_vm0 = vmmov %vm9054_vm9  ;;  %v9065_v31 = vld [vmem:[#allocation15_spill] sm:$0xff] }
 0x33c   :  { %vm9070_vm3 = vmmov %vm9060_vm0 }
 0x33d   :  { %6002 = vmatmul.mubr.msk.f32.gmra.mrb[4].mxu1 %vm9052_vm11, %v3200_v61  ;;  %v3420_v61 = vsel %vm9057_vm4, %v7769_v38, 0.0  ;;  %vm9058_vm11 = vmmov %vm9054_vm9  ;;  %v3423_v38 = vsel %vm6842_vm6, %v7819_v49, 0.0 }
 0x33e   :  { %6004 = vmatprep.mubr.msk.f32.mxu1 %vm9054_vm9, %v3201_v29  ;;  %v3422_v29 = vsel %vm6826_vm5, %v7800_v40, 0.0  ;;  %vm9061_vm9 = vmmov %vm9060_vm0 }
 0x33f   :  { %vm9072_vm2 = vmmov %vm9060_vm0 }
 0x341   :  { %6005 = vmatmul.mubr.msk.f32.gmra.mrb[6].mxu1 %vm9055_vm12, %v3202_v58  ;;  %vm9062_vm12 = vmmov %vm9060_vm0  ;;  %v9063_v58 = vld [vmem:[#allocation16_spill] sm:$0xff] }
 0x342   :  { %6009 = vmatprep.mubr.msk.f32.mxu1 %vm9058_vm11, %v3420_v61  ;;  %v3424_v61 = vsel %vm6868_vm7, %v9063_v58, 0.0  ;;  %vm9064_vm11 = vmmov %vm9060_vm0 }
 0x345   :  { %6010 = vmatmul.mubr.msk.f32.vlgmr.msra.gmra.mrb[8].mxu1 %vm9060_vm0, %v3421_v10  ;;  %v8866_v10 = vrot.slane %v8045_v59, 7 }
 0x346   :  { %6034 = vmatpush3.msra.mxu1 %v8029_v47  ;;  %6012 = vmatprep.mubr.msk.f32.mxu1 %vm9061_vm9, %v3422_v29  ;;  %v3425_v47 = vsel %vm6884_vm8, %v9065_v31, 0.0  ;;  %v9066_v29 = vld [vmem:[#allocation6_spill] sm:$0xff]  ;;  %vm9067_vm9 = vnez %v8890_v6 }
 0x347   :  { %6059 = vmatprep.subr.mxu1 %v5263_v41  ;;  %v3426_v49 = vsel %vm9067_vm9, %v9066_v29, 0.0  ;;  %v3429_v29 = vsel %vm9059_vm10, %v7879_v26, 0.0 }
 0x349   :  { %6013 = vmatmul.mubr.msk.f32.gmra.mrb[10].mxu1 %vm9062_vm12, %v3423_v38  ;;  %v9068_v38 = vrot.slane %v7784_v44, 7  ;;  %vm9069_vm12 = vcmask 1040384  }
 0x34a   :  { %6015 = vmatprep.mubr.msk.f32.mxu1 %vm9064_vm11, %v3424_v61  ;;  %vm9071_vm11 = vnez %v8892_v15 }
 0x34b   :  { %v8185_v58 = vsel %vm9069_vm12, %v9068_v38, %v8866_v10  ;;  %vm9073_vm12 = vmmov %vm9060_vm0  ;;  %v3431_v38 = vsel %vm6842_vm6, %v7901_v5, 0.0 }
 0x34c   :  { %v3427_v61 = vsel %vm9071_vm11, %v8185_v58, 0.0 }
 0x34d   :  { %6016 = vmatmul.mubr.msk.f32.gmra.mrb[12].mxu1 %vm9060_vm0, %v3425_v47  ;;  %v3428_v47 = vsel %vm9057_vm4, %v7864_v36, 0.0  ;;  %v3432_v36 = vsel %vm6868_vm7, %v7912_v30, 0.0 }
 0x34e   :  { %6018 = vmatprep.mubr.msk.f32.mxu1 %vm9070_vm3, %v3426_v49  ;;  %v3430_v49 = vsel %vm6826_vm5, %v7891_v1, 0.0  ;;  %vm9074_vm3 = vmmov %vm9060_vm0 }
 0x351   :  { %6019 = vmatmul.mubr.msk.f32.gmra.mrb[14].mxu1 %vm9072_vm2, %v3427_v61  ;;  %vm9075_vm2 = vmmov %vm9060_vm0  ;;  %v8865_v61 = vrot.slane %v8114_v2, 7 }
 0x352   :  { %6021 = vmatprep.mubr.msk.f32.mxu1 %vm9060_vm0, %v3428_v47  ;;  %v3434_v47 = vsel %vm9067_vm9, %v7929_v46, 0.0  ;;  %vm9081_vm9 = vmmov %vm9060_vm0 }
 0x355   :  { %6022 = vmatmul.mubr.msk.f32.gmra.mrb[0].mxu1 %vm9073_vm12, %v3429_v29  ;;  %v3433_v29 = vsel %vm6884_vm8, %v7917_v16, 0.0  ;;  %vm9076_vm12 = vmmov %vm9060_vm0 }
 0x356   :  { %6024 = vmatprep.mubr.msk.f32.mxu1 %vm9074_vm3, %v3430_v49  ;;  %v9077_v49 = vrot.slane %v7895_v57, 7  ;;  %vm9078_vm3 = vcmask 1040384   ;;  %vm9086_vm8 = vmmov %vm9060_vm0 }
 0x359   :  { %6025 = vmatmul.mubr.msk.f32.gmra.mrb[2].mxu1 %vm9075_vm2, %v3431_v38  ;;  %v8225_v38 = vsel %vm9078_vm3, %v9077_v49, %v8865_v61  ;;  %vm9079_vm2 = vmmov %vm9060_vm0  ;;  %v3822_v49 = vsel %vm9030_vm1, %v8056_v8, 0.0 }
 0x35a   :  { %6027 = vmatprep.mubr.msk.f32.mxu1 %vm9060_vm0, %v3432_v36  ;;  %v3435_v36 = vsel %vm9071_vm11, %v8225_v38, 0.0  ;;  %vm9082_vm3 = vmmov %vm9060_vm0 }
 0x35b   :  { %vm9085_vm11 = vmmov %vm9060_vm0 }
 0x35d   :  { %6028 = vmatmul.mubr.msk.f32.gmra.mrb[4].mxu1 %vm9076_vm12, %v3433_v29  ;;  %vm9080_vm12 = vmmov %vm9060_vm0  ;;  %v5280_v29 = vld [vmem:[%s8769_s4 + $0x30] sm:$0xff] }
 0x35e   :  { %6030 = vmatprep.mubr.msk.f32.mxu1 %vm9079_vm2, %v3434_v47  ;;  %vm9083_vm2 = vmmov %vm9060_vm0  ;;  %v3820_v47 = vsel %vm7020_vm14, %v8036_v35, 0.0 }
 0x361   :  { %6031 = vmatmul.mubr.msk.f32.gmra.mrb[6].mxu1 %vm9060_vm0, %v3435_v36 }
 0x362   :  { %6035 = vmatprep.mubr.msk.f32.mxu1 %vm9080_vm12, %v7745_v48  ;;  %vm9084_vm12 = vmmov %vm9060_vm0 }
 0x365   :  { %6036 = vmatmul.mubr.msk.f32.vlgmr.msra.gmra.mrb[8].mxu1 %vm9081_vm9, %v7763_v53  ;;  %vm9087_vm9 = vmmov %vm9060_vm0 }
 0x366   :  { %6060 = vmatpush3.msra.mxu1 %v5263_v41  ;;  %6038 = vmatprep.mubr.msk.f32.mxu1 %vm9082_vm3, %v7772_v20  ;;  %vm9088_vm3 = vmmov %vm9060_vm0  ;;  %v5297_v41 = vld [vmem:[%s8769_s4 + $0x38] sm:$0xff] }
 0x367   :  { %6085 = vmatprep.subr.mxu1 %v5280_v29 }
 0x369   :  { %6039 = vmatmul.mubr.msk.f32.gmra.mrb[10].mxu1 %vm9083_vm2, %v7806_v12  ;;  %vm9089_vm2 = vmmov %vm9060_vm0 }
 0x36a   :  { %6041 = vmatprep.mubr.msk.f32.mxu1 %vm9060_vm0, %v7778_v25 }
 0x36d   :  { %6042 = vmatmul.mubr.msk.f32.gmra.mrb[12].mxu1 %vm9084_vm12, %v7781_v34  ;;  %vm9090_vm12 = vmmov %vm9060_vm0 }
 0x36e   :  { %6044 = vmatprep.mubr.msk.f32.mxu1 %vm9085_vm11, %v7784_v44  ;;  %vm9091_vm11 = vmmov %vm9060_vm0 }
 0x371   :  { %6045 = vmatmul.mubr.msk.f32.gmra.mrb[14].mxu1 %vm9086_vm8, %v8045_v59  ;;  %vm9092_vm8 = vmmov %vm9060_vm0 }
 0x372   :  { %6047 = vmatprep.mubr.msk.f32.mxu1 %vm9087_vm9, %v7849_v54  ;;  %vm9093_vm9 = vmmov %vm9060_vm0  ;;  %v3819_v54 = vsel %vm7009_vm13, %v8019_v23, 0.0 }
 0x375   :  { %6048 = vmatmul.mubr.msk.f32.gmra.mrb[0].mxu1 %vm9088_vm3, %v7853_v50  ;;  %vm9094_vm3 = vnez %v8895_v3 }
 0x376   :  { %6050 = vmatprep.mubr.msk.f32.mxu1 %vm9089_vm2, %v7857_v22  ;;  %v3818_v48 = vsel %vm9094_vm3, %v8014_v28, 0.0  ;;  %vm9095_vm2 = vmmov %vm9060_vm0  ;;  %v3821_v28 = vsel %vm7033_vm15, %v8041_v45, 0.0 }
 0x379   :  { %6051 = vmatmul.mubr.msk.f32.gmra.mrb[2].mxu1 %vm9060_vm0, %v7870_v55 }
 0x37a   :  { %6053 = vmatprep.mubr.msk.f32.mxu1 %vm9090_vm12, %v7860_v4  ;;  %vm9096_vm12 = vmmov %vm9060_vm0 }
 0x37d   :  { %6054 = vmatmul.mubr.msk.f32.gmra.mrb[4].mxu1 %vm9091_vm11, %v7873_v7  ;;  %vm9097_vm11 = vmmov %vm9060_vm0 }
 0x37e   :  { %6056 = vmatprep.mubr.msk.f32.mxu1 %vm9092_vm8, %v7895_v57  ;;  %vm9098_vm8 = vmmov %vm9060_vm0 }
 0x381   :  { %6057 = vmatmul.mubr.msk.f32.gmra.mrb[6].mxu1 %vm9093_vm9, %v8114_v2  ;;  %vm9099_vm9 = vnez %v9034_v14 }
 0x382   :  { %6061 = vmatprep.mubr.msk.f32.mxu1 %vm9095_vm2, %v3818_v48  ;;  %v3823_v36 = vsel %vm9099_vm9, %v8061_v39, 0.0  ;;  %vm9100_vm2 = vmmov %vm9060_vm0  ;;  %v9102_v48 = vrot.slane %v8045_v59, 1 }
 0x385   :  { %6062 = vmatmul.mubr.msk.f32.vlgmr.msra.gmra.mrb[8].mxu1 %vm9060_vm0, %v3819_v54  ;;  %vm9101_vm0 = vnez %v9037_v24 }
 0x386   :  { %6086 = vmatpush3.msra.mxu1 %v5280_v29  ;;  %6064 = vmatprep.mubr.msk.f32.mxu1 %vm9096_vm12, %v3820_v47  ;;  %v3824_v29 = vsel %vm9101_vm0, %v8074_v11, 0.0  ;;  %vm9103_vm12 = vcmask 1046528  }
 0x387   :  { %6111 = vmatprep.subr.mxu1 %v5297_v41  ;;  %v8301_v54 = vsel %vm9103_vm12, %v9102_v48, %v8935_v21  ;;  %vm9108_vm12 = vmmov %vm9100_vm2 }
 0x389   :  { %6065 = vmatmul.mubr.msk.f32.gmra.mrb[10].mxu1 %vm9097_vm11, %v3821_v28  ;;  %vm9104_vm11 = vmmov %vm9100_vm2 }
 0x38a   :  { %6067 = vmatprep.mubr.msk.f32.mxu1 %vm9098_vm8, %v3822_v49  ;;  %vm9106_vm8 = vnez %v9041_v63  ;;  %v9122_v63 = vld [vmem:[#allocation7_spill] sm:$0xff] }
 0x38b   :  { %v3825_v49 = vsel %vm9106_vm8, %v8301_v54, 0.0 }
 0x38d   :  { %6068 = vmatmul.mubr.msk.f32.gmra.mrb[12].mxu1 %vm9100_vm2, %v3823_v36  ;;  %v3826_v36 = vsel %vm9094_vm3, %v8088_v19, 0.0 }
 0x38e   :  { %v8303_v47 = vpop.f32.mrb[16].mxu0  ;;  %6070 = vmatprep.mubr.msk.f32.mxu1 %vm9104_vm11, %v3824_v29  ;;  %v3827_v29 = vsel %vm7009_vm13, %v8093_v9, 0.0  ;;  %vm9110_vm11 = vmmov %vm9100_vm2 }
 0x38f   :  { %v8306_v28 = vpop.f32.mrb[17].mxu0 }
 0x390   :  { %9105 = vst [vmem:[#allocation3_spill] sm:$0xff] %v8306_v28 }
 0x391   :  { %6071 = vmatmul.mubr.msk.f32.gmra.mrb[14].mxu1 %vm9100_vm2, %v3825_v49  ;;  %v3828_v49 = vsel %vm7020_vm14, %v8104_v32, 0.0 }
 0x392   :  { %v8315_v61 = vpop.f32.mrb[18].mxu0  ;;  %6073 = vmatprep.mubr.msk.f32.mxu1 %vm9108_vm12, %v3826_v36  ;;  %v3829_v36 = vsel %vm7033_vm15, %v8110_v27, 0.0  ;;  %vm9113_vm12 = vmmov %vm9100_vm2 }
 0x393   :  { %9107 = vst [vmem:[#allocation8_spill] sm:$0xff] %v8315_v61  ;;  %v8318_v48 = vpop.f32.mrb[19].mxu0 }
 0x394   :  { %9109 = vst [vmem:[#allocation9_spill] sm:$0xff] %v8318_v48 }
 0x395   :  { %6074 = vmatmul.mubr.msk.f32.gmra.mrb[0].mxu1 %vm9110_vm11, %v3827_v29  ;;  %v3830_v29 = vsel %vm9030_vm1, %v8124_v13, 0.0  ;;  %vm9114_vm11 = vmmov %vm9100_vm2 }
 0x396   :  { %v8327_v10 = vpop.f32.mrb[20].mxu0  ;;  %6076 = vmatprep.mubr.msk.f32.mxu1 %vm9100_vm2, %v3828_v49  ;;  %vm9119_vm1 = vmmov %vm9100_vm2 }
 0x397   :  { %9111 = vst [vmem:[#allocation10_spill] sm:$0xff] %v8327_v10  ;;  %v8330_v19 = vpop.f32.mrb[21].mxu0  ;;  %v9116_v10 = vld [vmem:[#allocation2_spill] sm:$0xff] }
 0x398   :  { %9112 = vst [vmem:[#allocation11_spill] sm:$0xff] %v8330_v19  ;;  %v3831_v49 = vsel %vm9099_vm9, %v9116_v10, 0.0  ;;  %v9117_v19 = vrot.slane %v8114_v2, 1  ;;  %vm9134_vm9 = vnez %v8892_v15  ;;  %v4440_v15 = vsel %vm7009_vm13, %v8036_v35, 0.0 }
 0x399   :  { %6077 = vmatmul.mubr.msk.f32.gmra.mrb[2].mxu1 %vm9113_vm12, %v3829_v36  ;;  %v3832_v36 = vsel %vm9101_vm0, %v8141_v0, 0.0  ;;  %vm9118_vm12 = vcmask 1046528   ;;  %vm9133_vm0 = vmmov %vm9119_vm1 }
 0x39a   :  { %v8339_v48 = vpop.f32.mrb[22].mxu0  ;;  %6079 = vmatprep.mubr.msk.f32.mxu1 %vm9114_vm11, %v3830_v29  ;;  %v8355_v28 = vsel %vm9118_vm12, %v9117_v19, %v8935_v21  ;;  %vm9120_vm11 = vmmov %vm9119_vm1  ;;  %v5312_v21 = vld [vmem:[%s8769_s4 + $0x40] sm:$0xff]  ;;  %v4051_v19 = vsel %vm6826_vm5, %v9122_v63, 0.0  ;;  %v9131_v63 = vrot.slane %v8045_v59, 7 }
 0x39b   :  { %v8342_v61 = vpop.f32.mrb[23].mxu0  ;;  %v3833_v29 = vsel %vm9106_vm8, %v8355_v28, 0.0  ;;  %vm9123_vm8 = vmmov %vm9119_vm1 }
 0x39c   :  { %9115 = vst [vmem:[#allocation12_spill] sm:$0xff] %v8342_v61  ;;  %v4050_v61 = vsel %vm9059_vm10, %v7800_v40, 0.0  ;;  %vm9125_vm12 = vmmov %vm9119_vm1  ;;  %v4053_v40 = vsel %vm6868_vm7, %v9065_v31, 0.0 }
 0x39d   :  { %6080 = vmatmul.mubr.msk.f32.gmra.mrb[4].mxu1 %vm9100_vm2, %v3831_v49  ;;  %v4049_v49 = vsel %vm9057_vm4, %v7790_v52, 0.0  ;;  %vm9121_vm2 = vmmov %vm9119_vm1  ;;  %v9124_v52 = vld [vmem:[#allocation16_spill] sm:$0xff] }
 0x39e   :  { %6082 = vmatprep.mubr.msk.f32.mxu1 %vm9119_vm1, %v3832_v36  ;;  %v4052_v36 = vsel %vm6842_vm6, %v9124_v52, 0.0  ;;  %v4057_v52 = vsel %vm9057_vm4, %v7879_v26, 0.0  ;;  %vm9137_vm15 = vmmov %vm9133_vm0  ;;  %v4061_v26 = vsel %vm6868_vm7, %v7917_v16, 0.0 }
 0x39f   :  { %vm9139_vm4 = vmmov %vm9133_vm0 }
 0x3a0   :  { %vm9144_vm7 = vmmov %vm9133_vm0 }
 0x3a1   :  { %6083 = vmatmul.mubr.msk.f32.gmra.mrb[6].mxu1 %vm9120_vm11, %v3833_v29  ;;  %vm9126_vm11 = vmmov %vm9119_vm1 }
 0x3a2   :  { %6087 = vmatprep.mubr.msk.f32.mxu1 %vm9121_vm2, %v4049_v49  ;;  %vm9128_vm2 = vnez %v8888_v60  ;;  %v9130_v49 = vld [vmem:[#allocation4_spill] sm:$0xff]  ;;  %v9151_v60 = vmov 0.0  }
 0x3a3   :  { %v4062_v33 = vsel %vm9128_vm2, %v7929_v46, 0.0  ;;  %v9179_v46 = vld [vmem:[#allocation3_spill] sm:$0xff] }
 0x3a5   :  { %6088 = vmatmul.mubr.msk.f32.vlgmr.msra.gmra.mrb[8].mxu1 %vm9119_vm1, %v4050_v61  ;;  %v9127_v61 = vld [vmem:[#allocation6_spill] sm:$0xff] }
 0x3a6   :  { %6112 = vmatpush3.msra.mxu1 %v5297_v41  ;;  %6090 = vmatprep.mubr.msk.f32.mxu1 %vm9123_vm8, %v4051_v19  ;;  %v4054_v29 = vsel %vm9128_vm2, %v9127_v61, 0.0  ;;  %vm9129_vm8 = vnez %v8890_v6  ;;  %vm9146_vm2 = vmmov %vm9133_vm0  ;;  %v4439_v6 = vsel %vm9094_vm3, %v8019_v23, 0.0 }
 0x3a7   :  { %6137 = vmatprep.subr.mxu1 %v5312_v21  ;;  %v4055_v41 = vsel %vm9129_vm8, %v8185_v58, 0.0  ;;  %v4058_v58 = vsel %vm9059_vm10, %v7891_v1, 0.0  ;;  %v4063_v37 = vsel %vm9129_vm8, %v8225_v38, 0.0  ;;  %vm9145_vm10 = vmmov %vm9133_vm0 }
 0x3a8   :  { %vm9147_vm8 = vmmov %vm9133_vm0 }
 0x3a9   :  { %6091 = vmatmul.mubr.msk.f32.gmra.mrb[10].mxu1 %vm9125_vm12, %v4052_v36  ;;  %vm9132_vm12 = vcmask 1040384   ;;  %v4059_v36 = vsel %vm6826_vm5, %v7901_v5, 0.0  ;;  %vm9142_vm5 = vcmask 1040384   ;;  %v8528_v5 = vld [vmem:[%s8771_s5] ss:$0 sm:$0xff] }
 0x3aa   :  { %6093 = vmatprep.mubr.msk.f32.mxu1 %vm9126_vm11, %v4053_v40  ;;  %v4045_v19 = vsel %vm9132_vm12, %v9131_v63, %v9130_v49  ;;  %vm9135_vm11 = vmmov %vm9133_vm0  ;;  %v4060_v40 = vsel %vm6842_vm6, %v7912_v30, 0.0  ;;  %v4046_v1 = vsel %vm9142_vm5, %v9141_v42, %v9130_v49 }
 0x3ab   :  { %v4056_v31 = vsel %vm9134_vm9, %v4045_v19, 0.0  ;;  %vm9138_vm12 = vmmov %vm9133_vm0  ;;  %v4064_v51 = vsel %vm9134_vm9, %v4046_v1, 0.0  ;;  %v9189_v19 = vld [vmem:[#allocation12_spill] sm:$0xff] }
 0x3ac   :  { %vm9143_vm6 = vmmov %vm9133_vm0 }
 0x3ad   :  { %6094 = vmatmul.mubr.msk.f32.gmra.mrb[12].mxu1 %vm9119_vm1, %v4054_v29  ;;  %vm9136_vm1 = vmmov %vm9133_vm0 }
 0x3ae   :  { %6096 = vmatprep.mubr.msk.f32.mxu1 %vm9133_vm0, %v4055_v41  ;;  %vm9150_vm9 = vmmov %vm9133_vm0 }
 0x3af   :  { %vm9155_vm5 = vmmov %vm9133_vm0 }
 0x3b1   :  { %6097 = vmatmul.mubr.msk.f32.gmra.mrb[14].mxu1 %vm9135_vm11, %v4056_v31  ;;  %vm9148_vm11 = vmmov %vm9133_vm0 }
 0x3b2   :  { %6099 = vmatprep.mubr.msk.f32.mxu1 %vm9136_vm1, %v4057_v52  ;;  %vm9149_vm1 = vmmov %vm9133_vm0 }
 0x3b5   :  { %6100 = vmatmul.mubr.msk.f32.gmra.mrb[0].mxu1 %vm9137_vm15, %v4058_v58  ;;  %vm9140_vm15 = vmmov %vm9133_vm0 }
 0x3b6   :  { %6102 = vmatprep.mubr.msk.f32.mxu1 %vm9133_vm0, %v4059_v36 }
 0x3b9   :  { %6103 = vmatmul.mubr.msk.f32.gmra.mrb[2].mxu1 %vm9138_vm12, %v4060_v40  ;;  %vm9152_vm12 = vmmov %vm9133_vm0 }
 0x3ba   :  { %6105 = vmatprep.mubr.msk.f32.mxu1 %vm9139_vm4, %v4061_v26  ;;  %vm9153_vm4 = vmmov %vm9133_vm0 }
 0x3bd   :  { %6106 = vmatmul.mubr.msk.f32.gmra.mrb[4].mxu1 %vm9140_vm15, %v4062_v33  ;;  %vm9154_vm15 = vmmov %vm9133_vm0 }
 0x3be   :  { %6108 = vmatprep.mubr.msk.f32.mxu1 %vm9143_vm6, %v4063_v37  ;;  %vm9156_vm6 = vmmov %vm9133_vm0 }
 0x3c1   :  { %6109 = vmatmul.mubr.msk.f32.gmra.mrb[6].mxu1 %vm9144_vm7, %v4064_v51  ;;  %vm9157_vm7 = vmmov %vm9133_vm0 }
 0x3c2   :  { %6113 = vmatprep.mubr.msk.f32.mxu1 %vm9145_vm10, %v7763_v53  ;;  %vm9158_vm10 = vmmov %vm9133_vm0  ;;  %v4441_v53 = vsel %vm7020_vm14, %v8041_v45, 0.0 }
 0x3c5   :  { %6114 = vmatmul.mubr.msk.f32.vlgmr.msra.gmra.mrb[8].mxu1 %vm9146_vm2, %v7772_v20  ;;  %vm9159_vm2 = vmmov %vm9133_vm0 }
 0x3c6   :  { %6138 = vmatpush3.msra.mxu1 %v5312_v21  ;;  %6116 = vmatprep.mubr.msk.f32.mxu1 %vm9147_vm8, %v7806_v12  ;;  %vm9160_vm8 = vmmov %vm9133_vm0  ;;  %v9170_v12 = vld [vmem:[#allocation13_spill] sm:$0xff] }
 0x3c9   :  { %6117 = vmatmul.mubr.msk.f32.gmra.mrb[10].mxu1 %vm9148_vm11, %v7778_v25  ;;  %vm9161_vm11 = vmmov %vm9133_vm0 }
 0x3ca   :  { %6119 = vmatprep.mubr.msk.f32.mxu1 %vm9149_vm1, %v7781_v34  ;;  %vm9162_vm1 = vnez %v9027_v62  ;;  %v9181_v62 = vld [vmem:[#allocation8_spill] sm:$0xff] }
 0x3cb   :  { %v4442_v20 = vsel %vm9162_vm1, %v8056_v8, 0.0 }
 0x3cd   :  { %6120 = vmatmul.mubr.msk.f32.gmra.mrb[12].mxu1 %vm9150_vm9, %v7784_v44  ;;  %vm9163_vm9 = vmmov %vm9133_vm0 }
 0x3ce   :  { %6122 = vmatprep.mubr.msk.f32.mxu1 %vm9133_vm0, %v8045_v59  ;;  %vm9164_vm0 = vnez %v9029_v56 }
 0x3cf   :  { %v4443_v25 = vsel %vm9164_vm0, %v8061_v39, 0.0  ;;  %v4450_v3 = vsel %vm9164_vm0, %v9116_v10, 0.0  ;;  %v9183_v39 = vld [vmem:[#allocation9_spill] sm:$0xff]  ;;  %v9186_v10 = vld [vmem:[#allocation11_spill] sm:$0xff] }
 0x3d1   :  { %6123 = vmatmul.mubr.f32.gmra.mrb[14].mxu1 %v9151_v60 }
 0x3d2   :  { %6125 = vmatprep.mubr.msk.f32.mxu1 %vm9152_vm12, %v7853_v50  ;;  %vm9165_vm12 = vmmov %vm9159_vm2  ;;  %v4447_v50 = vsel %vm7009_vm13, %v8104_v32, 0.0 }
 0x3d3   :  { %vm9176_vm13 = vmmov %vm9159_vm2 }
 0x3d5   :  { %6126 = vmatmul.mubr.msk.f32.gmra.mrb[0].mxu1 %vm9153_vm4, %v7857_v22  ;;  %vm9166_vm4 = vnez %v9034_v14  ;;  %v4446_v22 = vsel %vm9094_vm3, %v8093_v9, 0.0  ;;  %vm9175_vm3 = vmmov %vm9159_vm2 }
 0x3d6   :  { %6128 = vmatprep.mubr.msk.f32.mxu1 %vm9154_vm15, %v7870_v55  ;;  %v4444_v34 = vsel %vm9166_vm4, %v8074_v11, 0.0  ;;  %vm9167_vm15 = vmmov %vm9159_vm2  ;;  %v4449_v55 = vsel %vm9162_vm1, %v8124_v13, 0.0  ;;  %v4451_v17 = vsel %vm9166_vm4, %v8141_v0, 0.0 }
 0x3d7   :  { %vm9178_vm1 = vmmov %vm9159_vm2 }
 0x3d8   :  { %vm9182_vm0 = vmmov %vm9178_vm1 }
 0x3d9   :  { %6129 = vmatmul.mubr.msk.f32.gmra.mrb[2].mxu1 %vm9155_vm5, %v7860_v4  ;;  %vm9168_vm5 = vnez %v9037_v24  ;;  %v4448_v4 = vsel %vm7020_vm14, %v8110_v27, 0.0  ;;  %vm9177_vm14 = vmmov %vm9159_vm2 }
 0x3da   :  { %6131 = vmatprep.mubr.msk.f32.mxu1 %vm9156_vm6, %v7873_v7  ;;  %v4445_v44 = vsel %vm9168_vm5, %v8301_v54, 0.0  ;;  %vm9169_vm6 = vmmov %vm9159_vm2  ;;  %v4452_v7 = vsel %vm9168_vm5, %v8355_v28, 0.0 }
 0x3db   :  { %vm9187_vm4 = vmmov %vm9182_vm0 }
 0x3dc   :  { %vm9190_vm5 = vmmov %vm9182_vm0 }
 0x3dd   :  { %6132 = vmatmul.mubr.msk.f32.gmra.mrb[4].mxu1 %vm9157_vm7, %v7895_v57  ;;  %vm9171_vm7 = vmmov %vm9159_vm2 }
 0x3de   :  { %6134 = vmatprep.mubr.msk.f32.mxu1 %vm9158_vm10, %v8114_v2  ;;  %vm9172_vm10 = vmmov %vm9159_vm2  ;;  %v9184_v2 = vld [vmem:[#allocation10_spill] sm:$0xff] }
 0x3e1   :  { %6135 = vmatmul.mubr.f32.gmra.mrb[6].mxu1 %v9151_v60 }
 0x3e2   :  { %6139 = vmatprep.mubr.msk.f32.mxu1 %vm9159_vm2, %v4439_v6 }
 0x3e5   :  { %6140 = vmatmul.mubr.msk.f32.vlgmr.msra.gmra.mrb[8].mxu1 %vm9160_vm8, %v4440_v15  ;;  %vm9173_vm8 = vmmov %vm9159_vm2 }
 0x3e6   :  { %6142 = vmatprep.mubr.msk.f32.mxu1 %vm9161_vm11, %v4441_v53  ;;  %vm9174_vm11 = vmmov %vm9159_vm2 }
 0x3e9   :  { %6143 = vmatmul.mubr.msk.f32.gmra.mrb[10].mxu1 %vm9163_vm9, %v4442_v20  ;;  %vm9180_vm9 = vmmov %vm9178_vm1 }
 0x3ea   :  { %6145 = vmatprep.mubr.msk.f32.mxu1 %vm9165_vm12, %v4443_v25  ;;  %vm9185_vm12 = vmmov %vm9182_vm0 }
 0x3ed   :  { %6146 = vmatmul.mubr.msk.f32.gmra.mrb[12].mxu1 %vm9167_vm15, %v4444_v34  ;;  %vm9188_vm15 = vmmov %vm9182_vm0 }
 0x3ee   :  { %6148 = vmatprep.mubr.msk.f32.mxu1 %vm9169_vm6, %v4445_v44  ;;  %vm9191_vm6 = vmmov %vm9182_vm0 }
 0x3f1   :  { %6149 = vmatmul.mubr.msk.f32.gmra.mrb[14].mxu1 %vm9171_vm7, %v9170_v12  ;;  %vm9192_vm7 = vmmov %vm9182_vm0 }
 0x3f2   :  { %6151 = vmatprep.mubr.msk.f32.mxu1 %vm9172_vm10, %v4446_v22  ;;  %vm9193_vm10 = vmmov %vm9182_vm0 }
 0x3f5   :  { %6152 = vmatmul.mubr.msk.f32.gmra.mrb[0].mxu1 %vm9159_vm2, %v4447_v50  ;;  %vm9194_vm2 = vmmov %vm9182_vm0 }
 0x3f6   :  { %6154 = vmatprep.mubr.msk.f32.mxu1 %vm9173_vm8, %v4448_v4  ;;  %vm9195_vm8 = vmmov %vm9182_vm0 }
 0x3f9   :  { %6155 = vmatmul.mubr.msk.f32.gmra.mrb[2].mxu1 %vm9174_vm11, %v4449_v55  ;;  %vm9196_vm11 = vmmov %vm9182_vm0 }
 0x3fa   :  { %6157 = vmatprep.mubr.msk.f32.mxu1 %vm9175_vm3, %v4450_v3  ;;  %vm9197_vm3 = vmmov %vm9182_vm0 }
 0x3fd   :  { %6158 = vmatmul.mubr.msk.f32.gmra.mrb[4].mxu1 %vm9176_vm13, %v4451_v17  ;;  %vm9198_vm13 = vmmov %vm9182_vm0 }
 0x3fe   :  { %6160 = vmatprep.mubr.msk.f32.mxu1 %vm9177_vm14, %v4452_v7  ;;  %vm9199_vm14 = vmmov %vm9182_vm0 }
 0x401   :  { %6161 = vmatmul.mubr.msk.f32.gmra.mrb[6].mxu1 %vm9178_vm1, %v9170_v12  ;;  %vm9200_vm1 = vmmov %vm9182_vm0 }
 0x4b8   :  { %v6141_v57 = vpop.f32.mrb[8].mxu1 }
 0x4b9   :  { %v6165_v30 = vadd.f32 %v6141_v57, %v8303_v47  ;;  %v4565_v16 = vpop.f32.mrb[9].mxu1 }
 0x4ba   :  { %v6166_v23 = vadd.f32 %v4565_v16, %v9179_v46 }
 0x4bb   :  { %v8533_v18 = vadd.f32 %v6165_v30, %v8528_v5 }
 0x4bc   :  { %v8536_v35 = vadd.f32 %v6166_v23, %v8528_v5  ;;  %v6144_v45 = vpop.f32.mrb[10].mxu1 }
 0x4bd   :  { %v4684_v59 = vsel %vm9180_vm9, %v8533_v18, 0.0  ;;  %v6167_v56 = vadd.f32 %v6144_v45, %v9181_v62  ;;  %v4575_v8 = vpop.f32.mrb[11].mxu1  ;;  %vm9201_vm9 = vmmov %vm9182_vm0 }
 0x4be   :  { %v4683_v9 = vsel %vm9182_vm0, %v8536_v35, 0.0  ;;  %v6168_v14 = vadd.f32 %v4575_v8, %v9183_v39 }
 0x4bf   :  { %v4685_v24 = vadd.f32 %v4684_v59, %v4683_v9  ;;  %v8545_v11 = vadd.f32 %v6167_v56, %v8528_v5 }
 0x4c0   :  { %v8548_v32 = vadd.f32 %v6168_v14, %v8528_v5  ;;  %v6147_v27 = vpop.f32.mrb[12].mxu1 }
 0x4c1   :  { %v6169_v13 = vadd.f32 %v6147_v27, %v9184_v2  ;;  %v4585_v0 = vpop.f32.mrb[13].mxu1  ;;  %v4688_v47 = vsel %vm9187_vm4, %v8545_v11, 0.0  ;;  %vm9203_vm4 = vmmov %vm9182_vm0 }
 0x4c2   :  { %v4686_v43 = vsel %vm9185_vm12, %v8548_v32, 0.0  ;;  %v6170_v38 = vadd.f32 %v4585_v0, %v9186_v10  ;;  %vm9202_vm12 = vmmov %vm9182_vm0 }
 0x4c3   :  { %v4687_v54 = vadd.f32 %v4686_v43, %v4685_v24  ;;  %v4672_v28 = vadd.f32 %v6169_v13, %v8528_v5 }
 0x4c4   :  { %v4671_v21 = vadd.f32 %v6170_v38, %v8528_v5  ;;  %v6150_v61 = vpop.f32.mrb[14].mxu1 }
 0x4c5   :  { %v4689_v29 = vadd.f32 %v4688_v47, %v4687_v54  ;;  %v6171_v41 = vadd.f32 %v6150_v61, %v8339_v48  ;;  %v4595_v49 = vpop.f32.mrb[15].mxu1  ;;  %v4692_v58 = vsel %vm9190_vm5, %v4672_v28, 0.0  ;;  %vm9205_vm5 = vmmov %vm9182_vm0 }
 0x4c6   :  { %v4690_v63 = vsel %vm9188_vm15, %v4671_v21, 0.0  ;;  %v6172_v31 = vadd.f32 %v4595_v49, %v9189_v19  ;;  %vm9204_vm15 = vmmov %vm9182_vm0 }
 0x4c7   :  { %v4691_v52 = vadd.f32 %v4690_v63, %v4689_v29  ;;  %v4674_v36 = vadd.f32 %v6171_v41, %v8528_v5 }
 0x4c8   :  { %v4673_v40 = vadd.f32 %v6172_v31, %v8528_v5  ;;  %v6153_v26 = vpop.f32.mrb[0].mxu1 }
 0x4c9   :  { %v4693_v33 = vadd.f32 %v4692_v58, %v4691_v52  ;;  %v8565_v37 = vadd.f32 %v6153_v26, %v8528_v5  ;;  %v4605_v42 = vpop.f32.mrb[1].mxu1  ;;  %v4696_v6 = vsel %vm9193_vm10, %v4674_v36, 0.0  ;;  %vm9208_vm10 = vmmov %vm9182_vm0 }
 0x4ca   :  { %v4694_v48 = vsel %vm9191_vm6, %v4673_v40, 0.0  ;;  %v8569_v1 = vadd.f32 %v8528_v5, %v4605_v42  ;;  %vm9206_vm6 = vmmov %vm9182_vm0 }
 0x4cb   :  { %v4695_v51 = vadd.f32 %v4694_v48, %v4693_v33  ;;  %v4705_v60 = vsel %vm9192_vm7, %v8565_v37, 0.0  ;;  %vm9207_vm7 = vmmov %vm9182_vm0 }
 0x4cc   :  { %v4704_v15 = vsel %vm9194_vm2, %v8569_v1, 0.0  ;;  %v6156_v53 = vpop.f32.mrb[2].mxu1  ;;  %vm9209_vm2 = vmmov %vm9182_vm0 }
 0x4cd   :  { %v4697_v20 = vadd.f32 %v4696_v6, %v4695_v51  ;;  %v4706_v25 = vadd.f32 %v4705_v60, %v4704_v15  ;;  %v4615_v34 = vpop.f32.mrb[3].mxu1  ;;  %v4678_v44 = vadd.f32 %v6156_v53, %v8528_v5 }
 0x4ce   :  { %v4677_v12 = vadd.f32 %v8528_v5, %v4615_v34 }
 0x4cf   :  { %v4698_v22 = vrot.slane %v4697_v20, 4  ;;  %v4709_v7 = vsel %vm9196_vm11, %v4678_v44, 0.0  ;;  %vm9211_vm11 = vmmov %vm9182_vm0 }
 0x4d0   :  { %v4707_v50 = vsel %vm9195_vm8, %v4677_v12, 0.0  ;;  %v6159_v4 = vpop.f32.mrb[4].mxu1  ;;  %vm9210_vm8 = vmmov %vm9182_vm0 }
 0x4d1   :  { %v4699_v55 = vadd.f32 %v4698_v22, %v4697_v20  ;;  %v4708_v3 = vadd.f32 %v4707_v50, %v4706_v25  ;;  %v4625_v17 = vpop.f32.mrb[5].mxu1  ;;  %v4680_v57 = vadd.f32 %v6159_v4, %v8528_v5 }
 0x4d2   :  { %v4679_v30 = vadd.f32 %v8528_v5, %v4625_v17 }
 0x4d3   :  { %v4700_v16 = vrot.slane %v4699_v55, 2  ;;  %v4710_v46 = vadd.f32 %v4709_v7, %v4708_v3  ;;  %v4713_v8 = vsel %vm9198_vm13, %v4680_v57, 0.0  ;;  %vm9213_vm13 = vmmov %vm9182_vm0 }
 0x4d4   :  { %v4711_v23 = vsel %vm9197_vm3, %v4679_v30, 0.0  ;;  %v6162_v45 = vpop.f32.mrb[6].mxu1  ;;  %vm9212_vm3 = vmmov %vm9182_vm0 }
 0x4d5   :  { %v4701_v59 = vadd.f32 %v4700_v16, %v4699_v55  ;;  %v4712_v62 = vadd.f32 %v4711_v23, %v4710_v46  ;;  %v4635_v56 = vpop.f32.mrb[7].mxu1  ;;  %v4682_v9 = vadd.f32 %v6162_v45, %v8528_v5 }
 0x4d6   :  { %v4681_v39 = vadd.f32 %v8528_v5, %v4635_v56 }
 0x4d7   :  { %v4702_v14 = vrot.slane %v4701_v59, 1  ;;  %v4714_v24 = vadd.f32 %v4713_v8, %v4712_v62  ;;  %v4717_v0 = vsel %vm9200_vm1, %v4682_v9, 0.0  ;;  %vm9215_vm1 = vmmov %vm9182_vm0 }
 0x4d8   :  { %v4715_v27 = vsel %vm9199_vm14, %v4681_v39, 0.0  ;;  %vm9214_vm14 = vmmov %vm9182_vm0 }
 0x4d9   :  { %v4703_v2 = vadd.f32 %v4702_v14, %v4701_v59  ;;  %v4716_v13 = vadd.f32 %v4715_v27, %v4714_v24 }
 0x4db   :  { %v4725_v43 = vmul.f32 0.015625, %v4703_v2  ;;  %v4718_v10 = vadd.f32 %v4717_v0, %v4716_v13 }
 0x4dd   :  { %v8588_v38 = vsub.f32 %v4673_v40, %v4725_v43  ;;  %v4719_v54 = vrot.slane %v4718_v10, 4  ;;  %v8591_v47 = vsub.f32 %v8536_v35, %v4725_v43  ;;  %v8594_v61 = vsub.f32 %v8533_v18, %v4725_v43 }
 0x4de   :  { %v8597_v5 = vsub.f32 %v8548_v32, %v4725_v43  ;;  %v8600_v29 = vsub.f32 %v8545_v11, %v4725_v43  ;;  %v8602_v41 = vsub.f32 %v4671_v21, %v4725_v43  ;;  %v8604_v49 = vsub.f32 %v4672_v28, %v4725_v43 }
 0x4df   :  { %v4720_v63 = vadd.f32 %v4719_v54, %v4718_v10  ;;  %v8606_v19 = vsub.f32 %v4674_v36, %v4725_v43  ;;  %v4743_v35 = vmul.f32 %v8591_v47, %v8591_v47  ;;  %v4744_v18 = vmul.f32 %v8594_v61, %v8594_v61 }
 0x4e0   :  { %v4745_v32 = vmul.f32 %v8597_v5, %v8597_v5  ;;  %v4746_v11 = vmul.f32 %v8600_v29, %v8600_v29  ;;  %v4747_v36 = vmul.f32 %v8602_v41, %v8602_v41  ;;  %v4748_v53 = vmul.f32 %v8604_v49, %v8604_v49 }
 0x4e1   :  { %v4721_v31 = vrot.slane %v4720_v63, 2  ;;  %v4759_v21 = vsel %vm9201_vm9, %v4743_v35, 0.0  ;;  %v4760_v28 = vsel %vm9182_vm0, %v4744_v18, 0.0  ;;  %v4750_v16 = vmul.f32 %v8606_v19, %v8606_v19 }
 0x4e2   :  { %v4761_v58 = vadd.f32 %v4760_v28, %v4759_v21  ;;  %v4762_v40 = vsel %vm9202_vm12, %v4745_v32, 0.0  ;;  %v4764_v42 = vsel %vm9203_vm4, %v4746_v11, 0.0  ;;  %v4766_v60 = vsel %vm9204_vm15, %v4747_v36, 0.0 }
 0x4e3   :  { %v4722_v52 = vadd.f32 %v4721_v31, %v4720_v63  ;;  %v4768_v46 = vsel %vm9207_vm7, %v4748_v53, 0.0  ;;  %v4772_v24 = vsel %vm9211_vm11, %v4750_v16, 0.0 }
 0x4e4   :  { %v4763_v33 = vadd.f32 %v4762_v40, %v4761_v58 }
 0x4e5   :  { %v4723_v26 = vrot.slane %v4722_v52, 1 }
 0x4e6   :  { %v4765_v51 = vadd.f32 %v4764_v42, %v4763_v33 }
 0x4e7   :  { %v4724_v48 = vadd.f32 %v4723_v26, %v4722_v52 }
 0x4e8   :  { %v4767_v15 = vadd.f32 %v4766_v60, %v4765_v51 }
 0x4e9   :  { %v4726_v6 = vmul.f32 0.015625, %v4724_v48 }
 0x4ea   :  { %v4769_v59 = vadd.f32 %v4768_v46, %v4767_v15 }
 0x4eb   :  { %v8626_v20 = vsub.f32 %v8569_v1, %v4726_v6  ;;  %v8629_v25 = vsub.f32 %v8565_v37, %v4726_v6  ;;  %v8631_v34 = vsub.f32 %v4677_v12, %v4726_v6  ;;  %v8633_v22 = vsub.f32 %v4678_v44, %v4726_v6 }
 0x4ec   :  { %v8635_v50 = vsub.f32 %v4679_v30, %v4726_v6  ;;  %v8637_v4 = vsub.f32 %v4680_v57, %v4726_v6  ;;  %v8639_v55 = vsub.f32 %v4681_v39, %v4726_v6  ;;  %v8641_v3 = vsub.f32 %v4682_v9, %v4726_v6 }
 0x4ed   :  { %v4751_v17 = vmul.f32 %v8626_v20, %v8626_v20  ;;  %v4752_v1 = vmul.f32 %v8629_v25, %v8629_v25  ;;  %v4753_v37 = vmul.f32 %v8631_v34, %v8631_v34  ;;  %v4749_v44 = vmul.f32 %v8588_v38, %v8588_v38 }
 0x4ee   :  { %v4754_v12 = vmul.f32 %v8633_v22, %v8633_v22  ;;  %v4755_v23 = vmul.f32 %v8635_v50, %v8635_v50  ;;  %v4756_v8 = vmul.f32 %v8637_v4, %v8637_v4  ;;  %v4757_v27 = vmul.f32 %v8639_v55, %v8639_v55 }
 0x4ef   :  { %v4780_v7 = vsel %vm9205_vm5, %v4751_v17, 0.0  ;;  %v4781_v57 = vsel %vm9206_vm6, %v4752_v1, 0.0  ;;  %v4783_v45 = vsel %vm9208_vm10, %v4753_v37, 0.0  ;;  %v4770_v62 = vsel %vm9209_vm2, %v4749_v44, 0.0 }
 0x4f0   :  { %v4782_v30 = vadd.f32 %v4781_v57, %v4780_v7  ;;  %v4785_v9 = vsel %vm9210_vm8, %v4754_v12, 0.0  ;;  %v4771_v39 = vadd.f32 %v4770_v62, %v4769_v59  ;;  %v4787_v2 = vsel %vm9212_vm3, %v4755_v23, 0.0 }
 0x4f1   :  { %v4758_v43 = vmul.f32 %v8641_v3, %v8641_v3  ;;  %v4789_v10 = vsel %vm9213_vm13, %v4756_v8, 0.0  ;;  %v4791_v35 = vsel %vm9214_vm14, %v4757_v27, 0.0 }
 0x4f2   :  { %v4784_v56 = vadd.f32 %v4783_v45, %v4782_v30  ;;  %v4773_v13 = vadd.f32 %v4772_v24, %v4771_v39 }
 0x4f3   :  { %v4793_v31 = vsel %vm9215_vm1, %v4758_v43, 0.0 }
 0x4f4   :  { %v4786_v14 = vadd.f32 %v4785_v9, %v4784_v56  ;;  %v4774_v54 = vrot.slane %v4773_v13, 4 }
 0x4f6   :  { %v4788_v0 = vadd.f32 %v4787_v2, %v4786_v14  ;;  %v4775_v18 = vadd.f32 %v4774_v54, %v4773_v13 }
 0x4f8   :  { %v4790_v63 = vadd.f32 %v4789_v10, %v4788_v0  ;;  %v4776_v11 = vrot.slane %v4775_v18, 2 }
 0x4fa   :  { %v4792_v32 = vadd.f32 %v4791_v35, %v4790_v63  ;;  %v4777_v28 = vadd.f32 %v4776_v11, %v4775_v18 }
 0x4fc   :  { %v4794_v21 = vadd.f32 %v4793_v31, %v4792_v32  ;;  %v4778_v58 = vrot.slane %v4777_v28, 1 }
 0x4fe   :  { %v4795_v52 = vrot.slane %v4794_v21, 4  ;;  %v4779_v40 = vadd.f32 %v4778_v58, %v4777_v28 }
 0x500   :  { %v4796_v36 = vadd.f32 %v4795_v52, %v4794_v21  ;;  %v4801_v33 = vmul.f32 0.015625, %v4779_v40 }
 0x502   :  { %v4797_v26 = vrot.slane %v4796_v36, 2  ;;  %v4803_v48 = vadd.f32 1e-05, %v4801_v33 }
 0x504   :  { %v4798_v42 = vadd.f32 %v4797_v26, %v4796_v36  ;;  %6475 = vrsqrt.f32 %v4803_v48 }
 0x506   :  { %v4799_v51 = vrot.slane %v4798_v42, 1 }
 0x508   :  { %v4800_v60 = vadd.f32 %v4799_v51, %v4798_v42 }
 0x50a   :  { %v4802_v6 = vmul.f32 0.015625, %v4800_v60 }
 0x50c   :  { %v4804_v15 = vadd.f32 1e-05, %v4802_v6 }
 0x50e   :  { %6477 = vrsqrt.f32 %v4804_v15  ;;  %v6476_v53 = vpop.eup %6475 }
 0x50f   :  { %v4807_v17 = vmul.f32 %v6476_v53, %v8591_v47  ;;  %v8676_v1 = vmul.f32 %v6476_v53, %v8594_v61  ;;  %v8679_v37 = vmul.f32 %v6476_v53, %v8597_v5  ;;  %v8682_v44 = vmul.f32 %v6476_v53, %v8600_v29 }
 0x510   :  { %v8685_v12 = vmul.f32 %v6476_v53, %v8602_v41  ;;  %v8688_v7 = vmul.f32 %v6476_v53, %v8604_v49  ;;  %v8691_v57 = vmul.f32 %v6476_v53, %v8588_v38  ;;  %v8694_v47 = vmul.f32 %v6476_v53, %v8606_v19 }
 0x511   :  { %v4839_v61 = vmin.f32 %v4807_v17, 0.0  ;;  %v4840_v30 = vmin.f32 %v8676_v1, 0.0  ;;  %v4841_v5 = vmin.f32 %v8679_v37, 0.0  ;;  %v4842_v46 = vmin.f32 %v8682_v44, 0.0 }
 0x512   :  { %v4843_v56 = vmin.f32 %v8685_v12, 0.0  ;;  %vm4823_vm9 = vcmp.gt.f32.partialorder %v4807_v17, 0.0  ;;  %v4845_v35 = vmin.f32 %v8691_v57, 0.0  ;;  %vm4824_vm0 = vcmp.gt.f32.partialorder %v8676_v1, 0.0 }
 0x513   :  { %v4855_v16 = vmul.f32 1.442695, %v4839_v61  ;;  %v4857_v29 = vmul.f32 1.442695, %v4840_v30  ;;  %v4859_v23 = vmul.f32 1.442695, %v4841_v5 }
 0x514   :  { %v4861_v45 = vmul.f32 1.442695, %v4842_v46  ;;  %v4863_v24 = vmul.f32 1.442695, %v4843_v56  ;;  %v4867_v21 = vmul.f32 1.442695, %v4845_v35 }
 0x515   :  { %6479 = vpow2.f32 %v4855_v16  ;;  %vm4825_vm12 = vcmp.gt.f32.partialorder %v8679_v37, 0.0  ;;  %vm4826_vm5 = vcmp.gt.f32.partialorder %v8682_v44, 0.0  ;;  %vm4827_vm7 = vcmp.gt.f32.partialorder %v8685_v12, 0.0 }
 0x516   :  { %6481 = vpow2.f32 %v4857_v29  ;;  %vm4828_vm2 = vcmp.gt.f32.partialorder %v8688_v7, 0.0  ;;  %vm4829_vm11 = vcmp.gt.f32.partialorder %v8691_v57, 0.0  ;;  %vm4830_vm13 = vcmp.gt.f32.partialorder %v8694_v47, 0.0 }
 0x517   :  { %6483 = vpow2.f32 %v4859_v23 }
 0x518   :  { %v6478_v41 = vpop.eup %6477  ;;  %6485 = vpow2.f32 %v4861_v45 }
 0x519   :  { %v8700_v49 = vmul.f32 %v6478_v41, %v8639_v55  ;;  %v4815_v38 = vmul.f32 %v6478_v41, %v8626_v20  ;;  %v8704_v19 = vmul.f32 %v6478_v41, %v8629_v25  ;;  %v8707_v59 = vmul.f32 %v6478_v41, %v8631_v34 }
 0x51a   :  { %v8713_v39 = vmul.f32 %v6478_v41, %v8633_v22  ;;  %v4844_v25 = vmin.f32 %v8688_v7, 0.0  ;;  %v8718_v27 = vmul.f32 %v6478_v41, %v8635_v50  ;;  %v8721_v2 = vmul.f32 %v6478_v41, %v8637_v4 }
 0x51b   :  { %v4847_v62 = vmin.f32 %v4815_v38, 0.0  ;;  %v4848_v8 = vmin.f32 %v8704_v19, 0.0  ;;  %v4849_v55 = vmin.f32 %v8707_v59, 0.0  ;;  %v8725_v54 = vmul.f32 %v6478_v41, %v8641_v3 }
 0x51c   :  { %v4850_v34 = vmin.f32 %v8713_v39, 0.0  ;;  %v4851_v10 = vmin.f32 %v8718_v27, 0.0  ;;  %v4865_v63 = vmul.f32 1.442695, %v4844_v25  ;;  %v4852_v31 = vmin.f32 %v8721_v2, 0.0 }
 0x51d   :  { %v4871_v9 = vmul.f32 1.442695, %v4847_v62  ;;  %v4873_v20 = vmul.f32 1.442695, %v4848_v8  ;;  %v4875_v14 = vmul.f32 1.442695, %v4849_v55 }
 0x51e   :  { %v4877_v43 = vmul.f32 1.442695, %v4850_v34  ;;  %v4879_v4 = vmul.f32 1.442695, %v4851_v10  ;;  %v4846_v3 = vmin.f32 %v8694_v47, 0.0  ;;  %v4853_v26 = vmin.f32 %v8700_v49, 0.0 }
 0x51f   :  { %6487 = vpow2.f32 %v4871_v9  ;;  %v6480_v13 = vpop.eup %6479  ;;  %vm4831_vm4 = vcmp.gt.f32.partialorder %v4815_v38, 0.0  ;;  %v4881_v33 = vmul.f32 1.442695, %v4852_v31  ;;  %vm4832_vm15 = vcmp.gt.f32.partialorder %v8704_v19, 0.0 }
 0x520   :  { %6489 = vpow2.f32 %v4873_v20  ;;  %v6482_v22 = vpop.eup %6481  ;;  %v5330_v0 = vadd.f32 -1.0, %v6480_v13  ;;  %v4869_v60 = vmul.f32 1.442695, %v4846_v3  ;;  %vm4833_vm6 = vcmp.gt.f32.partialorder %v8707_v59, 0.0 }
 0x521   :  { %6491 = vpow2.f32 %v4875_v14  ;;  %v5331_v18 = vadd.f32 -1.0, %v6482_v22  ;;  %v6484_v32 = vpop.eup %6483  ;;  %vm4834_vm10 = vcmp.gt.f32.partialorder %v8713_v39, 0.0  ;;  %vm4835_vm8 = vcmp.gt.f32.partialorder %v8718_v27, 0.0 }
 0x522   :  { %6493 = vpow2.f32 %v4863_v24  ;;  %v4903_v50 = vsel %vm4823_vm9, %v4807_v17, %v5330_v0  ;;  %v6486_v11 = vpop.eup %6485  ;;  %v5332_v58 = vadd.f32 -1.0, %v6484_v32  ;;  %v4883_v17 = vmul.f32 1.442695, %v4853_v26 }
 0x523   :  { %4919 = vxpose.xlu0.b32.start [1/8] (short) (narrow) %v4903_v50, 8  ;;  %6495 = vpow2.f32 %v4877_v43  ;;  %v4904_v52 = vsel %vm4824_vm0, %v8676_v1, %v5331_v18  ;;  %v5333_v15 = vadd.f32 -1.0, %v6486_v11  ;;  %v4854_v1 = vmin.f32 %v8725_v54, 0.0 }
 0x524   :  { %6497 = vpow2.f32 %v4865_v63  ;;  %v4905_v6 = vsel %vm4825_vm12, %v8679_v37, %v5332_v58  ;;  %vm4836_vm3 = vcmp.gt.f32.partialorder %v8721_v2, 0.0  ;;  %vm4837_vm14 = vcmp.gt.f32.partialorder %v8700_v49, 0.0 }
 0x525   :  { %6499 = vpow2.f32 %v4879_v4  ;;  %v4906_v16 = vsel %vm4826_vm5, %v8682_v44, %v5333_v15  ;;  %v4885_v46 = vmul.f32 1.442695, %v4854_v1  ;;  %vm4838_vm1 = vcmp.gt.f32.partialorder %v8725_v54, 0.0 }
 0x526   :  { %6501 = vpow2.f32 %v4867_v21  ;;  %vm4983_vm9 = vcmask 523264  }
 0x527   :  { %4920 = vxpose.xlu0.b32.cont [2/8] (short) (narrow) %v4904_v52, 8  ;;  %6503 = vpow2.f32 %v4881_v33 }
 0x528   :  { %6505 = vpow2.f32 %v4869_v60 }
 0x529   :  { %v6488_v28 = vpop.eup %6487  ;;  %6507 = vpow2.f32 %v4883_v17 }
 0x52a   :  { %v6490_v36 = vpop.eup %6489  ;;  %v5338_v40 = vadd.f32 -1.0, %v6488_v28  ;;  %6509 = vpow2.f32 %v4885_v46 }
 0x52b   :  { %v6492_v42 = vpop.eup %6491  ;;  %v5339_v51 = vadd.f32 -1.0, %v6490_v36  ;;  %4921 = vxpose.xlu0.b32.cont [3/8] (short) (narrow) %v4905_v6, 8 }
 0x52c   :  { %v4911_v48 = vsel %vm4831_vm4, %v4815_v38, %v5338_v40  ;;  %v6494_v53 = vpop.eup %6493  ;;  %v5340_v30 = vadd.f32 -1.0, %v6492_v42 }
 0x52d   :  { %4951 = vxpose.xlu1.b32.start [1/8] (short) (narrow) %v4911_v48, 8  ;;  %v4912_v61 = vsel %vm4832_vm15, %v8704_v19, %v5339_v51  ;;  %v6496_v5 = vpop.eup %6495  ;;  %v5334_v37 = vadd.f32 -1.0, %v6494_v53 }
 0x52e   :  { %v6498_v29 = vpop.eup %6497  ;;  %v4913_v41 = vsel %vm4833_vm6, %v8707_v59, %v5340_v30  ;;  %v5341_v23 = vadd.f32 -1.0, %v6496_v5 }
 0x52f   :  { %4922 = vxpose.xlu0.b32.cont [4/8] (short) (narrow) %v4906_v16, 8  ;;  %v6500_v38 = vpop.eup %6499  ;;  %v4907_v19 = vsel %vm4827_vm7, %v8685_v12, %v5334_v37  ;;  %v5335_v45 = vadd.f32 -1.0, %v6498_v29 }
 0x530   :  { %v6502_v62 = vpop.eup %6501  ;;  %v4914_v44 = vsel %vm4834_vm10, %v8713_v39, %v5341_v23  ;;  %v5342_v56 = vadd.f32 -1.0, %v6500_v38 }
 0x531   :  { %4952 = vxpose.xlu1.b32.cont [2/8] (short) (narrow) %v4912_v61, 8  ;;  %v6504_v8 = vpop.eup %6503  ;;  %v4908_v9 = vsel %vm4828_vm2, %v8688_v7, %v5335_v45  ;;  %v5336_v59 = vadd.f32 -1.0, %v6502_v62 }
 0x532   :  { %v6506_v55 = vpop.eup %6505  ;;  %v4915_v12 = vsel %vm4835_vm8, %v8718_v27, %v5342_v56  ;;  %v5343_v20 = vadd.f32 -1.0, %v6504_v8 }
 0x533   :  { %4923 = vxpose.xlu0.b32.cont [5/8] (short) (narrow) %v4907_v19, 8  ;;  %v6508_v25 = vpop.eup %6507  ;;  %v4909_v14 = vsel %vm4829_vm11, %v8691_v57, %v5336_v59  ;;  %v5337_v34 = vadd.f32 -1.0, %v6506_v55 }
 0x534   :  { %v4916_v7 = vsel %vm4836_vm3, %v8721_v2, %v5343_v20  ;;  %v5344_v39 = vadd.f32 -1.0, %v6508_v25  ;;  %v6510_v24 = vpop.eup %6509 }
 0x535   :  { %4953 = vxpose.xlu1.b32.cont [3/8] (short) (narrow) %v4913_v41, 8  ;;  %v4910_v13 = vsel %vm4830_vm13, %v8694_v47, %v5337_v34  ;;  %v5345_v57 = vadd.f32 -1.0, %v6510_v24 }
 0x536   :  { %v4917_v27 = vsel %vm4837_vm14, %v8700_v49, %v5344_v39 }
 0x537   :  { %4924 = vxpose.xlu0.b32.cont [6/8] (short) (narrow) %v4908_v9, 8  ;;  %v4918_v22 = vsel %vm4838_vm1, %v8725_v54, %v5345_v57 }
 0x539   :  { %4954 = vxpose.xlu1.b32.cont [4/8] (short) (narrow) %v4914_v44, 8 }
 0x53b   :  { %4925 = vxpose.xlu0.b32.cont [7/8] (short) (narrow) %v4909_v14, 8 }
 0x53d   :  { %4955 = vxpose.xlu1.b32.cont [5/8] (short) (narrow) %v4915_v12, 8 }
 0x53f   :  { %4926 = vxpose.xlu0.b32.end [8/8] (short) (narrow) %v4910_v13, 8 }
 0x541   :  { %4956 = vxpose.xlu1.b32.cont [6/8] (short) (narrow) %v4916_v7, 8 }
 0x545   :  { %4957 = vxpose.xlu1.b32.cont [7/8] (short) (narrow) %v4917_v27, 8 }
 0x549   :  { %4958 = vxpose.xlu1.b32.end [8/8] (short) (narrow) %v4918_v22, 8 }
 0x5a3   :  { %v4935_v0 = vpop.trf.xlu0 }
 0x5a4   :  { %4984 = vst.msk [vmem:[%s8772_s6] sm:$0xff] %vm4983_vm9, %v4935_v0 }
 0x5ad   :  { %v4967_v47 = vpop.trf.xlu1 }
 0x5ae   :  { %4985 = vst.msk [vmem:[%s8772_s6 + $0x8] sm:$0xff] %vm4983_vm9, %v4967_v47 }

</bundles_post_ra>
